<compile_context>
chip_gen: v7x
topology: tpu7x:2x2x1
jax: 0.10.0
libtpu: 0.0.40
codegen_flags: <defaults>
</compile_context>

<pallas_src>
import functools

import jax
import jax.numpy as jnp
from jax.experimental import pallas as pl
from jax.experimental.pallas import tpu as pltpu


def _round_up(x, m):
    return (x + m - 1) // m * m


def _pad_axis(a, axis, target):
    widths = [(0, 0)] * a.ndim
    widths[axis] = (0, target - a.shape[axis])
    return jnp.pad(a, widths)


# ----------------------------------------------------------------------------
# Fused BasicBlock kernel.
# ----------------------------------------------------------------------------
def _basic_block_kernel(x_ref, s1_ref, b1_ref, s2_ref, b2_ref, w1_ref, w2_ref,
                        *rest, stride, equal, C):
    if equal:
        (o_ref, xs1, p1, xs2, p2) = rest
        ws_ref = None
    else:
        (ws_ref, o_ref, xs1, p1, xs2, p2) = rest

    f32, bf16 = jnp.float32, jnp.bfloat16
    _, Ho, Wo, Cout = o_ref.shape
    M = Ho * Wo
    taps = [(kh, kw) for kh in range(3) for kw in range(3)]

    # --------------- Stage 1: BN1 + ReLU, residual, padded activation -------
    if stride == 1:
        x = x_ref[0]                                       # (H, W, C) f32
        H, W = x.shape[0], x.shape[1]
        act = jnp.maximum(x * s1_ref[...] + b1_ref[...], 0.0)
        a_bf = act.astype(bf16)

        if equal:
            o_ref[0] = x                                   # identity residual
        else:
            res = jnp.dot(a_bf.reshape(M, C), ws_ref[...],
                          preferred_element_type=f32)
            o_ref[0] = res.reshape(Ho, Wo, Cout)

        # zero only the pad border; interior is fully overwritten each step.
        xs1[0:1, :, :] = jnp.zeros((1, W + 2, C), bf16)
        xs1[H + 1:H + 2, :, :] = jnp.zeros((1, W + 2, C), bf16)
        xs1[:, 0:1, :] = jnp.zeros((H + 2, 1, C), bf16)
        xs1[:, W + 1:W + 2, :] = jnp.zeros((H + 2, 1, C), bf16)
        xs1[1:H + 1, 1:W + 1, :] = a_bf

        def conv1_tap(kh, kw):
            return xs1[kh:kh + Ho, kw:kw + Wo, :].reshape(M, C)
    else:
        # stride 2: x arrives packed along W (free row-major reshape in the
        # wrapper): x_ref[0][h, w2, rw*C + c] == x_orig[h, 2*w2 + rw, c].
        # Split H the same way (leading-dim split of the value is free).
        x = x_ref[0].reshape(Ho, 2, Wo, 2 * C)             # [h2, rh, w2, rw*C+c]
        act = jnp.maximum(x * s1_ref[...] + b1_ref[...], 0.0)
        a_bf = act.astype(bf16)

        # 1x1 shortcut at stride 2 reads act[2*h2, 2*w2, :] = a_bf[:, 0, :, :C].
        res = jnp.dot(a_bf[:, 0:1, :, 0:C].reshape(M, C), ws_ref[...],
                      preferred_element_type=f32)
        o_ref[0] = res.reshape(Ho, Wo, Cout)

        # Packed zero-padded activation:
        #   xs1[q, r, j, p*C + c] == act_padded[2q + r, 2j + p, c]
        Hq, Wq = Ho + 1, Wo + 1
        xs1[0:1, 0:1, :, :] = jnp.zeros((1, 1, Wq, 2 * C), bf16)
        xs1[Hq - 1:Hq, 1:2, :, :] = jnp.zeros((1, 1, Wq, 2 * C), bf16)
        xs1[:, :, 0:1, 0:C] = jnp.zeros((Hq, 2, 1, C), bf16)
        xs1[:, :, Wq - 1:Wq, C:2 * C] = jnp.zeros((Hq, 2, 1, C), bf16)
        # interior scatter (4 contiguous slabs)
        xs1[0:Ho, 1:2, 0:Wo, C:2 * C] = a_bf[:, 0:1, :, 0:C]
        xs1[0:Ho, 1:2, 1:Wo + 1, 0:C] = a_bf[:, 0:1, :, C:2 * C]
        xs1[1:Ho + 1, 0:1, 0:Wo, C:2 * C] = a_bf[:, 1:2, :, 0:C]
        xs1[1:Ho + 1, 0:1, 1:Wo + 1, 0:C] = a_bf[:, 1:2, :, C:2 * C]

        def conv1_tap(kh, kw):
            qh, rh = divmod(kh, 2)
            qw, rw = divmod(kw, 2)
            return xs1[qh:qh + Ho, rh:rh + 1, qw:qw + Wo,
                       rw * C:(rw + 1) * C].reshape(M, C)

    # --------------- Stage 2: conv1 as one im2col matmul (K = 9*C) ----------
    for t, (kh, kw) in enumerate(taps):
        p1[:, t * C:(t + 1) * C] = conv1_tap(kh, kw)
    out1 = jnp.dot(p1[...], w1_ref[...], preferred_element_type=f32)   # (M, Cout)

    # --------------- Stage 3: BN2 + ReLU into padded scratch ----------------
    a2 = jnp.maximum(out1 * s2_ref[...] + b2_ref[...], 0.0).astype(bf16)
    xs2[0:1, :, :] = jnp.zeros((1, Wo + 2, Cout), bf16)
    xs2[Ho + 1:Ho + 2, :, :] = jnp.zeros((1, Wo + 2, Cout), bf16)
    xs2[:, 0:1, :] = jnp.zeros((Ho + 2, 1, Cout), bf16)
    xs2[:, Wo + 1:Wo + 2, :] = jnp.zeros((Ho + 2, 1, Cout), bf16)
    xs2[1:Ho + 1, 1:Wo + 1, :] = a2.reshape(Ho, Wo, Cout)

    # --------------- Stage 4: conv2 as one im2col matmul + residual add -----
    for t, (kh, kw) in enumerate(taps):
        p2[:, t * Cout:(t + 1) * Cout] = (
            xs2[kh:kh + Ho, kw:kw + Wo, :].reshape(M, Cout))
    out2 = jnp.dot(p2[...], w2_ref[...], preferred_element_type=f32)   # (M, Cout)
    o_ref[0] = o_ref[0] + out2.reshape(Ho, Wo, Cout)


def basic_block_pallas(x, p, *, stride, equal):
    """One fused WRN BasicBlock. x: (N, H, W, C) f32, C a multiple of 128."""
    N, H, W, C = x.shape
    Cout = p["w2r"].shape[1]

    if stride == 1:
        Ho, Wo = H, W
        x_in = x
        x_spec = pl.BlockSpec((1, H, W, C), lambda n: (n, 0, 0, 0))
        xs1_shape = (H + 2, W + 2, C)
        Cx = C
    elif stride == 2:
        if H % 2 or W % 2:
            raise ValueError("stride-2 block needs even spatial dims")
        if equal:
            raise ValueError("identity shortcut requires stride 1")
        Ho, Wo = H // 2, W // 2
        # free row-major repack: (N, H, W, C) -> (N, H, W/2, 2C)
        x_in = x.reshape(N, H, Wo, 2 * C)
        x_spec = pl.BlockSpec((1, H, Wo, 2 * C), lambda n: (n, 0, 0, 0))
        xs1_shape = (Ho + 1, 2, Wo + 1, 2 * C)
        Cx = 2 * C
    else:
        raise NotImplementedError("stride must be 1 or 2")

    M = Ho * Wo
    kernel = functools.partial(_basic_block_kernel, stride=stride,
                               equal=equal, C=C)

    in_specs = [
        x_spec,
        pl.BlockSpec((1, Cx), lambda n: (0, 0)),
        pl.BlockSpec((1, Cx), lambda n: (0, 0)),
        pl.BlockSpec((1, Cout), lambda n: (0, 0)),
        pl.BlockSpec((1, Cout), lambda n: (0, 0)),
        pl.BlockSpec((9 * C, Cout), lambda n: (0, 0)),
        pl.BlockSpec((9 * Cout, Cout), lambda n: (0, 0)),
    ]
    args = [x_in, p["scale1"], p["bias1"], p["scale2"], p["bias2"],
            p["w1r"], p["w2r"]]
    if not equal:
        in_specs.append(pl.BlockSpec((C, Cout), lambda n: (0, 0)))
        args.append(p["wsr"])

    return pl.pallas_call(
        kernel,
        out_shape=jax.ShapeDtypeStruct((N, Ho, Wo, Cout), jnp.float32),
        grid_spec=pltpu.PrefetchScalarGridSpec(
            num_scalar_prefetch=0,
            grid=(N,),
            in_specs=in_specs,
            out_specs=pl.BlockSpec((1, Ho, Wo, Cout), lambda n: (n, 0, 0, 0)),
            scratch_shapes=[
                pltpu.VMEM(xs1_shape, jnp.bfloat16),              # padded act1
                pltpu.VMEM((M, 9 * C), jnp.bfloat16),             # im2col conv1
                pltpu.VMEM((Ho + 2, Wo + 2, Cout), jnp.bfloat16),  # padded act2
                pltpu.VMEM((M, 9 * Cout), jnp.bfloat16),          # im2col conv2
            ]),
        compiler_params=pltpu.CompilerParams(
            dimension_semantics=("parallel",)),
    )(*args)


# ----------------------------------------------------------------------------
# Parameter construction (deterministic, synthetic) + one-time packing.
# ----------------------------------------------------------------------------
_BN_EPS = 1e-5


def _init_bn(key, c):
    k1, k2, k3, k4 = jax.random.split(key, 4)
    gamma = 1.0 + 0.1 * jax.random.normal(k1, (c,), jnp.float32)
    beta = 0.1 * jax.random.normal(k2, (c,), jnp.float32)
    mean = 0.1 * jax.random.normal(k3, (c,), jnp.float32)
    var = jax.random.uniform(k4, (c,), jnp.float32, 0.5, 1.5)
    scale = gamma / jnp.sqrt(var + _BN_EPS)
    bias = beta - mean * scale
    return scale, bias


def _init_conv(key, cin, cout, ks):
    fan = cin * ks * ks
    return (jax.random.normal(key, (ks, ks, cin, cout), jnp.float32)
            * jnp.sqrt(2.0 / fan))


def init_block_params(key, in_planes, out_planes):
    k1, k2, k3, k4, k5 = jax.random.split(key, 5)
    p = {}
    p["scale1"], p["bias1"] = _init_bn(k1, in_planes)
    p["w1"] = _init_conv(k2, in_planes, out_planes, 3)
    p["scale2"], p["bias2"] = _init_bn(k3, out_planes)
    p["w2"] = _init_conv(k4, out_planes, out_planes, 3)
    if in_planes != out_planes:
        p["ws"] = _init_conv(k5, in_planes, out_planes, 1)
    return p


def init_network_block_params(key, nb_layers, in_planes, out_planes):
    params = []
    for i in range(nb_layers):
        cin = in_planes if i == 0 else out_planes
        key, sub = jax.random.split(key)
        params.append(init_block_params(sub, cin, out_planes))
    return params


def prepare_network_block_params(params, in_planes, out_planes, stride):
    """Pad / pack / bf16-cast raw parameters ONCE (hoisted out of the forward)."""
    cpad = _round_up(max(in_planes, out_planes, 1), 128)
    prepped = []
    for i, p in enumerate(params):
        cur_in = in_planes if i == 0 else out_planes
        s = stride if i == 0 else 1
        equal = (cur_in == out_planes)
        scale1 = _pad_axis(p["scale1"], 0, cpad)
        bias1 = _pad_axis(p["bias1"], 0, cpad)
        if s == 2:
            # packed-W input layout: channel index = rw*C + c
            scale1 = jnp.tile(scale1, 2)
            bias1 = jnp.tile(bias1, 2)
        q = {
            "stride": s,
            "equal": equal,
            "scale1": scale1.reshape(1, -1),
            "bias1": bias1.reshape(1, -1),
            "scale2": _pad_axis(p["scale2"], 0, cpad).reshape(1, cpad),
            "bias2": _pad_axis(p["bias2"], 0, cpad).reshape(1, cpad),
            "w1r": _pad_axis(_pad_axis(p["w1"], 2, cpad), 3, cpad)
                   .reshape(9 * cpad, cpad).astype(jnp.bfloat16),
            "w2r": _pad_axis(_pad_axis(p["w2"], 2, cpad), 3, cpad)
                   .reshape(9 * cpad, cpad).astype(jnp.bfloat16),
        }
        if not equal:
            q["wsr"] = (_pad_axis(_pad_axis(p["ws"], 2, cpad), 3, cpad)
                        .reshape(cpad, cpad).astype(jnp.bfloat16))
        prepped.append(q)
    return prepped, cpad


# ----------------------------------------------------------------------------
# CGES_NetworkBlock forward using the fused Pallas kernel.
# ----------------------------------------------------------------------------
def cges_network_block_forward(x_nchw, prepped, cpad, out_planes):
    x = jnp.transpose(x_nchw, (0, 2, 3, 1))       # NCHW -> NHWC
    x = _pad_axis(x, 3, cpad)
    for p in prepped:
        x = basic_block_pallas(x, p, stride=p["stride"], equal=p["equal"])
    x = x[..., :out_planes]
    return jnp.transpose(x, (0, 3, 1, 2))         # NHWC -> NCHW


# ----------------------------------------------------------------------------
# Pure-JAX f32 reference (same math, lax conv) for correctness checking.
# ----------------------------------------------------------------------------
def _conv_ref(x, w, stride, pad):
    return jax.lax.conv_general_dilated(
        x, w, window_strides=(stride, stride),
        padding=((pad, pad), (pad, pad)),
        dimension_numbers=("NHWC", "HWIO", "NHWC"))


def ref_forward(x_nchw, params, in_planes, out_planes, stride):
    x = jnp.transpose(x_nchw, (0, 2, 3, 1))
    for i, p in enumerate(params):
        cur_in = in_planes if i == 0 else out_planes
        s = stride if i == 0 else 1
        equal = (cur_in == out_planes)
        act1 = jax.nn.relu(x * p["scale1"] + p["bias1"])
        out = _conv_ref(act1, p["w1"], s, 1)
        act2 = jax.nn.relu(out * p["scale2"] + p["bias2"])
        out = _conv_ref(act2, p["w2"], 1, 1)
        res = x if equal else _conv_ref(act1, p["ws"], s, 0)
        x = out + res
    return jnp.transpose(x, (0, 3, 1, 2))


def _check(y, y_ref, name):
    err = float(jnp.max(jnp.abs(y - y_ref)))
    ref_mag = float(jnp.max(jnp.abs(y_ref)))
    # bf16 MXU operands with f32 accumulation vs pure-f32 reference.
    tol = 5e-2 * max(1.0, ref_mag)
    if err > tol:
        raise AssertionError(f"{name}: max abs err {err:.4g} > tol {tol:.4g}")


if __name__ == "__main__":
    key = jax.random.PRNGKey(0)
    kx, kp, kx2, kp2 = jax.random.split(key, 4)

    # Config A: CGES_NetworkBlock(nb_layers=2, in_planes=4, out_planes=8, stride=2)
    N, in_planes, H, W = 2, 4, 16, 16
    out_planes, nb_layers, stride = 8, 2, 2
    x = jax.random.normal(kx, (N, in_planes, H, W), jnp.float32)
    params = init_network_block_params(kp, nb_layers, in_planes, out_planes)
    prepped, cpad = prepare_network_block_params(
        params, in_planes, out_planes, stride)

    y = cges_network_block_forward(x, prepped, cpad, out_planes)
    y = jax.block_until_ready(y)
    assert y.shape == (N, out_planes, H // stride, W // stride), y.shape
    _check(y, ref_forward(x, params, in_planes, out_planes, stride),
           "strided block")

    # Config B: CGES_NetworkBlock(nb_layers=1, in_planes=4, out_planes=8, stride=1)
    # (exercises the stride-1 convolutional-shortcut path)
    N2, in2, H2, W2, out2 = 2, 4, 8, 8, 8
    x2 = jax.random.normal(kx2, (N2, in2, H2, W2), jnp.float32)
    params2 = init_network_block_params(kp2, 1, in2, out2)
    prepped2, cpad2 = prepare_network_block_params(params2, in2, out2, 1)
    y2 = jax.block_until_ready(
        cges_network_block_forward(x2, prepped2, cpad2, out2))
    assert y2.shape == (N2, out2, H2, W2), y2.shape
    _check(y2, ref_forward(x2, params2, in2, out2, 1), "stride-1 block")

    # TODO(synk): dropout (droprate_init > 0) and training-mode batch-stat BN
    # are not implemented; the forward matches the eval-mode WRN BasicBlock.
    print("KERNEL_OK")
</pallas_src>

<mosaic_0001>
module attributes {stable_mosaic.version = 11 : i64} {
  func.func @_basic_block_kernel(%arg0: i32, %arg1: memref<1x16x8x256xf32, #tpu.memory_space<vmem>>, %arg2: memref<1x256xf32, #tpu.memory_space<vmem>>, %arg3: memref<1x256xf32, #tpu.memory_space<vmem>>, %arg4: memref<1x128xf32, #tpu.memory_space<vmem>>, %arg5: memref<1x128xf32, #tpu.memory_space<vmem>>, %arg6: memref<1152x128xbf16, #tpu.memory_space<vmem>>, %arg7: memref<1152x128xbf16, #tpu.memory_space<vmem>>, %arg8: memref<128x128xbf16, #tpu.memory_space<vmem>>, %arg9: memref<1x8x8x128xf32, #tpu.memory_space<vmem>>, %arg10: memref<9x2x9x256xbf16, #tpu.memory_space<vmem>>, %arg11: memref<64x1152xbf16, #tpu.memory_space<vmem>>, %arg12: memref<10x10x128xbf16, #tpu.memory_space<vmem>>, %arg13: memref<64x1152xbf16, #tpu.memory_space<vmem>>) attributes {dimension_semantics = [#tpu.dimension_semantics<parallel>], iteration_bounds = array<i64: 2>, scalar_prefetch = 0 : i64, scratch_operands = 4 : i64, tpu.core_type = #tpu.core_type<tc>, window_params = [{transform_indices = @transform_0, window_bounds = array<i64: 1, 16, 8, 256>}, {pipeline_mode = #tpu.pipeline_mode<synchronous>, transform_indices = @transform_1, window_bounds = array<i64: 1, 256>}, {pipeline_mode = #tpu.pipeline_mode<synchronous>, transform_indices = @transform_2, window_bounds = array<i64: 1, 256>}, {pipeline_mode = #tpu.pipeline_mode<synchronous>, transform_indices = @transform_3, window_bounds = array<i64: 1, 128>}, {pipeline_mode = #tpu.pipeline_mode<synchronous>, transform_indices = @transform_4, window_bounds = array<i64: 1, 128>}, {pipeline_mode = #tpu.pipeline_mode<synchronous>, transform_indices = @transform_5, window_bounds = array<i64: 1152, 128>}, {pipeline_mode = #tpu.pipeline_mode<synchronous>, transform_indices = @transform_6, window_bounds = array<i64: 1152, 128>}, {pipeline_mode = #tpu.pipeline_mode<synchronous>, transform_indices = @transform_7, window_bounds = array<i64: 128, 128>}, {transform_indices = @transform_8, window_bounds = array<i64: 1, 8, 8, 128>}]} {
    %c0 = arith.constant 0 : index
    %c0_0 = arith.constant 0 : index
    %c0_1 = arith.constant 0 : index
    %c0_2 = arith.constant 0 : index
    %0 = vector.load %arg1[%c0, %c0_0, %c0_1, %c0_2] : memref<1x16x8x256xf32, #tpu.memory_space<vmem>>, vector<1x16x8x256xf32>
    %1 = vector.shape_cast %0 : vector<1x16x8x256xf32> to vector<16x8x256xf32>
    %2 = vector.shape_cast %1 : vector<16x8x256xf32> to vector<8x2x8x256xf32>
    %c0_3 = arith.constant 0 : index
    %c0_4 = arith.constant 0 : index
    %3 = vector.load %arg2[%c0_3, %c0_4] : memref<1x256xf32, #tpu.memory_space<vmem>>, vector<1x256xf32>
    %4 = vector.shape_cast %3 : vector<1x256xf32> to vector<1x1x1x256xf32>
    %5 = vector.broadcast %4 : vector<1x1x1x256xf32> to vector<8x2x8x256xf32>
    %6 = arith.mulf %2, %5 : vector<8x2x8x256xf32>
    %c0_5 = arith.constant 0 : index
    %c0_6 = arith.constant 0 : index
    %7 = vector.load %arg3[%c0_5, %c0_6] : memref<1x256xf32, #tpu.memory_space<vmem>>, vector<1x256xf32>
    %8 = vector.shape_cast %7 : vector<1x256xf32> to vector<1x1x1x256xf32>
    %9 = vector.broadcast %8 : vector<1x1x1x256xf32> to vector<8x2x8x256xf32>
    %10 = arith.addf %6, %9 : vector<8x2x8x256xf32>
    %cst = arith.constant 0.000000e+00 : f32
    %11 = vector.broadcast %cst : f32 to vector<8x2x8x256xf32>
    %12 = arith.maximumf %10, %11 : vector<8x2x8x256xf32>
    %13 = arith.truncf %12 : vector<8x2x8x256xf32> to vector<8x2x8x256xbf16>
    %14 = vector.extract_strided_slice %13 {offsets = [0, 0, 0, 0], sizes = [8, 1, 8, 128], strides = [1, 1, 1, 1]} : vector<8x2x8x256xbf16> to vector<8x1x8x128xbf16>
    %15 = vector.shape_cast %14 : vector<8x1x8x128xbf16> to vector<64x128xbf16>
    %c0_7 = arith.constant 0 : index
    %c0_8 = arith.constant 0 : index
    %16 = vector.load %arg8[%c0_7, %c0_8] : memref<128x128xbf16, #tpu.memory_space<vmem>>, vector<128x128xbf16>
    %cst_9 = arith.constant dense<0.000000e+00> : vector<64x128xf32>
    %17 = tpu.matmul %15, %16, %cst_9 {dimension_numbers = #tpu.dot_dimension_numbers<[1], [0], [0], [1], [0, 0, 1, 1], [], []>} : vector<64x128xbf16>, vector<128x128xbf16>, vector<64x128xf32> -> vector<64x128xf32>
    %18 = vector.shape_cast %17 : vector<64x128xf32> to vector<8x8x128xf32>
    %c0_10 = arith.constant 0 : index
    %c0_11 = arith.constant 0 : index
    %c0_12 = arith.constant 0 : index
    %c0_13 = arith.constant 0 : index
    %19 = vector.load %arg9[%c0_10, %c0_11, %c0_12, %c0_13] : memref<1x8x8x128xf32, #tpu.memory_space<vmem>>, vector<1x8x8x128xf32>
    %20 = vector.shape_cast %19 : vector<1x8x8x128xf32> to vector<8x8x128xf32>
    %21 = vector.shape_cast %18 : vector<8x8x128xf32> to vector<1x8x8x128xf32>
    tpu.vector_store %arg9[%c0_10, %c0_11, %c0_12, %c0_13], %21 {strides = array<i32>} : memref<1x8x8x128xf32, #tpu.memory_space<vmem>>, vector<1x8x8x128xf32>,
    %cst_14 = arith.constant 0.000000e+00 : bf16
    %22 = vector.broadcast %cst_14 : bf16 to vector<1x1x9x256xbf16>
    %c0_15 = arith.constant 0 : index
    %c0_16 = arith.constant 0 : index
    %c0_17 = arith.constant 0 : index
    %c0_18 = arith.constant 0 : index
    %23 = vector.load %arg10[%c0_15, %c0_16, %c0_17, %c0_18] : memref<9x2x9x256xbf16, #tpu.memory_space<vmem>>, vector<1x1x9x256xbf16>
    tpu.vector_store %arg10[%c0_15, %c0_16, %c0_17, %c0_18], %22 {strides = array<i32>} : memref<9x2x9x256xbf16, #tpu.memory_space<vmem>>, vector<1x1x9x256xbf16>,
    %cst_19 = arith.constant 0.000000e+00 : bf16
    %24 = vector.broadcast %cst_19 : bf16 to vector<1x1x9x256xbf16>
    %c8 = arith.constant 8 : index
    %c1 = arith.constant 1 : index
    %c0_20 = arith.constant 0 : index
    %c0_21 = arith.constant 0 : index
    %25 = vector.load %arg10[%c8, %c1, %c0_20, %c0_21] : memref<9x2x9x256xbf16, #tpu.memory_space<vmem>>, vector<1x1x9x256xbf16>
    tpu.vector_store %arg10[%c8, %c1, %c0_20, %c0_21], %24 {strides = array<i32>} : memref<9x2x9x256xbf16, #tpu.memory_space<vmem>>, vector<1x1x9x256xbf16>,
    %cst_22 = arith.constant 0.000000e+00 : bf16
    %26 = vector.broadcast %cst_22 : bf16 to vector<9x2x1x128xbf16>
    %c0_23 = arith.constant 0 : index
    %c0_24 = arith.constant 0 : index
    %c0_25 = arith.constant 0 : index
    %c0_26 = arith.constant 0 : index
    %27 = vector.load %arg10[%c0_23, %c0_24, %c0_25, %c0_26] : memref<9x2x9x256xbf16, #tpu.memory_space<vmem>>, vector<9x2x1x128xbf16>
    tpu.vector_store %arg10[%c0_23, %c0_24, %c0_25, %c0_26], %26 {strides = array<i32>} : memref<9x2x9x256xbf16, #tpu.memory_space<vmem>>, vector<9x2x1x128xbf16>,
    %cst_27 = arith.constant 0.000000e+00 : bf16
    %28 = vector.broadcast %cst_27 : bf16 to vector<9x2x1x128xbf16>
    %c0_28 = arith.constant 0 : index
    %c0_29 = arith.constant 0 : index
    %c8_30 = arith.constant 8 : index
    %c128 = arith.constant 128 : index
    %29 = vector.load %arg10[%c0_28, %c0_29, %c8_30, %c128] : memref<9x2x9x256xbf16, #tpu.memory_space<vmem>>, vector<9x2x1x128xbf16>
    tpu.vector_store %arg10[%c0_28, %c0_29, %c8_30, %c128], %28 {strides = array<i32>} : memref<9x2x9x256xbf16, #tpu.memory_space<vmem>>, vector<9x2x1x128xbf16>,
    %30 = vector.extract_strided_slice %13 {offsets = [0, 0, 0, 0], sizes = [8, 1, 8, 128], strides = [1, 1, 1, 1]} : vector<8x2x8x256xbf16> to vector<8x1x8x128xbf16>
    %c0_31 = arith.constant 0 : index
    %c1_32 = arith.constant 1 : index
    %c0_33 = arith.constant 0 : index
    %c128_34 = arith.constant 128 : index
    %31 = vector.load %arg10[%c0_31, %c1_32, %c0_33, %c128_34] : memref<9x2x9x256xbf16, #tpu.memory_space<vmem>>, vector<8x1x8x128xbf16>
    tpu.vector_store %arg10[%c0_31, %c1_32, %c0_33, %c128_34], %30 {strides = array<i32>} : memref<9x2x9x256xbf16, #tpu.memory_space<vmem>>, vector<8x1x8x128xbf16>,
    %32 = vector.extract_strided_slice %13 {offsets = [0, 0, 0, 128], sizes = [8, 1, 8, 128], strides = [1, 1, 1, 1]} : vector<8x2x8x256xbf16> to vector<8x1x8x128xbf16>
    %c0_35 = arith.constant 0 : index
    %c1_36 = arith.constant 1 : index
    %c1_37 = arith.constant 1 : index
    %c0_38 = arith.constant 0 : index
    %33 = vector.load %arg10[%c0_35, %c1_36, %c1_37, %c0_38] : memref<9x2x9x256xbf16, #tpu.memory_space<vmem>>, vector<8x1x8x128xbf16>
    tpu.vector_store %arg10[%c0_35, %c1_36, %c1_37, %c0_38], %32 {strides = array<i32>} : memref<9x2x9x256xbf16, #tpu.memory_space<vmem>>, vector<8x1x8x128xbf16>,
    %34 = vector.extract_strided_slice %13 {offsets = [0, 1, 0, 0], sizes = [8, 1, 8, 128], strides = [1, 1, 1, 1]} : vector<8x2x8x256xbf16> to vector<8x1x8x128xbf16>
    %c1_39 = arith.constant 1 : index
    %c0_40 = arith.constant 0 : index
    %c0_41 = arith.constant 0 : index
    %c128_42 = arith.constant 128 : index
    %35 = vector.load %arg10[%c1_39, %c0_40, %c0_41, %c128_42] : memref<9x2x9x256xbf16, #tpu.memory_space<vmem>>, vector<8x1x8x128xbf16>
    tpu.vector_store %arg10[%c1_39, %c0_40, %c0_41, %c128_42], %34 {strides = array<i32>} : memref<9x2x9x256xbf16, #tpu.memory_space<vmem>>, vector<8x1x8x128xbf16>,
    %36 = vector.extract_strided_slice %13 {offsets = [0, 1, 0, 128], sizes = [8, 1, 8, 128], strides = [1, 1, 1, 1]} : vector<8x2x8x256xbf16> to vector<8x1x8x128xbf16>
    %c1_43 = arith.constant 1 : index
    %c0_44 = arith.constant 0 : index
    %c1_45 = arith.constant 1 : index
    %c0_46 = arith.constant 0 : index
    %37 = vector.load %arg10[%c1_43, %c0_44, %c1_45, %c0_46] : memref<9x2x9x256xbf16, #tpu.memory_space<vmem>>, vector<8x1x8x128xbf16>
    tpu.vector_store %arg10[%c1_43, %c0_44, %c1_45, %c0_46], %36 {strides = array<i32>} : memref<9x2x9x256xbf16, #tpu.memory_space<vmem>>, vector<8x1x8x128xbf16>,
    %c0_47 = arith.constant 0 : index
    %c0_48 = arith.constant 0 : index
    %c0_49 = arith.constant 0 : index
    %c0_50 = arith.constant 0 : index
    %38 = vector.load %arg10[%c0_47, %c0_48, %c0_49, %c0_50] : memref<9x2x9x256xbf16, #tpu.memory_space<vmem>>, vector<8x1x8x128xbf16>
    %39 = vector.shape_cast %38 : vector<8x1x8x128xbf16> to vector<64x128xbf16>
    %c0_51 = arith.constant 0 : index
    %c0_52 = arith.constant 0 : index
    %40 = vector.load %arg11[%c0_51, %c0_52] : memref<64x1152xbf16, #tpu.memory_space<vmem>>, vector<64x128xbf16>
    tpu.vector_store %arg11[%c0_51, %c0_52], %39 {strides = array<i32>} : memref<64x1152xbf16, #tpu.memory_space<vmem>>, vector<64x128xbf16>,
    %c0_53 = arith.constant 0 : index
    %c0_54 = arith.constant 0 : index
    %c0_55 = arith.constant 0 : index
    %c128_56 = arith.constant 128 : index
    %41 = vector.load %arg10[%c0_53, %c0_54, %c0_55, %c128_56] : memref<9x2x9x256xbf16, #tpu.memory_space<vmem>>, vector<8x1x8x128xbf16>
    %42 = vector.shape_cast %41 : vector<8x1x8x128xbf16> to vector<64x128xbf16>
    %c0_57 = arith.constant 0 : index
    %c128_58 = arith.constant 128 : index
    %43 = vector.load %arg11[%c0_57, %c128_58] : memref<64x1152xbf16, #tpu.memory_space<vmem>>, vector<64x128xbf16>
    tpu.vector_store %arg11[%c0_57, %c128_58], %42 {strides = array<i32>} : memref<64x1152xbf16, #tpu.memory_space<vmem>>, vector<64x128xbf16>,
    %c0_59 = arith.constant 0 : index
    %c0_60 = arith.constant 0 : index
    %c1_61 = arith.constant 1 : index
    %c0_62 = arith.constant 0 : index
    %44 = vector.load %arg10[%c0_59, %c0_60, %c1_61, %c0_62] : memref<9x2x9x256xbf16, #tpu.memory_space<vmem>>, vector<8x1x8x128xbf16>
    %45 = vector.shape_cast %44 : vector<8x1x8x128xbf16> to vector<64x128xbf16>
    %c0_63 = arith.constant 0 : index
    %c256 = arith.constant 256 : index
    %46 = vector.load %arg11[%c0_63, %c256] : memref<64x1152xbf16, #tpu.memory_space<vmem>>, vector<64x128xbf16>
    tpu.vector_store %arg11[%c0_63, %c256], %45 {strides = array<i32>} : memref<64x1152xbf16, #tpu.memory_space<vmem>>, vector<64x128xbf16>,
    %c0_64 = arith.constant 0 : index
    %c1_65 = arith.constant 1 : index
    %c0_66 = arith.constant 0 : index
    %c0_67 = arith.constant 0 : index
    %47 = vector.load %arg10[%c0_64, %c1_65, %c0_66, %c0_67] : memref<9x2x9x256xbf16, #tpu.memory_space<vmem>>, vector<8x1x8x128xbf16>
    %48 = vector.shape_cast %47 : vector<8x1x8x128xbf16> to vector<64x128xbf16>
    %c0_68 = arith.constant 0 : index
    %c384 = arith.constant 384 : index
    %49 = vector.load %arg11[%c0_68, %c384] : memref<64x1152xbf16, #tpu.memory_space<vmem>>, vector<64x128xbf16>
    tpu.vector_store %arg11[%c0_68, %c384], %48 {strides = array<i32>} : memref<64x1152xbf16, #tpu.memory_space<vmem>>, vector<64x128xbf16>,
    %c0_69 = arith.constant 0 : index
    %c1_70 = arith.constant 1 : index
    %c0_71 = arith.constant 0 : index
    %c128_72 = arith.constant 128 : index
    %50 = vector.load %arg10[%c0_69, %c1_70, %c0_71, %c128_72] : memref<9x2x9x256xbf16, #tpu.memory_space<vmem>>, vector<8x1x8x128xbf16>
    %51 = vector.shape_cast %50 : vector<8x1x8x128xbf16> to vector<64x128xbf16>
    %c0_73 = arith.constant 0 : index
    %c512 = arith.constant 512 : index
    %52 = vector.load %arg11[%c0_73, %c512] : memref<64x1152xbf16, #tpu.memory_space<vmem>>, vector<64x128xbf16>
    tpu.vector_store %arg11[%c0_73, %c512], %51 {strides = array<i32>} : memref<64x1152xbf16, #tpu.memory_space<vmem>>, vector<64x128xbf16>,
    %c0_74 = arith.constant 0 : index
    %c1_75 = arith.constant 1 : index
    %c1_76 = arith.constant 1 : index
    %c0_77 = arith.constant 0 : index
    %53 = vector.load %arg10[%c0_74, %c1_75, %c1_76, %c0_77] : memref<9x2x9x256xbf16, #tpu.memory_space<vmem>>, vector<8x1x8x128xbf16>
    %54 = vector.shape_cast %53 : vector<8x1x8x128xbf16> to vector<64x128xbf16>
    %c0_78 = arith.constant 0 : index
    %c640 = arith.constant 640 : index
    %55 = vector.load %arg11[%c0_78, %c640] : memref<64x1152xbf16, #tpu.memory_space<vmem>>, vector<64x128xbf16>
    tpu.vector_store %arg11[%c0_78, %c640], %54 {strides = array<i32>} : memref<64x1152xbf16, #tpu.memory_space<vmem>>, vector<64x128xbf16>,
    %c1_79 = arith.constant 1 : index
    %c0_80 = arith.constant 0 : index
    %c0_81 = arith.constant 0 : index
    %c0_82 = arith.constant 0 : index
    %56 = vector.load %arg10[%c1_79, %c0_80, %c0_81, %c0_82] : memref<9x2x9x256xbf16, #tpu.memory_space<vmem>>, vector<8x1x8x128xbf16>
    %57 = vector.shape_cast %56 : vector<8x1x8x128xbf16> to vector<64x128xbf16>
    %c0_83 = arith.constant 0 : index
    %c768 = arith.constant 768 : index
    %58 = vector.load %arg11[%c0_83, %c768] : memref<64x1152xbf16, #tpu.memory_space<vmem>>, vector<64x128xbf16>
    tpu.vector_store %arg11[%c0_83, %c768], %57 {strides = array<i32>} : memref<64x1152xbf16, #tpu.memory_space<vmem>>, vector<64x128xbf16>,
    %c1_84 = arith.constant 1 : index
    %c0_85 = arith.constant 0 : index
    %c0_86 = arith.constant 0 : index
    %c128_87 = arith.constant 128 : index
    %59 = vector.load %arg10[%c1_84, %c0_85, %c0_86, %c128_87] : memref<9x2x9x256xbf16, #tpu.memory_space<vmem>>, vector<8x1x8x128xbf16>
    %60 = vector.shape_cast %59 : vector<8x1x8x128xbf16> to vector<64x128xbf16>
    %c0_88 = arith.constant 0 : index
    %c896 = arith.constant 896 : index
    %61 = vector.load %arg11[%c0_88, %c896] : memref<64x1152xbf16, #tpu.memory_space<vmem>>, vector<64x128xbf16>
    tpu.vector_store %arg11[%c0_88, %c896], %60 {strides = array<i32>} : memref<64x1152xbf16, #tpu.memory_space<vmem>>, vector<64x128xbf16>,
    %c1_89 = arith.constant 1 : index
    %c0_90 = arith.constant 0 : index
    %c1_91 = arith.constant 1 : index
    %c0_92 = arith.constant 0 : index
    %62 = vector.load %arg10[%c1_89, %c0_90, %c1_91, %c0_92] : memref<9x2x9x256xbf16, #tpu.memory_space<vmem>>, vector<8x1x8x128xbf16>
    %63 = vector.shape_cast %62 : vector<8x1x8x128xbf16> to vector<64x128xbf16>
    %c0_93 = arith.constant 0 : index
    %c1024 = arith.constant 1024 : index
    %64 = vector.load %arg11[%c0_93, %c1024] : memref<64x1152xbf16, #tpu.memory_space<vmem>>, vector<64x128xbf16>
    tpu.vector_store %arg11[%c0_93, %c1024], %63 {strides = array<i32>} : memref<64x1152xbf16, #tpu.memory_space<vmem>>, vector<64x128xbf16>,
    %c0_94 = arith.constant 0 : index
    %c0_95 = arith.constant 0 : index
    %65 = vector.load %arg11[%c0_94, %c0_95] : memref<64x1152xbf16, #tpu.memory_space<vmem>>, vector<64x1152xbf16>
    %c0_96 = arith.constant 0 : index
    %c0_97 = arith.constant 0 : index
    %66 = vector.load %arg6[%c0_96, %c0_97] : memref<1152x128xbf16, #tpu.memory_space<vmem>>, vector<1152x128xbf16>
    %cst_98 = arith.constant dense<0.000000e+00> : vector<64x128xf32>
    %67 = tpu.matmul %65, %66, %cst_98 {dimension_numbers = #tpu.dot_dimension_numbers<[1], [0], [0], [1], [0, 0, 1, 1], [], []>} : vector<64x1152xbf16>, vector<1152x128xbf16>, vector<64x128xf32> -> vector<64x128xf32>
    %c0_99 = arith.constant 0 : index
    %c0_100 = arith.constant 0 : index
    %68 = vector.load %arg4[%c0_99, %c0_100] : memref<1x128xf32, #tpu.memory_space<vmem>>, vector<1x128xf32>
    %69 = vector.broadcast %68 : vector<1x128xf32> to vector<64x128xf32>
    %70 = arith.mulf %67, %69 : vector<64x128xf32>
    %c0_101 = arith.constant 0 : index
    %c0_102 = arith.constant 0 : index
    %71 = vector.load %arg5[%c0_101, %c0_102] : memref<1x128xf32, #tpu.memory_space<vmem>>, vector<1x128xf32>
    %72 = vector.broadcast %71 : vector<1x128xf32> to vector<64x128xf32>
    %73 = arith.addf %70, %72 : vector<64x128xf32>
    %cst_103 = arith.constant 0.000000e+00 : f32
    %74 = vector.broadcast %cst_103 : f32 to vector<64x128xf32>
    %75 = arith.maximumf %73, %74 : vector<64x128xf32>
    %76 = arith.truncf %75 : vector<64x128xf32> to vector<64x128xbf16>
    %cst_104 = arith.constant 0.000000e+00 : bf16
    %77 = vector.broadcast %cst_104 : bf16 to vector<1x10x128xbf16>
    %c0_105 = arith.constant 0 : index
    %c0_106 = arith.constant 0 : index
    %c0_107 = arith.constant 0 : index
    %78 = vector.load %arg12[%c0_105, %c0_106, %c0_107] : memref<10x10x128xbf16, #tpu.memory_space<vmem>>, vector<1x10x128xbf16>
    tpu.vector_store %arg12[%c0_105, %c0_106, %c0_107], %77 {strides = array<i32>} : memref<10x10x128xbf16, #tpu.memory_space<vmem>>, vector<1x10x128xbf16>,
    %cst_108 = arith.constant 0.000000e+00 : bf16
    %79 = vector.broadcast %cst_108 : bf16 to vector<1x10x128xbf16>
    %c9 = arith.constant 9 : index
    %c0_109 = arith.constant 0 : index
    %c0_110 = arith.constant 0 : index
    %80 = vector.load %arg12[%c9, %c0_109, %c0_110] : memref<10x10x128xbf16, #tpu.memory_space<vmem>>, vector<1x10x128xbf16>
    tpu.vector_store %arg12[%c9, %c0_109, %c0_110], %79 {strides = array<i32>} : memref<10x10x128xbf16, #tpu.memory_space<vmem>>, vector<1x10x128xbf16>,
    %cst_111 = arith.constant 0.000000e+00 : bf16
    %81 = vector.broadcast %cst_111 : bf16 to vector<10x1x128xbf16>
    %c0_112 = arith.constant 0 : index
    %c0_113 = arith.constant 0 : index
    %c0_114 = arith.constant 0 : index
    %82 = vector.load %arg12[%c0_112, %c0_113, %c0_114] : memref<10x10x128xbf16, #tpu.memory_space<vmem>>, vector<10x1x128xbf16>
    tpu.vector_store %arg12[%c0_112, %c0_113, %c0_114], %81 {strides = array<i32>} : memref<10x10x128xbf16, #tpu.memory_space<vmem>>, vector<10x1x128xbf16>,
    %cst_115 = arith.constant 0.000000e+00 : bf16
    %83 = vector.broadcast %cst_115 : bf16 to vector<10x1x128xbf16>
    %c0_116 = arith.constant 0 : index
    %c9_117 = arith.constant 9 : index
    %c0_118 = arith.constant 0 : index
    %84 = vector.load %arg12[%c0_116, %c9_117, %c0_118] : memref<10x10x128xbf16, #tpu.memory_space<vmem>>, vector<10x1x128xbf16>
    tpu.vector_store %arg12[%c0_116, %c9_117, %c0_118], %83 {strides = array<i32>} : memref<10x10x128xbf16, #tpu.memory_space<vmem>>, vector<10x1x128xbf16>,
    %85 = vector.shape_cast %76 : vector<64x128xbf16> to vector<8x8x128xbf16>
    %c1_119 = arith.constant 1 : index
    %c1_120 = arith.constant 1 : index
    %c0_121 = arith.constant 0 : index
    %86 = vector.load %arg12[%c1_119, %c1_120, %c0_121] : memref<10x10x128xbf16, #tpu.memory_space<vmem>>, vector<8x8x128xbf16>
    tpu.vector_store %arg12[%c1_119, %c1_120, %c0_121], %85 {strides = array<i32>} : memref<10x10x128xbf16, #tpu.memory_space<vmem>>, vector<8x8x128xbf16>,
    %c0_122 = arith.constant 0 : index
    %c0_123 = arith.constant 0 : index
    %c0_124 = arith.constant 0 : index
    %87 = vector.load %arg12[%c0_122, %c0_123, %c0_124] : memref<10x10x128xbf16, #tpu.memory_space<vmem>>, vector<8x8x128xbf16>
    %88 = vector.shape_cast %87 : vector<8x8x128xbf16> to vector<64x128xbf16>
    %c0_125 = arith.constant 0 : index
    %c0_126 = arith.constant 0 : index
    %89 = vector.load %arg13[%c0_125, %c0_126] : memref<64x1152xbf16, #tpu.memory_space<vmem>>, vector<64x128xbf16>
    tpu.vector_store %arg13[%c0_125, %c0_126], %88 {strides = array<i32>} : memref<64x1152xbf16, #tpu.memory_space<vmem>>, vector<64x128xbf16>,
    %c0_127 = arith.constant 0 : index
    %c1_128 = arith.constant 1 : index
    %c0_129 = arith.constant 0 : index
    %90 = vector.load %arg12[%c0_127, %c1_128, %c0_129] : memref<10x10x128xbf16, #tpu.memory_space<vmem>>, vector<8x8x128xbf16>
    %91 = vector.shape_cast %90 : vector<8x8x128xbf16> to vector<64x128xbf16>
    %c0_130 = arith.constant 0 : index
    %c128_131 = arith.constant 128 : index
    %92 = vector.load %arg13[%c0_130, %c128_131] : memref<64x1152xbf16, #tpu.memory_space<vmem>>, vector<64x128xbf16>
    tpu.vector_store %arg13[%c0_130, %c128_131], %91 {strides = array<i32>} : memref<64x1152xbf16, #tpu.memory_space<vmem>>, vector<64x128xbf16>,
    %c0_132 = arith.constant 0 : index
    %c2 = arith.constant 2 : index
    %c0_133 = arith.constant 0 : index
    %93 = vector.load %arg12[%c0_132, %c2, %c0_133] : memref<10x10x128xbf16, #tpu.memory_space<vmem>>, vector<8x8x128xbf16>
    %94 = vector.shape_cast %93 : vector<8x8x128xbf16> to vector<64x128xbf16>
    %c0_134 = arith.constant 0 : index
    %c256_135 = arith.constant 256 : index
    %95 = vector.load %arg13[%c0_134, %c256_135] : memref<64x1152xbf16, #tpu.memory_space<vmem>>, vector<64x128xbf16>
    tpu.vector_store %arg13[%c0_134, %c256_135], %94 {strides = array<i32>} : memref<64x1152xbf16, #tpu.memory_space<vmem>>, vector<64x128xbf16>,
    %c1_136 = arith.constant 1 : index
    %c0_137 = arith.constant 0 : index
    %c0_138 = arith.constant 0 : index
    %96 = vector.load %arg12[%c1_136, %c0_137, %c0_138] : memref<10x10x128xbf16, #tpu.memory_space<vmem>>, vector<8x8x128xbf16>
    %97 = vector.shape_cast %96 : vector<8x8x128xbf16> to vector<64x128xbf16>
    %c0_139 = arith.constant 0 : index
    %c384_140 = arith.constant 384 : index
    %98 = vector.load %arg13[%c0_139, %c384_140] : memref<64x1152xbf16, #tpu.memory_space<vmem>>, vector<64x128xbf16>
    tpu.vector_store %arg13[%c0_139, %c384_140], %97 {strides = array<i32>} : memref<64x1152xbf16, #tpu.memory_space<vmem>>, vector<64x128xbf16>,
    %c1_141 = arith.constant 1 : index
    %c1_142 = arith.constant 1 : index
    %c0_143 = arith.constant 0 : index
    %99 = vector.load %arg12[%c1_141, %c1_142, %c0_143] : memref<10x10x128xbf16, #tpu.memory_space<vmem>>, vector<8x8x128xbf16>
    %100 = vector.shape_cast %99 : vector<8x8x128xbf16> to vector<64x128xbf16>
    %c0_144 = arith.constant 0 : index
    %c512_145 = arith.constant 512 : index
    %101 = vector.load %arg13[%c0_144, %c512_145] : memref<64x1152xbf16, #tpu.memory_space<vmem>>, vector<64x128xbf16>
    tpu.vector_store %arg13[%c0_144, %c512_145], %100 {strides = array<i32>} : memref<64x1152xbf16, #tpu.memory_space<vmem>>, vector<64x128xbf16>,
    %c1_146 = arith.constant 1 : index
    %c2_147 = arith.constant 2 : index
    %c0_148 = arith.constant 0 : index
    %102 = vector.load %arg12[%c1_146, %c2_147, %c0_148] : memref<10x10x128xbf16, #tpu.memory_space<vmem>>, vector<8x8x128xbf16>
    %103 = vector.shape_cast %102 : vector<8x8x128xbf16> to vector<64x128xbf16>
    %c0_149 = arith.constant 0 : index
    %c640_150 = arith.constant 640 : index
    %104 = vector.load %arg13[%c0_149, %c640_150] : memref<64x1152xbf16, #tpu.memory_space<vmem>>, vector<64x128xbf16>
    tpu.vector_store %arg13[%c0_149, %c640_150], %103 {strides = array<i32>} : memref<64x1152xbf16, #tpu.memory_space<vmem>>, vector<64x128xbf16>,
    %c2_151 = arith.constant 2 : index
    %c0_152 = arith.constant 0 : index
    %c0_153 = arith.constant 0 : index
    %105 = vector.load %arg12[%c2_151, %c0_152, %c0_153] : memref<10x10x128xbf16, #tpu.memory_space<vmem>>, vector<8x8x128xbf16>
    %106 = vector.shape_cast %105 : vector<8x8x128xbf16> to vector<64x128xbf16>
    %c0_154 = arith.constant 0 : index
    %c768_155 = arith.constant 768 : index
    %107 = vector.load %arg13[%c0_154, %c768_155] : memref<64x1152xbf16, #tpu.memory_space<vmem>>, vector<64x128xbf16>
    tpu.vector_store %arg13[%c0_154, %c768_155], %106 {strides = array<i32>} : memref<64x1152xbf16, #tpu.memory_space<vmem>>, vector<64x128xbf16>,
    %c2_156 = arith.constant 2 : index
    %c1_157 = arith.constant 1 : index
    %c0_158 = arith.constant 0 : index
    %108 = vector.load %arg12[%c2_156, %c1_157, %c0_158] : memref<10x10x128xbf16, #tpu.memory_space<vmem>>, vector<8x8x128xbf16>
    %109 = vector.shape_cast %108 : vector<8x8x128xbf16> to vector<64x128xbf16>
    %c0_159 = arith.constant 0 : index
    %c896_160 = arith.constant 896 : index
    %110 = vector.load %arg13[%c0_159, %c896_160] : memref<64x1152xbf16, #tpu.memory_space<vmem>>, vector<64x128xbf16>
    tpu.vector_store %arg13[%c0_159, %c896_160], %109 {strides = array<i32>} : memref<64x1152xbf16, #tpu.memory_space<vmem>>, vector<64x128xbf16>,
    %c2_161 = arith.constant 2 : index
    %c2_162 = arith.constant 2 : index
    %c0_163 = arith.constant 0 : index
    %111 = vector.load %arg12[%c2_161, %c2_162, %c0_163] : memref<10x10x128xbf16, #tpu.memory_space<vmem>>, vector<8x8x128xbf16>
    %112 = vector.shape_cast %111 : vector<8x8x128xbf16> to vector<64x128xbf16>
    %c0_164 = arith.constant 0 : index
    %c1024_165 = arith.constant 1024 : index
    %113 = vector.load %arg13[%c0_164, %c1024_165] : memref<64x1152xbf16, #tpu.memory_space<vmem>>, vector<64x128xbf16>
    tpu.vector_store %arg13[%c0_164, %c1024_165], %112 {strides = array<i32>} : memref<64x1152xbf16, #tpu.memory_space<vmem>>, vector<64x128xbf16>,
    %c0_166 = arith.constant 0 : index
    %c0_167 = arith.constant 0 : index
    %114 = vector.load %arg13[%c0_166, %c0_167] : memref<64x1152xbf16, #tpu.memory_space<vmem>>, vector<64x1152xbf16>
    %c0_168 = arith.constant 0 : index
    %c0_169 = arith.constant 0 : index
    %115 = vector.load %arg7[%c0_168, %c0_169] : memref<1152x128xbf16, #tpu.memory_space<vmem>>, vector<1152x128xbf16>
    %cst_170 = arith.constant dense<0.000000e+00> : vector<64x128xf32>
    %116 = tpu.matmul %114, %115, %cst_170 {dimension_numbers = #tpu.dot_dimension_numbers<[1], [0], [0], [1], [0, 0, 1, 1], [], []>} : vector<64x1152xbf16>, vector<1152x128xbf16>, vector<64x128xf32> -> vector<64x128xf32>
    %c0_171 = arith.constant 0 : index
    %c0_172 = arith.constant 0 : index
    %c0_173 = arith.constant 0 : index
    %c0_174 = arith.constant 0 : index
    %117 = vector.load %arg9[%c0_171, %c0_172, %c0_173, %c0_174] : memref<1x8x8x128xf32, #tpu.memory_space<vmem>>, vector<1x8x8x128xf32>
    %118 = vector.shape_cast %117 : vector<1x8x8x128xf32> to vector<8x8x128xf32>
    %119 = vector.shape_cast %116 : vector<64x128xf32> to vector<8x8x128xf32>
    %120 = arith.addf %118, %119 : vector<8x8x128xf32>
    %c0_175 = arith.constant 0 : index
    %c0_176 = arith.constant 0 : index
    %c0_177 = arith.constant 0 : index
    %c0_178 = arith.constant 0 : index
    %121 = vector.load %arg9[%c0_175, %c0_176, %c0_177, %c0_178] : memref<1x8x8x128xf32, #tpu.memory_space<vmem>>, vector<1x8x8x128xf32>
    %122 = vector.shape_cast %121 : vector<1x8x8x128xf32> to vector<8x8x128xf32>
    %123 = vector.shape_cast %120 : vector<8x8x128xf32> to vector<1x8x8x128xf32>
    tpu.vector_store %arg9[%c0_175, %c0_176, %c0_177, %c0_178], %123 {strides = array<i32>} : memref<1x8x8x128xf32, #tpu.memory_space<vmem>>, vector<1x8x8x128xf32>,
    return
  }
  func.func @transform_0(%arg0: i32) -> (i32, i32, i32, i32) {
    %c0_i32 = arith.constant 0 : i32
    %c0_i32_0 = arith.constant 0 : i32
    %c0_i32_1 = arith.constant 0 : i32
    %c0_i32_2 = arith.constant 0 : i32
    return %arg0, %c0_i32, %c0_i32_0, %c0_i32_1 : i32, i32, i32, i32
  }
  func.func @transform_1(%arg0: i32) -> (i32, i32) {
    %c0_i32 = arith.constant 0 : i32
    %c0_i32_0 = arith.constant 0 : i32
    %c0_i32_1 = arith.constant 0 : i32
    return %c0_i32, %c0_i32_0 : i32, i32
  }
  func.func @transform_2(%arg0: i32) -> (i32, i32) {
    %c0_i32 = arith.constant 0 : i32
    %c0_i32_0 = arith.constant 0 : i32
    %c0_i32_1 = arith.constant 0 : i32
    return %c0_i32, %c0_i32_0 : i32, i32
  }
  func.func @transform_3(%arg0: i32) -> (i32, i32) {
    %c0_i32 = arith.constant 0 : i32
    %c0_i32_0 = arith.constant 0 : i32
    %c0_i32_1 = arith.constant 0 : i32
    return %c0_i32, %c0_i32_0 : i32, i32
  }
  func.func @transform_4(%arg0: i32) -> (i32, i32) {
    %c0_i32 = arith.constant 0 : i32
    %c0_i32_0 = arith.constant 0 : i32
    %c0_i32_1 = arith.constant 0 : i32
    return %c0_i32, %c0_i32_0 : i32, i32
  }
  func.func @transform_5(%arg0: i32) -> (i32, i32) {
    %c0_i32 = arith.constant 0 : i32
    %c0_i32_0 = arith.constant 0 : i32
    %c0_i32_1 = arith.constant 0 : i32
    return %c0_i32, %c0_i32_0 : i32, i32
  }
  func.func @transform_6(%arg0: i32) -> (i32, i32) {
    %c0_i32 = arith.constant 0 : i32
    %c0_i32_0 = arith.constant 0 : i32
    %c0_i32_1 = arith.constant 0 : i32
    return %c0_i32, %c0_i32_0 : i32, i32
  }
  func.func @transform_7(%arg0: i32) -> (i32, i32) {
    %c0_i32 = arith.constant 0 : i32
    %c0_i32_0 = arith.constant 0 : i32
    %c0_i32_1 = arith.constant 0 : i32
    return %c0_i32, %c0_i32_0 : i32, i32
  }
  func.func @transform_8(%arg0: i32) -> (i32, i32, i32, i32) {
    %c0_i32 = arith.constant 0 : i32
    %c0_i32_0 = arith.constant 0 : i32
    %c0_i32_1 = arith.constant 0 : i32
    %c0_i32_2 = arith.constant 0 : i32
    return %arg0, %c0_i32, %c0_i32_0, %c0_i32_1 : i32, i32, i32, i32
  }
}

</mosaic_0001>

<bundles_post_ra>
// kernel: tpu_custom_call.1
= control target key start
LH: loop header
LB: loop body
LE: loop exit
PB: predicated region body
PF: predicated region fallthrough
CT: control target
= control target key end

     0   :  { %13 = vsyncpa [#allocation7], 0  ;;  %s7286_s0 = inlined_call_operand.hbm [shape: f32[2,16,8,256], index: 0, kind: input, shape index: {}]   ;;  %s7287_s1 = inlined_call_operand.vmem [shape: f32[1,256], index: 1, kind: input, shape index: {}]   ;;  %s7288_s2 = inlined_call_operand.vmem [shape: f32[1,256], index: 2, kind: input, shape index: {}]   ;;  %s7289_s3 = inlined_call_operand.vmem [shape: f32[1,128], index: 3, kind: input, shape index: {}]   ;;  %s7290_s4 = inlined_call_operand.vmem [shape: f32[1,128], index: 4, kind: input, shape index: {}]   ;;  %s7291_s5 = inlined_call_operand.hbm [shape: bf16[1152,128], index: 5, kind: input, shape index: {}]   ;;  %s7292_s6 = inlined_call_operand.hbm [shape: bf16[1152,128], index: 6, kind: input, shape index: {}]   ;;  %s7293_s7 = inlined_call_operand.hbm [shape: bf16[128,128], index: 7, kind: input, shape index: {}]   ;;  %s7294_s8 = inlined_call_operand.hbm [shape: f32[2,8,8,128], index: 8, kind: output, shape index: {}]  }
   0x1   :  { %15 = vsyncpa [#allocation7 + $0x1], 0 }
   0x2   :  { %16 = vsyncpa [#allocation10], 0 }
   0x3   :  { %17 = vsyncpa [#allocation13], 0 }
   0x4   :  { %18 = vsyncpa [#allocation8], 0 }
   0x5   :  { %20 = vsyncpa [#allocation8 + $0x1], 0  ;;  %s6212_s27 = smov 0   ;;  %s6214_s28 = smov 0  }
   0x6   :  { %s6216_s29 = smov 0   ;;  %s6218_s30 = smov 0  }
   0x7 LB: > { %7300 = sst [smem:[#allocation19_spill]] %s6141_s27  ;;  %s6233_s9 = sadd.s32 4294967295, %s6153_s30   ;;  %s6153_s30 = sphi %s6218_s30, %s7335_s30   ;;  %s6149_s29 = sphi %s6216_s29, %s7334_s29   ;;  %s6145_s28 = sphi %s6214_s28, %s7333_s28   ;;  %s6141_s27 = sphi %s6212_s27, %s7332_s27  }
   0x8   : > { %s4905_s10 = sadd.s32 4294967294, %s6153_s30   ;;  %p46_p0 = scmp.ne.s32.totalorder %s6145_s28, %s6141_s27 }
   0x9   : > { %p7295_p1 = scmp.eq.s32.totalorder %s6233_s9, 0  ;;  %p223_p3 = scmp.eq.s32.totalorder %s4905_s10, 1 }
   0xa   : > { %p4906_p5 = scmp.ge.s32.totalorder %s6153_s30, 1  ;;  %p230_p7 = scmp.lt.s32.totalorder %s6153_s30, 3 }
   0xb   : > { %p6242_p4 = por %p7295_p1, %p46_p0  ;;  %p6247_p6 = por %p223_p3, %p46_p0 }
   0xc   : > { %p6252_p8 = pnand %p4906_p5, %p230_p7  ;;  %s6155_s14 = smov [#allocation9]  }
   0xd   : > { %s7301_s11 = scalar_select %p6242_p4, 1, 0 }
   0xe   : > { %s7302_s12 = scalar_select %p6247_p6, 1, 0 }
   0xf   : > { %s7304_s13 = scalar_select %p6252_p8, 1, 0 }
  0x10   : > { %7303 = sst [smem:[#allocation20_spill]] %s7302_s12  ;;  %s254_s15 = sshll.u32 %s6155_s14, 4  ;;  %s6256_s15 = int_to_ptr.vmem [resolvable:$true] %s254_s15 }
  0x11   : > { %p5733_p9 = pneg %p6252_p8  ;;  %s6156_s17 = smov [#allocation11]  }
  0x12   : > { %s267_s18 = sshll.u32 %s6156_s17, 4  ;;  %s6157_s19 = smov [#allocation12]   ;;  %s6267_s18 = int_to_ptr.vmem [resolvable:$true] %s267_s18 }
  0x13   : > { %p6263_p11 = pnand %p5733_p9, %p7295_p1  ;;  %s6269_s20 = sshll.u32 %s6157_s19, 4  ;;  %s281_s20 = int_to_ptr.vmem [resolvable:$true] %s6269_s20 }
  0x14   : > { %s5965_s23 = scalar_lea.hbm %s7291_s5, 9216 }
  0x15   : > { %p5966_p12 = scmp.ne.s32.totalorder %s7291_s5, %s5965_s23  ;;  %p6279_p13 = pneg %p6263_p11 }
  0x16   : > { %p5972_p5 = scmp.lt.u32.totalorder %s5965_s23, %s7291_s5 }
  0x17   : > { %p5968_p0 = pnand %p6279_p13, %p5966_p12 }
  0x19   : > { %p5969_p3 = pneg %p5968_p0 }
  0x1b   : > { %p5974_p7 = pnand %p5972_p5, %p5969_p3 }
  0x1d   : > { %5977 = shalt.err (!%p5974_p7)
}
  0x1e   : > { %s5978_s17 = scalar_lea.vmem %s6256_s15, 9216  ;;  %p5986_p2 = scmp.lt.s32.totalorder %s6256_s15, %s6256_s15 }
  0x1f   : > { %p5979_p9 = scmp.ne.s32.totalorder %s6256_s15, %s5978_s17  ;;  %p5987_p6 = scmp.lt.s32.totalorder %s5978_s17, %s5978_s17 }
  0x21   : > { %p5981_p10 = pnand %p5979_p9, %p6279_p13  ;;  %p5988_p12 = por %p5987_p6, %p5986_p2 }
  0x23   : > { %p5982_p1 = pneg %p5981_p10 }
  0x25   : > { %p5989_p0 = pnand %p5988_p12, %p5982_p1 }
  0x27   : > { %5992 = shalt.err (!%p5989_p0)
}
  0x28   : > { %s6158_s19 = smov 64   ;;  %s6159_s21 = smov 4  }
  0x29   : > { %5736 = dma.hbm_to_vmem [thread:$0]  (!%p6263_p11), %s7291_s5, 9216, %s6256_s15, [#allocation10], %s6158_s19, %s6158_s19, %s6159_s21  }
  0x2a   : > { %s5993_s10 = scalar_lea.hbm %s7292_s6, 9216 }
  0x2b   : > { %p5994_p1 = scmp.ne.s32.totalorder %s7292_s6, %s5993_s10  ;;  %p6000_p10 = scmp.lt.u32.totalorder %s5993_s10, %s7292_s6 }
  0x2d   : > { %p5996_p2 = pnand %p5994_p1, %p6279_p13 }
  0x2f   : > { %p5997_p6 = pneg %p5996_p2 }
  0x31   : > { %p6002_p3 = pnand %p6000_p10, %p5997_p6 }
  0x33   : > { %6005 = shalt.err (!%p6002_p3)
}
  0x34   : > { %s6006_s15 = scalar_lea.vmem %s6267_s18, 9216  ;;  %p6014_p12 = scmp.lt.s32.totalorder %s6267_s18, %s6267_s18 }
  0x35   : > { %p6007_p5 = scmp.ne.s32.totalorder %s6267_s18, %s6006_s15  ;;  %p6015_p0 = scmp.lt.s32.totalorder %s6006_s15, %s6006_s15 }
  0x37   : > { %p6009_p7 = pnand %p6007_p5, %p6279_p13  ;;  %p6016_p1 = por %p6015_p0, %p6014_p12 }
  0x39   : > { %p6010_p9 = pneg %p6009_p7 }
  0x3b   : > { %p6017_p2 = pnand %p6016_p1, %p6010_p9 }
  0x3d   : > { %6020 = shalt.err (!%p6017_p2)
}
  0x3e   : > { %5739 = dma.hbm_to_vmem [thread:$0]  (!%p6263_p11), %s7292_s6, 9216, %s6267_s18, [#allocation10], %s6158_s19, %s6158_s19, %s6159_s21  }
  0x3f   : > { %s6021_s24 = scalar_lea.hbm %s7293_s7, 1024 }
  0x40   : > { %p6022_p6 = scmp.ne.s32.totalorder %s7293_s7, %s6021_s24  ;;  %p6028_p5 = scmp.lt.u32.totalorder %s6021_s24, %s7293_s7 }
  0x42   : > { %p6024_p10 = pnand %p6022_p6, %p6279_p13 }
  0x44   : > { %p6025_p3 = pneg %p6024_p10 }
  0x46   : > { %p6030_p7 = pnand %p6028_p5, %p6025_p3 }
  0x48   : > { %6033 = shalt.err (!%p6030_p7)
}
  0x49   : > { %s6034_s15 = scalar_lea.vmem %s281_s20, 1024  ;;  %p6042_p1 = scmp.lt.s32.totalorder %s281_s20, %s281_s20 }
  0x4a   : > { %p6035_p9 = scmp.ne.s32.totalorder %s281_s20, %s6034_s15  ;;  %p6043_p2 = scmp.lt.s32.totalorder %s6034_s15, %s6034_s15 }
  0x4c   : > { %p6037_p12 = pnand %p6035_p9, %p6279_p13  ;;  %p6044_p4 = por %p6043_p2, %p6042_p1 }
  0x4e   : > { %p6038_p0 = pneg %p6037_p12 }
  0x50   : > { %p6045_p8 = pnand %p6044_p4, %p6038_p0 }
  0x52   : > { %6048 = shalt.err (!%p6045_p8)
}
  0x53   : > { %5742 = dma.hbm_to_vmem [thread:$0]  (!%p6263_p11), %s7293_s7, 1024, %s281_s20, [#allocation13], %s6158_s19, %s6158_s19, %s6159_s21  }
  0x54   : > { %s6352_s26 = sadd.s32 1, %s6153_s30   ;;  %s33_s12 = sadd.s32 1, %s6149_s29 }
  0x55   : > { %s30_s16 = ssub.s32 %s6153_s30, %s6352_s26  ;;  %p40_p8 = scmp.ne.s32.totalorder %s6149_s29, %s6145_s28 }
  0x56   : > { %p31_p4 = scmp.eq.s32.totalorder %s30_s16, 0  ;;  %p41_p13 = scmp.eq.s32.totalorder %s6153_s30, 0 }
  0x57   : > { %p5754_p6 = scmp.lt.s32.totalorder %s6153_s30, 2  ;;  %p7307_p3 = scmp.eq.s32.totalorder %s6233_s9, 1 }
  0x58   : > { %s6362_s22 = scalar_select %p31_p4, %s6149_s29, %s33_s12  }
  0x59   : > { %p42_p10 = por %p41_p13, %p40_p8  ;;  %p6366_p5 = por %p7307_p3, %p40_p8 }
  0x5a   : > { %s294_s24 = sand.u32 1, %s6149_s29   ;;  %s5203_s25 = sshll.u32 %s6153_s30, 12 }
  0x5b   : > { %s4911_s20 = sshll.u32 %s294_s24, 8  ;;  %s6375_s10 = scalar_lea.hbm %s7286_s0, %s5203_s25 }
  0x5c   : > { %s298_s14 = scalar_lea.vmem [#allocation6], %s4911_s20  ;;  %p6377_p11 = pnand %p5754_p6, %p42_p10 }
  0x5d   : > { %s305_s17 = sshll.u32 %s298_s14, 4  ;;  %s6383_s18 = scalar_lea.sflag [#allocation7], %s294_s24  ;;  %s6381_s17 = int_to_ptr.vmem [resolvable:$true] %s305_s17 }
  0x5e   : > { %s6049_s27 = scalar_lea.hbm %s6375_s10, 4096  ;;  %p6051_p9 = pneg %p6377_p11 }
  0x5f   : > { %p6050_p7 = scmp.ne.s32.totalorder %s6375_s10, %s6049_s27  ;;  %s6054_s25 = scalar_lea.hbm %s7286_s0, 8192 }
  0x60   : > { %p6055_p1 = scmp.lt.u32.totalorder %s6375_s10, %s7286_s0  ;;  %p6056_p2 = scmp.lt.u32.totalorder %s6054_s25, %s6049_s27 }
  0x61   : > { %p6052_p12 = pnand %p6051_p9, %p6050_p7  ;;  %p6058_p8 = scmp.lt.u32.totalorder %s6049_s27, %s6375_s10 }
  0x62   : > { %p6057_p4 = por %p6056_p2, %p6055_p1 }
  0x63   : > { %p6053_p0 = pneg %p6052_p12 }
  0x64   : > { %p6059_p13 = por %p6058_p8, %p6057_p4 }
  0x66   : > { %p6060_p6 = pnand %p6059_p13, %p6053_p0 }
  0x68   : > { %6063 = shalt.err (!%p6060_p6)
}
  0x69   : > { %s6064_s24 = scalar_lea.vmem %s6381_s17, 4096  ;;  %s6160_s21 = smov [#allocation6]  }
  0x6a   : > { %p6065_p10 = scmp.ne.s32.totalorder %s6381_s17, %s6064_s24  ;;  %s6069_s14 = sshll.u32 %s6160_s21, 4  ;;  %s6070_s14 = int_to_ptr.vmem [resolvable:$false] %s6069_s14 }
  0x6b   : > { %s6071_s16 = scalar_lea.vmem %s6070_s14, 8192  ;;  %p6072_p12 = scmp.lt.s32.totalorder %s6381_s17, %s6070_s14 }
  0x6c   : > { %p6067_p3 = pnand %p6065_p10, %p6051_p9  ;;  %p6073_p1 = scmp.lt.s32.totalorder %s6071_s16, %s6064_s24 }
  0x6e   : > { %p6068_p7 = pneg %p6067_p3  ;;  %p6074_p2 = por %p6073_p1, %p6072_p12 }
  0x70   : > { %p6075_p4 = pnand %p6074_p2, %p6068_p7 }
  0x72   : > { %6078 = shalt.err (!%p6075_p4)
}
  0x73   : > { %s6161_s27 = smov 256   ;;  %s6162_s12 = smov 16  }
  0x74   : > { %5746 = dma.hbm_to_vmem [thread:$0]  (!%p6377_p11), %s6375_s10, 4096, %s6381_s17, %s6383_s18, %s6161_s27, %s6161_s27, %s6162_s12  }
  0x75   : > { %p7310_p9 = scmp.ne.s32.totalorder %s7304_s13, 0 }
  0x76   : > { %s6414_s25 = sand.u32 (!%p7310_p9), 1, %s6145_s28   ;;  %p7311_p0 = scmp.ne.s32.totalorder (!%p7310_p9), %s7301_s11, 0 }
  0x77   : > { %317 = sbr.rel (%p7310_p9) target bundleno = 875 (0x36b), region = 52  ;;  %s4915_s20 = sshll.u32 (!%p7310_p9), %s6414_s25, 8 }
  0x78   : > { %s320_s19 = scalar_lea.sflag (!%p7310_p9), [#allocation7], %s6414_s25  ;;  %s6418_s24 = scalar_lea.vmem (!%p7310_p9), [#allocation6], %s4915_s20 }
  0x7e   : > { %6124 = dma.done.wait (%p7311_p0), %s320_s19, 4096  }
  0x7f   : > { %6126 = vsyncadd (%p7311_p0), %s320_s19, 4294963200  ;;  %p7312_p11 = scmp.eq.s32.totalorder %s6233_s9, 0 }
  0x81   : > { %6128 = dma.done.wait (%p7312_p11), [#allocation10], 18432   ;;  %p7313_p8 = pmov %p7312_p11 }
  0x83   : > { %6130 = vsyncadd (%p7313_p8), [#allocation10], 4294948864  ;;  %p7314_p13 = pmov %p7313_p8 }
  0x84   : > { %p7315_p6 = pmov %p7313_p8 }
  0x85   : > { %6132 = dma.done.wait (%p7314_p13), [#allocation13], 1024  }
  0x86   : > { %6134 = vsyncadd (%p7315_p6), [#allocation13], 4294966272  ;;  %v6163_v0 = vmov 0   ;;  %vm715_vm0 = vcmask 1040384   ;;  %vm716_vm1 = vsmask.f32 256  ;;  %v403_v48 = vlaneseq }
  0x87   : > { %714 = vst [vmem:[#allocation2] sm:$0xff] %v6163_v0  ;;  %726 = vst [vmem:[#allocation2 + $0x110] sm:$0xff] %v6163_v0  ;;  %v787_v2 = vld [vmem:[#allocation2 + $0x1c] sm:$0x1]  ;;  %v790_v3 = vld [vmem:[#allocation2 + $0x2c] sm:$0x1] }
  0x88   : > { %2806 = vst [vmem:[#allocation4 + $0x4] sm:$0x1] %v6163_v0  ;;  %2805 = vst [vmem:[#allocation4] sm:$0xf] %v6163_v0  ;;  %v793_v4 = vld [vmem:[#allocation2 + $0x3c] sm:$0x1] }
  0x89   : > { %2808 = vst [vmem:[#allocation4 + $0x48] sm:$0xf] %v6163_v0  ;;  %2809 = vst [vmem:[#allocation4 + $0x4c] sm:$0x1] %v6163_v0  ;;  %v796_v8 = vld [vmem:[#allocation2 + $0x4c] sm:$0x1] }
  0x8a   : > { %vm6433_vm2 = vmand %vm715_vm0, %vm716_vm1  ;;  %v5801_v9 = vld [vmem:[#allocation12] sm:$0xff]   ;;  %v799_v11 = vld [vmem:[#allocation2 + $0x5c] sm:$0x1]  ;;  %v404_v52 = vshrl.u32 %v403_v48, 7  ;;  %vm951_vm3 = vcmask 1043456   ;;  %vm718_vm7 = vcmask 1044484  }
  0x8b   : > { %v788_v5 = vsel %vm6433_vm2, 0, %v787_v2  ;;  %v791_v6 = vsel %vm6433_vm2, 0, %v790_v3  ;;  %v794_v7 = vsel %vm6433_vm2, 0, %v793_v4  ;;  %v797_v10 = vsel %vm6433_vm2, 0, %v796_v8  ;;  %v802_v12 = vld [vmem:[#allocation2 + $0x6c] sm:$0x1]  ;;  %5589 = vmatprep.subr.bf16.mxu0 %v5801_v9 }
  0x8c   : > { %789 = vst [vmem:[#allocation2 + $0x1c] sm:$0x1] %v788_v5  ;;  %792 = vst [vmem:[#allocation2 + $0x2c] sm:$0x1] %v791_v6  ;;  %v5802_v13 = vld [vmem:[#allocation9 + $0x40] sm:$0xff]   ;;  %v800_v14 = vsel %vm6433_vm2, 0, %v799_v11  ;;  %5590 = vmatpush3.bf16.msra.mxu0 %v5801_v9 }
  0x8d   : > { %795 = vst [vmem:[#allocation2 + $0x3c] sm:$0x1] %v794_v7  ;;  %798 = vst [vmem:[#allocation2 + $0x4c] sm:$0x1] %v797_v10  ;;  %v803_v15 = vsel %vm6433_vm2, 0, %v802_v12  ;;  %5245 = vmatprep.subr.bf16.mxu1 %v5802_v13  ;;  %v5803_v36 = vld [vmem:[#allocation9] sm:$0xff]  }
  0x8e   : > { %v805_v16 = vld [vmem:[#allocation2 + $0x7c] sm:$0x1]  ;;  %v808_v17 = vld [vmem:[#allocation2 + $0x8c] sm:$0x1]  ;;  %801 = vst [vmem:[#allocation2 + $0x5c] sm:$0x1] %v800_v14  ;;  %5246 = vmatpush3.bf16.msra.mxu1 %v5803_v36 }
  0x8f   : > { %804 = vst [vmem:[#allocation2 + $0x6c] sm:$0x1] %v803_v15  ;;  %v806_v18 = vsel %vm6433_vm2, 0, %v805_v16  ;;  %v809_v19 = vsel %vm6433_vm2, 0, %v808_v17  ;;  %v811_v20 = vld [vmem:[#allocation2 + $0x9c] sm:$0x1] }
  0x90   : > { %v814_v21 = vld [vmem:[#allocation2 + $0xac] sm:$0x1]  ;;  %807 = vst [vmem:[#allocation2 + $0x7c] sm:$0x1] %v806_v18  ;;  %810 = vst [vmem:[#allocation2 + $0x8c] sm:$0x1] %v809_v19 }
  0x91   : > { %v812_v22 = vsel %vm6433_vm2, 0, %v811_v20  ;;  %v815_v23 = vsel %vm6433_vm2, 0, %v814_v21  ;;  %v817_v24 = vld [vmem:[#allocation2 + $0xbc] sm:$0x1]  ;;  %v820_v25 = vld [vmem:[#allocation2 + $0xcc] sm:$0x1] }
  0x92   : > { %813 = vst [vmem:[#allocation2 + $0x9c] sm:$0x1] %v812_v22  ;;  %816 = vst [vmem:[#allocation2 + $0xac] sm:$0x1] %v815_v23  ;;  %v818_v26 = vsel %vm6433_vm2, 0, %v817_v24  ;;  %v821_v27 = vsel %vm6433_vm2, 0, %v820_v25 }
  0x93   : > { %v823_v28 = vld [vmem:[#allocation2 + $0xdc] sm:$0x1]  ;;  %v826_v29 = vld [vmem:[#allocation2 + $0xec] sm:$0x1]  ;;  %819 = vst [vmem:[#allocation2 + $0xbc] sm:$0x1] %v818_v26 }
  0x94   : > { %822 = vst [vmem:[#allocation2 + $0xcc] sm:$0x1] %v821_v27  ;;  %v824_v30 = vsel %vm6433_vm2, 0, %v823_v28  ;;  %v827_v31 = vsel %vm6433_vm2, 0, %v826_v29  ;;  %v829_v32 = vld [vmem:[#allocation2 + $0xfc] sm:$0x1] }
  0x95   : > { %v832_v33 = vld [vmem:[#allocation2 + $0x10c] sm:$0x1]  ;;  %825 = vst [vmem:[#allocation2 + $0xdc] sm:$0x1] %v824_v30  ;;  %828 = vst [vmem:[#allocation2 + $0xec] sm:$0x1] %v827_v31 }
  0x96   : > { %v830_v34 = vsel %vm6433_vm2, 0, %v829_v32  ;;  %v833_v35 = vsel %vm6433_vm2, 0, %v832_v33  ;;  %v5804_v37 = vld [vmem:[#allocation12 + $0x8] sm:$0xff]   ;;  %v5807_v40 = vld [vmem:[#allocation12 + $0x10] sm:$0xff]   ;;  %v5810_v43 = vld [vmem:[#allocation12 + $0x18] sm:$0xff]   ;;  %v405_v56 = vsub.s32 0, %v404_v52 }
  0x97   : > { %831 = vst [vmem:[#allocation2 + $0xfc] sm:$0x1] %v830_v34  ;;  %834 = vst [vmem:[#allocation2 + $0x10c] sm:$0x1] %v833_v35  ;;  %v5805_v38 = vld [vmem:[#allocation9 + $0x48] sm:$0xff]   ;;  %5591 = vmatprep.subr.bf16.mxu0 %v5804_v37  ;;  %v5808_v41 = vld [vmem:[#allocation9 + $0x50] sm:$0xff]  }
  0x98   : > { %v5806_v39 = vld [vmem:[#allocation9 + $0x8] sm:$0xff]   ;;  %5592 = vmatpush3.bf16.msra.mxu0 %v5804_v37  ;;  %5247 = vmatprep.subr.bf16.mxu1 %v5805_v38  ;;  %v5809_v42 = vld [vmem:[#allocation9 + $0x10] sm:$0xff]   ;;  %v5811_v44 = vld [vmem:[#allocation9 + $0x58] sm:$0xff]   ;;  %v409_v58 = vsub.s32 1, %v404_v52  ;;  %vm952_vm4 = vsmask.f32 7938 }
  0x99   : > { %5248 = vmatpush3.bf16.msra.mxu1 %v5806_v39  ;;  %5593 = vmatprep.subr.bf16.mxu0 %v5807_v40  ;;  %v5812_v45 = vld [vmem:[#allocation9 + $0x18] sm:$0xff]   ;;  %v5813_v46 = vld [vmem:[#allocation12 + $0x20] sm:$0xff]   ;;  %v5816_v49 = vld [vmem:[#allocation12 + $0x28] sm:$0xff]   ;;  %vm719_vm6 = vsmask.f32 4352  ;;  %s4919_s15 = sshll.u32 %s6414_s25, 6 }
  0x9a   : > { %5249 = vmatprep.subr.bf16.mxu1 %v5808_v41  ;;  %v5814_v47 = vld [vmem:[#allocation9 + $0x60] sm:$0xff]   ;;  %v5817_v51 = vld [vmem:[#allocation9 + $0x68] sm:$0xff]   ;;  %v5819_v53 = vld [vmem:[#allocation12 + $0x30] sm:$0xff]   ;;  %vm1251_vm10 = vsmask.f32 3328  ;;  %s6879_s18 = scalar_lea.vmem [#allocation14], %s4919_s15 }
  0x9b   : > { %v5815_v50 = vld [vmem:[#allocation9 + $0x20] sm:$0xff]   ;;  %v5818_v54 = vld [vmem:[#allocation9 + $0x28] sm:$0xff]   ;;  %v5820_v55 = vld [vmem:[#allocation9 + $0x70] sm:$0xff]   ;;  %vm1252_vm11 = vsmask.f32 7440  ;;  %vm3236_vm14 = vcmask 1042432  }
  0x9c   : > { %5594 = vmatpush3.bf16.msra.mxu0 %v5807_v40  ;;  %v5821_v57 = vld [vmem:[#allocation9 + $0x30] sm:$0xff]   ;;  %v5822_v59 = vld [vmem:[#allocation12 + $0x38] sm:$0xff]   ;;  %v369_v61 = vld [vmem:[%s6418_s24] sm:$0xff]  ;;  %vm3237_vm15 = vcmask 1046532   ;;  %s5232_s12 = sshll.u32 %s6233_s9, 10  ;;  %s4803_s20 = sshll.u32 %s6879_s18, 4  ;;  %s7236_s20 = int_to_ptr.vmem [resolvable:$true] %s4803_s20 }
  0x9d   : > { %5595 = vmatprep.subr.bf16.mxu0 %v5810_v43  ;;  %5250 = vmatpush3.bf16.msra.mxu1 %v5809_v42  ;;  %v5823_v60 = vld [vmem:[#allocation9 + $0x78] sm:$0xff]   ;;  %v373_v62 = vld [vmem:[%s6418_s24 + $0x20] sm:$0xff]  ;;  %v401_v63 = vld [vmem:[%s7287_s1] sm:$0x3]  ;;  %s4790_s11 = scalar_lea.sflag [#allocation8], %s6414_s25  ;;  %s6079_s13 = scalar_lea.vmem %s7236_s20, 1024 }
  0x9e   : > { %5251 = vmatprep.subr.bf16.mxu1 %v5811_v44  ;;  %v6474_v0 = vrot.slane %v401_v63, %v405_v56  ;;  %v445_v2 = vld [vmem:[%s7288_s2] sm:$0x3]  ;;  %v6479_v3 = vrot.slane %v401_v63, %v409_v58  ;;  %v377_v5 = vld [vmem:[%s6418_s24 + $0x40] sm:$0xff]  ;;  %v5824_v14 = vld [vmem:[#allocation9 + $0x38] sm:$0xff]   ;;  %p6080_p10 = scmp.ne.s32.totalorder %s7236_s20, %s6079_s13  ;;  %s6164_s10 = smov [#allocation14]  }
  0x9f   : > { %v6481_v4 = vrot.slane %v445_v2, %v405_v56  ;;  %v381_v6 = vld [vmem:[%s6418_s24 + $0x60] sm:$0xff]  ;;  %v371_v7 = vld [vmem:[%s6418_s24 + $0x10] sm:$0xff]  ;;  %v6490_v15 = vrot.slane %v445_v2, %v409_v58  ;;  %v372_v18 = vld [vmem:[%s6418_s24 + $0x18] sm:$0xff]  ;;  %s6083_s17 = sshll.u32 %s6164_s10, 4  ;;  %s6084_s17 = int_to_ptr.vmem [resolvable:$false] %s6083_s17 }
  0xa0   : > { %5596 = vmatpush3.bf16.msra.mxu0 %v5810_v43  ;;  %v413_v8 = vmul.f32 %v6474_v0, %v369_v61  ;;  %v417_v9 = vmul.f32 %v6474_v0, %v373_v62  ;;  %v5825_v10 = vld [vmem:[#allocation9 + $0xc0] sm:$0xff]   ;;  %v421_v11 = vmul.f32 %v6474_v0, %v377_v5  ;;  %v425_v12 = vmul.f32 %v6474_v0, %v381_v6  ;;  %v730_v23 = vld [vmem:[#allocation2] sm:$0x1]  ;;  %vm6511_vm5 = vmand %vm951_vm3, %vm952_vm4  ;;  %p6081_p3 = pnand %p6080_p10, %p6366_p5  ;;  %s6085_s15 = scalar_lea.vmem %s6084_s17, 2048 }
  0xa1   : > { %5597 = vmatprep.subr.bf16.mxu0 %v5813_v46  ;;  %5252 = vmatpush3.bf16.msra.mxu1 %v5812_v45  ;;  %v781_v13 = vld [vmem:[#allocation2 + $0x110] sm:$0x1]  ;;  %v415_v16 = vmul.f32 %v6474_v0, %v371_v7  ;;  %v736_v24 = vld [vmem:[#allocation2 + $0x20] sm:$0x1]  ;;  %v416_v26 = vmul.f32 %v6479_v3, %v372_v18  ;;  %v731_v27 = vsel %vm6433_vm2, 0, %v730_v23  ;;  %v5829_v45 = vld [vmem:[#allocation9 + $0xc8] sm:$0xff]   ;;  %p6086_p12 = scmp.lt.s32.totalorder %s7236_s20, %s6084_s17  ;;  %p6087_p1 = scmp.lt.s32.totalorder %s6085_s15, %s6079_s13 }
  0xa2   : > { %5253 = vmatprep.subr.bf16.mxu1 %v5814_v47  ;;  %v782_v17 = vsel %vm6433_vm2, 0, %v781_v13  ;;  %v457_v19 = vadd.f32 %v6481_v4, %v413_v8  ;;  %v461_v20 = vadd.f32 %v6481_v4, %v417_v9  ;;  %v465_v21 = vadd.f32 %v6481_v4, %v421_v11  ;;  %v5827_v29 = vld [vmem:[#allocation9 + $0x140] sm:$0xff]   ;;  %732 = vst [vmem:[#allocation2] sm:$0x1] %v731_v27  ;;  %v5830_v47 = vld [vmem:[#allocation9 + $0x88] sm:$0xff]   ;;  %v375_v48 = vld [vmem:[%s6418_s24 + $0x30] sm:$0xff]  ;;  %p6082_p7 = pneg %p6081_p3 }
  0xa3   : > { %v469_v22 = vadd.f32 %v6481_v4, %v425_v12  ;;  %783 = vst [vmem:[#allocation2 + $0x110] sm:$0x1] %v782_v17  ;;  %v459_v25 = vadd.f32 %v6481_v4, %v415_v16  ;;  %v737_v28 = vsel %vm6433_vm2, 0, %v736_v24  ;;  %v5826_v35 = vld [vmem:[#allocation9 + $0x80] sm:$0xff]   ;;  %v460_v36 = vadd.f32 %v6490_v15, %v416_v26  ;;  %v1199_v56 = vld [vmem:[#allocation2 + $0x4] sm:$0xf]  ;;  %vm6578_vm8 = vmand %vm718_vm7, %vm719_vm6  ;;  %p6088_p2 = por %p6087_p1, %p6086_p12 }
  0xa4   : > { %5598 = vmatpush3.bf16.msra.mxu0 %v5813_v46  ;;  %v489_v30 = vmax.f32 %v457_v19, 0.0  ;;  %v493_v31 = vmax.f32 %v461_v20, 0.0  ;;  %v497_v32 = vmax.f32 %v465_v21, 0.0  ;;  %738 = vst [vmem:[#allocation2 + $0x20] sm:$0x1] %v737_v28  ;;  %v376_v61 = vld [vmem:[%s6418_s24 + $0x38] sm:$0xff]  ;;  %vm721_vm9 = vmor %vm6578_vm8, %vm6433_vm2 }
  0xa5   : > { %5599 = vmatprep.subr.bf16.mxu0 %v5816_v49  ;;  %5254 = vmatpush3.bf16.msra.mxu1 %v5815_v50  ;;  %v501_v33 = vmax.f32 %v469_v22, 0.0  ;;  %v491_v34 = vmax.f32 %v459_v25, 0.0  ;;  %v492_v44 = vmax.f32 %v460_v36, 0.0  ;;  %v380_v62 = vld [vmem:[%s6418_s24 + $0x58] sm:$0xff]  ;;  %v742_v63 = vld [vmem:[#allocation2 + $0x40] sm:$0x1]  ;;  %v420_v5 = vmul.f32 %v6479_v3, %v376_v61  ;;  %vm6657_vm12 = vmor %vm1251_vm10, %vm1252_vm11  ;;  %p6089_p4 = pnand %p6088_p2, %p6082_p7 }
  0xa6   : > { %5255 = vmatprep.subr.bf16.mxu1 %v5817_v51  ;;  %v521_v37 = vpack.c.bf16 %v489_v30, %v489_v30  ;;  %v525_v38 = vpack.c.bf16 %v493_v31, %v493_v31  ;;  %v5204_v39 = vpack.c.bf16 %v493_v31, %v489_v30  ;;  %v529_v40 = vpack.c.bf16 %v497_v32, %v497_v32  ;;  %v5834_v2 = vld [vmem:[#allocation9 + $0x90] sm:$0xff]   ;;  %v5837_v17 = vld [vmem:[#allocation9 + $0xd8] sm:$0xff]   ;;  %vm6862_vm13 = vmand %vm715_vm0, %vm952_vm4 }
  0xa7   : > { %v533_v41 = vpack.c.bf16 %v501_v33, %v501_v33  ;;  %v5205_v42 = vpack.c.bf16 %v501_v33, %v497_v32  ;;  %v523_v43 = vpack.c.bf16 %v491_v34, %v491_v34  ;;  %v5216_v46 = vpack.c.bf16 %v492_v44, %v492_v44  ;;  %v748_v8 = vld [vmem:[#allocation2 + $0x60] sm:$0x1]  ;;  %v5838_v24 = vld [vmem:[#allocation9 + $0x98] sm:$0xff]   ;;  %v5828_v32 = vld [vmem:[#allocation9 + $0x100] sm:$0xff]  }
  0xa8   : > { %5600 = vmatpush3.bf16.msra.mxu0 %v5816_v49  ;;  %5605 = vmatprep.mubr.bf16.mxu0 %v5204_v39  ;;  %839 = vst [vmem:[#allocation2 + $0x14] sm:$0xf] %v521_v37  ;;  %840 = vst [vmem:[#allocation2 + $0x34] sm:$0xf] %v525_v38  ;;  %v379_v49 = vld [vmem:[%s6418_s24 + $0x50] sm:$0xff]  ;;  %v424_v6 = vmul.f32 %v6479_v3, %v380_v62  ;;  %v743_v7 = vsel %vm6433_vm2, 0, %v742_v63  ;;  %v464_v13 = vadd.f32 %v6490_v15, %v420_v5 }
  0xa9   : > { %5601 = vmatprep.subr.bf16.mxu0 %v5819_v53  ;;  %5256 = vmatpush3.bf16.msra.mxu1 %v5818_v54  ;;  %841 = vst [vmem:[#allocation2 + $0x54] sm:$0xf] %v529_v40  ;;  %842 = vst [vmem:[#allocation2 + $0x74] sm:$0xf] %v533_v41  ;;  %v1036_v51 = vshrl.u32 %v5216_v46, 16  ;;  %v1039_v52 = vshll.u32 %v5216_v46, 16  ;;  %v419_v54 = vmul.f32 %v6474_v0, %v375_v48 }
  0xaa   : > { %5257 = vmatprep.subr.bf16.mxu1 %v5820_v55  ;;  %1003 = vst [vmem:[#allocation2 + $0x24] sm:$0xf] %v523_v43  ;;  %v423_v55 = vmul.f32 %v6474_v0, %v379_v49  ;;  %744 = vst [vmem:[#allocation2 + $0x40] sm:$0x1] %v743_v7  ;;  %v749_v16 = vsel %vm6433_vm2, 0, %v748_v8  ;;  %v496_v22 = vmax.f32 %v464_v13, 0.0 }
  0xab   : > { %v6517_v58 = vrot.slane %v1036_v51, 7  ;;  %750 = vst [vmem:[#allocation2 + $0x60] sm:$0x1] %v749_v16  ;;  %v1163_v27 = vld [vmem:[#allocation2] sm:$0xf]  ;;  %v5841_v34 = vld [vmem:[#allocation9 + $0xe0] sm:$0xff]   ;;  %vm6996_vm0 = vmor %vm3236_vm14, %vm3237_vm15 }
  0xac   : > { %5602 = vmatpush3.bf16.msra.mxu0 %v5819_v53  ;;  %v5833_v53 = vld [vmem:[#allocation9 + $0xd0] sm:$0xff]   ;;  %v5217_v25 = vpack.c.bf16 %v496_v22, %v496_v22  ;;  %v5831_v37 = vld [vmem:[#allocation9 + $0x148] sm:$0xff]   ;;  %v5842_v44 = vld [vmem:[#allocation9 + $0xa0] sm:$0xff]  }
  0xad   : > { %5603 = vmatprep.subr.bf16.mxu0 %v5822_v59  ;;  %5258 = vmatpush3.bf16.msra.mxu1 %v5821_v57  ;;  %v1115_v57 = vld [vmem:[#allocation2 + $0x20] sm:$0xf]  ;;  %v1041_v9 = vor.u32 %v1039_v52, %v6517_v58  ;;  %v384_v52 = vld [vmem:[%s6418_s24 + $0x78] sm:$0xff]  ;;  %v5845_v16 = vld [vmem:[#allocation9 + $0xe8] sm:$0xff]  }
  0xae   : > { %5259 = vmatprep.subr.bf16.mxu1 %v5823_v60  ;;  %v467_v60 = vadd.f32 %v6481_v4, %v423_v55  ;;  %v1044_v28 = vshrl.u32 %v5217_v25, 16  ;;  %v387_v36 = vld [vmem:[%s6418_s24 + $0x90] sm:$0xff]  ;;  %v388_v55 = vld [vmem:[%s6418_s24 + $0x98] sm:$0xff]  ;;  %v5846_v22 = vld [vmem:[#allocation9 + $0xa8] sm:$0xff]  }
  0xaf   : > { %v1116_v19 = vsel %vm6511_vm5, %v1041_v9, %v1115_v57  ;;  %v754_v57 = vld [vmem:[#allocation2 + $0x80] sm:$0x1] }
  0xb0   : > { %5604 = vmatpush3.bf16.msra.mxu0 %v5822_v59  ;;  %v463_v59 = vadd.f32 %v6481_v4, %v419_v54  ;;  %v499_v11 = vmax.f32 %v467_v60, 0.0  ;;  %1117 = vst [vmem:[#allocation2 + $0x20] sm:$0xf] %v1116_v19  ;;  %v6536_v38 = vrot.slane %v1044_v28, 7  ;;  %v5832_v60 = vld [vmem:[#allocation9 + $0x108] sm:$0xff]   ;;  %v5835_v5 = vld [vmem:[#allocation9 + $0x150] sm:$0xff]  }
  0xb1   : > { %5285 = vmatprep.subr.bf16.mxu0 %v5825_v10  ;;  %5260 = vmatpush3.bf16.msra.mxu1 %v5824_v14  ;;  %v1200_v12 = vld [vmem:[#allocation2 + $0x24] sm:$0xf]  ;;  %v468_v14 = vadd.f32 %v6490_v15, %v424_v6  ;;  %v1121_v33 = vld [vmem:[#allocation2 + $0x40] sm:$0xf]  ;;  %v755_v8 = vsel %vm6433_vm2, 0, %v754_v57 }
  0xb2   : > { %5325 = vmatprep.subr.bf16.mxu1 %v5827_v29  ;;  %v495_v10 = vmax.f32 %v463_v59, 0.0  ;;  %v4952_v18 = vcombine.low %v1199_v56, %v1200_v12  ;;  %v531_v21 = vpack.c.bf16 %v499_v11, %v499_v11  ;;  %v1047_v29 = vshll.u32 %v5217_v25, 16  ;;  %v1127_v40 = vld [vmem:[#allocation2 + $0x60] sm:$0xf]  ;;  %756 = vst [vmem:[#allocation2 + $0x80] sm:$0x1] %v755_v8 }
  0xb3   : > { %5606 = vmatmul.mubr.bf16.vlgmr.msra.gmra.mrb[0].mxu0 %v5205_v42  ;;  %v500_v23 = vmax.f32 %v468_v14, 0.0  ;;  %v431_v42 = vmul.f32 %v6474_v0, %v387_v36  ;;  %v428_v56 = vmul.f32 %v6479_v3, %v384_v52  ;;  %v760_v59 = vld [vmem:[#allocation2 + $0xa0] sm:$0x1]  ;;  %v397_v25 = vld [vmem:[%s6418_s24 + $0xe0] sm:$0xff] }
  0xb4   : > { %5286 = vmatpush3.bf16.msra.mxu0 %v5826_v35  ;;  %v527_v20 = vpack.c.bf16 %v495_v10, %v495_v10  ;;  %2470 = vmatprep.mubr.bf16.mxu1 %v4952_v18  ;;  %1005 = vst [vmem:[#allocation2 + $0x64] sm:$0xf] %v531_v21  ;;  %v383_v35 = vld [vmem:[%s6418_s24 + $0x70] sm:$0xff]  ;;  %v1049_v48 = vor.u32 %v1047_v29, %v6536_v38  ;;  %v761_v9 = vsel %vm6433_vm2, 0, %v760_v59  ;;  %v389_v18 = vld [vmem:[%s6418_s24 + $0xa0] sm:$0xff] }
  0xb5   : > { %5287 = vmatprep.subr.bf16.mxu0 %v5829_v45  ;;  %v5218_v26 = vpack.c.bf16 %v500_v23, %v500_v23  ;;  %v427_v41 = vmul.f32 %v6474_v0, %v383_v35  ;;  %v475_v54 = vadd.f32 %v6481_v4, %v431_v42  ;;  %v472_v7 = vadd.f32 %v6490_v15, %v428_v56  ;;  %v5836_v12 = vld [vmem:[#allocation9 + $0x110] sm:$0xff]   ;;  %v5843_v42 = vld [vmem:[#allocation9 + $0x160] sm:$0xff]  }
  0xb6   : > { %1004 = vst [vmem:[#allocation2 + $0x44] sm:$0xf] %v527_v20  ;;  %v1122_v61 = vsel %vm6511_vm5, %v1049_v48, %v1121_v33  ;;  %762 = vst [vmem:[#allocation2 + $0xa0] sm:$0x1] %v761_v9  ;;  %v433_v21 = vmul.f32 %v6474_v0, %v389_v18  ;;  %v5849_v35 = vld [vmem:[#allocation9 + $0xf0] sm:$0xff]   ;;  %v5844_v56 = vld [vmem:[#allocation9 + $0x120] sm:$0xff]  }
  0xb7   : > { %v1052_v30 = vshrl.u32 %v5218_v26, 16  ;;  %v1055_v31 = vshll.u32 %v5218_v26, 16  ;;  %v1164_v43 = vld [vmem:[#allocation2 + $0x20] sm:$0xf]  ;;  %v471_v51 = vadd.f32 %v6481_v4, %v427_v41  ;;  %1123 = vst [vmem:[#allocation2 + $0x40] sm:$0xf] %v1122_v61 }
  0xb8   : > { %5288 = vmatpush3.bf16.msra.mxu0 %v5830_v47  ;;  %v4948_v45 = vcombine.low %v1163_v27, %v1164_v43  ;;  %v507_v6 = vmax.f32 %v475_v54, 0.0  ;;  %v504_v14 = vmax.f32 %v472_v7, 0.0  ;;  %v5839_v26 = vld [vmem:[#allocation9 + $0x158] sm:$0xff]   ;;  %v477_v29 = vadd.f32 %v6481_v4, %v433_v21  ;;  %v395_v61 = vld [vmem:[%s6418_s24 + $0xd0] sm:$0xff]  ;;  %v5847_v7 = vld [vmem:[#allocation9 + $0x168] sm:$0xff]  }
  0xb9   : > { %5289 = vmatprep.subr.bf16.mxu0 %v5833_v53  ;;  %v6538_v39 = vrot.slane %v1052_v30, 7  ;;  %v503_v63 = vmax.f32 %v471_v51, 0.0  ;;  %v5840_v30 = vld [vmem:[#allocation9 + $0x118] sm:$0xff]   ;;  %v5850_v8 = vld [vmem:[#allocation9 + $0xb0] sm:$0xff]   ;;  %v5848_v21 = vld [vmem:[#allocation9 + $0x128] sm:$0xff]  }
  0xba   : > { %2471 = vmatmul.mubr.bf16.vlgmr.msra.gmra.mrb[0].mxu1 %v4948_v45  ;;  %v539_v13 = vpack.c.bf16 %v507_v6, %v507_v6  ;;  %v5219_v23 = vpack.c.bf16 %v504_v14, %v504_v14  ;;  %v1133_v45 = vld [vmem:[#allocation2 + $0x80] sm:$0xf]  ;;  %v509_v51 = vmax.f32 %v477_v29, 0.0  ;;  %v396_v14 = vld [vmem:[%s6418_s24 + $0xd8] sm:$0xff] }
  0xbb   : > { %v1202_v47 = vld [vmem:[#allocation2 + $0x64] sm:$0xf]  ;;  %v1057_v49 = vor.u32 %v1055_v31, %v6538_v39  ;;  %5326 = vmatpush3.bf16.msra.mxu1 %v5828_v32  ;;  %v535_v10 = vpack.c.bf16 %v503_v63, %v503_v63 }
  0xbc   : > { %5290 = vmatpush3.bf16.msra.mxu0 %v5834_v2  ;;  %v432_v2 = vmul.f32 %v6479_v3, %v388_v55  ;;  %5327 = vmatprep.subr.bf16.mxu1 %v5831_v37  ;;  %1007 = vst [vmem:[#allocation2 + $0xa4] sm:$0xf] %v539_v13  ;;  %v1060_v31 = vshrl.u32 %v5219_v23, 16  ;;  %v1063_v32 = vshll.u32 %v5219_v23, 16  ;;  %v392_v13 = vld [vmem:[%s6418_s24 + $0xb8] sm:$0xff] }
  0xbd   : > { %5291 = vmatprep.subr.bf16.mxu0 %v5837_v17  ;;  %v1201_v46 = vld [vmem:[#allocation2 + $0x44] sm:$0xf]  ;;  %v1128_v62 = vsel %vm6511_vm5, %v1057_v49, %v1127_v40  ;;  %v385_v17 = vld [vmem:[%s6418_s24 + $0x80] sm:$0xff]  ;;  %1006 = vst [vmem:[#allocation2 + $0x84] sm:$0xf] %v535_v10 }
  0xbe   : > { %v4953_v53 = vcombine.low %v1201_v46, %v1202_v47  ;;  %1129 = vst [vmem:[#allocation2 + $0x60] sm:$0xf] %v1128_v62  ;;  %v476_v11 = vadd.f32 %v6490_v15, %v432_v2  ;;  %v429_v20 = vmul.f32 %v6474_v0, %v385_v17  ;;  %v1165_v36 = vld [vmem:[#allocation2 + $0x40] sm:$0xf]  ;;  %v541_v2 = vpack.c.bf16 %v509_v51, %v509_v51 }
  0xbf   : > { %5328 = vmatpush3.bf16.msra.mxu1 %v5832_v60  ;;  %v1139_v46 = vld [vmem:[#allocation2 + $0xa0] sm:$0xf] }
  0xc0   : > { %5292 = vmatpush3.bf16.msra.mxu0 %v5838_v24  ;;  %2478 = vmatprep.mubr.bf16.mxu1 %v4953_v53  ;;  %v508_v19 = vmax.f32 %v476_v11, 0.0  ;;  %v393_v24 = vld [vmem:[%s6418_s24 + $0xc0] sm:$0xff]  ;;  %v473_v28 = vadd.f32 %v6481_v4, %v429_v20  ;;  %v391_v60 = vld [vmem:[%s6418_s24 + $0xb0] sm:$0xff]  ;;  %844 = vst [vmem:[#allocation2 + $0xb4] sm:$0xf] %v541_v2 }
  0xc1   : > { %5293 = vmatprep.subr.bf16.mxu0 %v5841_v34  ;;  %5329 = vmatprep.subr.bf16.mxu1 %v5835_v5  ;;  %v437_v33 = vmul.f32 %v6474_v0, %v393_v24  ;;  %v441_v34 = vmul.f32 %v6474_v0, %v397_v25  ;;  %v772_v20 = vld [vmem:[#allocation2 + $0xe0] sm:$0x1]  ;;  %v436_v24 = vmul.f32 %v6479_v3, %v392_v13 }
  0xc2   : > { %v5220_v27 = vpack.c.bf16 %v508_v19, %v508_v19  ;;  %v505_v47 = vmax.f32 %v473_v28, 0.0  ;;  %v766_v19 = vld [vmem:[#allocation2 + $0xc0] sm:$0x1] }
  0xc3   : > { %5330 = vmatpush3.bf16.msra.mxu1 %v5836_v12  ;;  %v481_v48 = vadd.f32 %v6481_v4, %v437_v33  ;;  %v485_v52 = vadd.f32 %v6481_v4, %v441_v34  ;;  %v1204_v62 = vld [vmem:[#allocation2 + $0xa4] sm:$0xf]  ;;  %v435_v12 = vmul.f32 %v6474_v0, %v391_v60  ;;  %v767_v25 = vsel %vm6433_vm2, 0, %v766_v19  ;;  %v5854_v34 = vld [vmem:[#allocation9 + $0xb8] sm:$0xff]  }
  0xc4   : > { %5294 = vmatpush3.bf16.msra.mxu0 %v5842_v44  ;;  %v1068_v40 = vshrl.u32 %v5220_v27, 16  ;;  %v1071_v41 = vshll.u32 %v5220_v27, 16  ;;  %v6570_v44 = vrot.slane %v1060_v31, 7  ;;  %5331 = vmatprep.subr.bf16.mxu1 %v5839_v26  ;;  %v1203_v54 = vld [vmem:[#allocation2 + $0x84] sm:$0xf]  ;;  %v537_v57 = vpack.c.bf16 %v505_v47, %v505_v47 }
  0xc5   : > { %5295 = vmatprep.subr.bf16.mxu0 %v5845_v16  ;;  %v1166_v37 = vld [vmem:[#allocation2 + $0x60] sm:$0xf]  ;;  %v513_v59 = vmax.f32 %v481_v48, 0.0  ;;  %v5206_v5 = vpack.c.bf16 %v509_v51, %v505_v47  ;;  %v517_v6 = vmax.f32 %v485_v52, 0.0  ;;  %v4954_v9 = vcombine.low %v1203_v54, %v1204_v62  ;;  %768 = vst [vmem:[#allocation2 + $0xc0] sm:$0x1] %v767_v25 }
  0xc6   : > { %v4949_v43 = vcombine.low %v1165_v36, %v1166_v37  ;;  %v6573_v49 = vrot.slane %v1068_v40, 7  ;;  %v1065_v55 = vor.u32 %v1063_v32, %v6570_v44  ;;  %843 = vst [vmem:[#allocation2 + $0x94] sm:$0xf] %v537_v57  ;;  %v479_v23 = vadd.f32 %v6481_v4, %v435_v12  ;;  %v5851_v28 = vld [vmem:[#allocation9 + $0x170] sm:$0xff]   ;;  %v5853_v32 = vld [vmem:[#allocation9 + $0xf8] sm:$0xff]  }
  0xc7   : > { %5332 = vmatpush3.bf16.msra.mxu1 %v5840_v30  ;;  %v545_v11 = vpack.c.bf16 %v513_v59, %v513_v59  ;;  %5609 = vmatprep.mubr.bf16.mxu0 %v5206_v5  ;;  %v549_v17 = vpack.c.bf16 %v517_v6, %v517_v6  ;;  %v5207_v18 = vpack.c.bf16 %v517_v6, %v513_v59  ;;  %v773_v27 = vsel %vm6433_vm2, 0, %v772_v20  ;;  %v739_v47 = vld [vmem:[#allocation2 + $0x30] sm:$0x1]  ;;  %v5852_v52 = vld [vmem:[#allocation9 + $0x130] sm:$0xff]   ;;  %v5855_v5 = vld [vmem:[#allocation9 + $0x178] sm:$0xff]  }
  0xc8   : > { %5296 = vmatpush3.bf16.msra.mxu0 %v5846_v22  ;;  %2479 = vmatmul.mubr.bf16.gmra.mrb[4].mxu1 %v4949_v43  ;;  %v1073_v63 = vor.u32 %v1071_v41, %v6573_v49  ;;  %v1134_v10 = vsel %vm6511_vm5, %v1065_v55, %v1133_v45  ;;  %v439_v22 = vmul.f32 %v6474_v0, %v395_v61  ;;  %v511_v30 = vmax.f32 %v479_v23, 0.0  ;;  %v370_v41 = vld [vmem:[%s6418_s24 + $0x8] sm:$0xff]  ;;  %v5857_v61 = vld [vmem:[#allocation9 + $0x1c0] sm:$0xff]   ;;  %v5856_v12 = vld [vmem:[#allocation9 + $0x138] sm:$0xff]  }
  0xc9   : > { %5297 = vmatprep.subr.bf16.mxu0 %v5849_v35  ;;  %1135 = vst [vmem:[#allocation2 + $0x80] sm:$0xf] %v1134_v10  ;;  %5333 = vmatprep.subr.bf16.mxu1 %v5843_v42  ;;  %845 = vst [vmem:[#allocation2 + $0xd4] sm:$0xf] %v545_v11  ;;  %v440_v26 = vmul.f32 %v6479_v3, %v396_v14  ;;  %v480_v31 = vadd.f32 %v6490_v15, %v436_v24  ;;  %v1042_v35 = vrot.slane %v6517_v58, 4  ;;  %v374_v43 = vld [vmem:[%s6418_s24 + $0x28] sm:$0xff] }
  0xca   : > { %v1140_v16 = vsel %vm6511_vm5, %v1073_v63, %v1139_v46  ;;  %2486 = vmatprep.mubr.bf16.mxu1 %v4954_v9  ;;  %5610 = vmatmul.mubr.bf16.gmra.mrb[4].mxu0 %v5207_v18  ;;  %846 = vst [vmem:[#allocation2 + $0xf4] sm:$0xf] %v549_v17  ;;  %v483_v29 = vadd.f32 %v6481_v4, %v439_v22  ;;  %774 = vst [vmem:[#allocation2 + $0xe0] sm:$0x1] %v773_v27  ;;  %v733_v46 = vld [vmem:[#allocation2 + $0x10] sm:$0x1] }
  0xcb   : > { %1141 = vst [vmem:[#allocation2 + $0xa0] sm:$0xf] %v1140_v16  ;;  %5334 = vmatpush3.bf16.msra.mxu1 %v5844_v56  ;;  %v484_v33 = vadd.f32 %v6490_v15, %v440_v26  ;;  %v543_v37 = vpack.c.bf16 %v511_v30, %v511_v30  ;;  %v512_v40 = vmax.f32 %v480_v31, 0.0  ;;  %v414_v45 = vmul.f32 %v6479_v3, %v370_v41  ;;  %v727_v18 = vld [vmem:[#allocation2 + $0x118] sm:$0x11]  ;;  %v6639_v41 = vld [vmem:[#allocation9 + $0x200] sm:$0xff]  }
  0xcc   : > { %5298 = vmatpush3.bf16.msra.mxu0 %v5850_v8  ;;  %5335 = vmatprep.subr.bf16.mxu1 %v5847_v7  ;;  %v515_v36 = vmax.f32 %v483_v29, 0.0  ;;  %v418_v54 = vmul.f32 %v6479_v3, %v374_v43  ;;  %v734_v55 = vsel %vm6433_vm2, 0, %v733_v46  ;;  %v740_v60 = vsel %vm6433_vm2, 0, %v739_v47  ;;  %v722_v7 = vld [vmem:[#allocation2 + $0x8] sm:$0x11] }
  0xcd   : > { %5299 = vmatprep.subr.bf16.mxu0 %v5853_v32  ;;  %v516_v42 = vmax.f32 %v484_v33, 0.0  ;;  %1008 = vst [vmem:[#allocation2 + $0xc4] sm:$0xf] %v543_v37  ;;  %v5221_v51 = vpack.c.bf16 %v512_v40, %v512_v40  ;;  %v458_v59 = vadd.f32 %v6490_v15, %v414_v45  ;;  %735 = vst [vmem:[#allocation2 + $0x10] sm:$0x1] %v734_v55  ;;  %v723_v13 = vsel %vm721_vm9, 0, %v722_v7 }
  0xce   : > { %v547_v58 = vpack.c.bf16 %v515_v36, %v515_v36  ;;  %v462_v6 = vadd.f32 %v6490_v15, %v418_v54  ;;  %741 = vst [vmem:[#allocation2 + $0x30] sm:$0x1] %v740_v60  ;;  %v1145_v10 = vld [vmem:[#allocation2 + $0xc0] sm:$0xf]  ;;  %724 = vst [vmem:[#allocation2 + $0x8] sm:$0x11] %v723_v13 }
  0xcf   : > { %5336 = vmatpush3.bf16.msra.mxu1 %v5848_v21  ;;  %v5222_v57 = vpack.c.bf16 %v516_v42, %v516_v42  ;;  %v1076_v63 = vshrl.u32 %v5221_v51, 16  ;;  %v1079_v2 = vshll.u32 %v5221_v51, 16  ;;  %v490_v11 = vmax.f32 %v458_v59, 0.0  ;;  %v1118_v19 = vld [vmem:[#allocation2 + $0x28] sm:$0x1] }
  0xd0   : > { %5300 = vmatpush3.bf16.msra.mxu0 %v5854_v34  ;;  %v1167_v48 = vld [vmem:[#allocation2 + $0x80] sm:$0xf]  ;;  %5337 = vmatprep.subr.bf16.mxu1 %v5851_v28  ;;  %1009 = vst [vmem:[#allocation2 + $0xe4] sm:$0xf] %v547_v58  ;;  %v494_v17 = vmax.f32 %v462_v6, 0.0  ;;  %v728_v22 = vsel %vm721_vm9, 0, %v727_v18  ;;  %v1119_v23 = vsel %vm6433_vm2, %v1042_v35, %v1118_v19 }
  0xd1   : > { %v1084_v8 = vshrl.u32 %v5222_v57, 16  ;;  %v1087_v9 = vshll.u32 %v5222_v57, 16  ;;  %5365 = vmatprep.subr.bf16.mxu0 %v5857_v61  ;;  %v6624_v14 = vrot.slane %v1076_v63, 7  ;;  %v1151_v16 = vld [vmem:[#allocation2 + $0xe0] sm:$0xf]  ;;  %v5208_v21 = vpack.c.bf16 %v490_v11, %v490_v11 }
  0xd2   : > { %v1168_v56 = vld [vmem:[#allocation2 + $0xa0] sm:$0xf]  ;;  %v5209_v27 = vpack.c.bf16 %v494_v17, %v494_v17  ;;  %729 = vst [vmem:[#allocation2 + $0x118] sm:$0x11] %v728_v22  ;;  %1120 = vst [vmem:[#allocation2 + $0x28] sm:$0x1] %v1119_v23 }
  0xd3   : > { %v4950_v62 = vcombine.low %v1167_v48, %v1168_v56  ;;  %v6626_v20 = vrot.slane %v1084_v8, 7  ;;  %5338 = vmatpush3.bf16.msra.mxu1 %v5852_v52  ;;  %v1235_v24 = vld [vmem:[#allocation2] sm:$0xf]  ;;  %v1081_v26 = vor.u32 %v1079_v2, %v6624_v14  ;;  %v872_v31 = vshrl.u32 %v5208_v21, 16  ;;  %v957_v54 = vld [vmem:[#allocation2 + $0x18] sm:$0x1] }
  0xd4   : > { %v1237_v25 = vld [vmem:[#allocation2 + $0x20] sm:$0xf]  ;;  %5339 = vmatprep.subr.bf16.mxu1 %v5855_v5  ;;  %v1255_v28 = vshrl.u32 %v1235_v24, 16  ;;  %v1258_v29 = vshll.u32 %v1235_v24, 16  ;;  %v1205_v30 = vld [vmem:[#allocation2 + $0xc4] sm:$0xf] }
  0xd5   : > { %2487 = vmatmul.mubr.bf16.gmra.mrb[8].mxu1 %v4950_v62  ;;  %v1089_v53 = vor.u32 %v1087_v9, %v6626_v20  ;;  %v875_v32 = vshll.u32 %v5208_v21, 16  ;;  %v1269_v33 = vshrl.u32 %v1237_v25, 16  ;;  %v1146_v34 = vsel %vm6511_vm5, %v1081_v26, %v1145_v10  ;;  %v954_v37 = vld [vmem:[#allocation2 + $0x10] sm:$0xf]  ;;  %v784_v56 = vld [vmem:[#allocation2 + $0xc] sm:$0x1] }
  0xd6   : > { %v880_v35 = vshrl.u32 %v5209_v27, 16  ;;  %v883_v36 = vshll.u32 %v5209_v27, 16  ;;  %v1257_v40 = vrot.slane %v1255_v28, 4  ;;  %1147 = vst [vmem:[#allocation2 + $0xc0] sm:$0xf] %v1146_v34  ;;  %v874_v45 = vrot.slane %v872_v31, 7 }
  0xd7   : > { %v1206_v42 = vld [vmem:[#allocation2 + $0xe4] sm:$0xf]  ;;  %v1152_v43 = vsel %vm6511_vm5, %v1089_v53, %v1151_v16  ;;  %v960_v46 = vld [vmem:[#allocation2 + $0x30] sm:$0xf]  ;;  %5340 = vmatpush3.bf16.msra.mxu1 %v5856_v12  ;;  %v1260_v47 = vrot.slane %v1258_v29, 5  ;;  %v1271_v51 = vrot.slane %v1269_v33, 4 }
  0xd8   : > { %v4955_v48 = vcombine.low %v1205_v30, %v1206_v42  ;;  %1153 = vst [vmem:[#allocation2 + $0xe0] sm:$0xf] %v1152_v43  ;;  %v882_v58 = vrot.slane %v880_v35, 7  ;;  %v1272_v52 = vshll.u32 %v1237_v25, 16  ;;  %5613 = vmatprep.subr.bf16.mxu1 %v6639_v41  ;;  %v877_v55 = vor.u32 %v875_v32, %v874_v45  ;;  %v1236_v57 = vld [vmem:[#allocation2 + $0x8] sm:$0x1] }
  0xd9   : > { %v1261_v59 = vor.u32 %v1260_v47, %v1257_v40  ;;  %v878_v60 = vrot.slane %v874_v45, 4  ;;  %v785_v62 = vsel %vm6433_vm2, 0, %v784_v56  ;;  %v1264_v63 = vshll.u32 %v1236_v57, 16  ;;  %v963_v5 = vld [vmem:[#allocation2 + $0x38] sm:$0x1] }
  0xda   : > { %2494 = vmatprep.mubr.bf16.mxu1 %v4955_v48  ;;  %v885_v61 = vor.u32 %v883_v36, %v882_v58  ;;  %v1274_v2 = vrot.slane %v1272_v52, 5  ;;  %v955_v6 = vsel %vm6511_vm5, %v877_v55, %v954_v37  ;;  %786 = vst [vmem:[#allocation2 + $0xc] sm:$0x1] %v785_v62  ;;  %v835_v7 = vld [vmem:[#allocation2 + $0x11c] sm:$0x1]  ;;  %v886_v9 = vrot.slane %v882_v58, 4 }
  0xdb   : > { %v1238_v8 = vld [vmem:[#allocation2 + $0x28] sm:$0x1]  ;;  %v958_v10 = vsel %vm6433_vm2, %v878_v60, %v957_v54  ;;  %956 = vst [vmem:[#allocation2 + $0x10] sm:$0xf] %v955_v6  ;;  %v836_v12 = vsel %vm6433_vm2, 0, %v835_v7  ;;  %v1050_v16 = vrot.slane %v6536_v38, 4 }
  0xdc   : > { %v961_v11 = vsel %vm6511_vm5, %v885_v61, %v960_v46  ;;  %v1275_v13 = vor.u32 %v1274_v2, %v1271_v51  ;;  %959 = vst [vmem:[#allocation2 + $0x18] sm:$0x1] %v958_v10  ;;  %837 = vst [vmem:[#allocation2 + $0x11c] sm:$0x1] %v836_v12  ;;  %v1262_v18 = vrot.slane %v1261_v59, 4  ;;  %v1266_v19 = vrot.slane %v1264_v63, 5 }
  0xdd   : > { %962 = vst [vmem:[#allocation2 + $0x30] sm:$0xf] %v961_v11  ;;  %v1278_v21 = vshll.u32 %v1238_v8, 16  ;;  %v964_v22 = vsel %vm6433_vm2, %v886_v9, %v963_v5  ;;  %v378_v23 = vld [vmem:[%s6418_s24 + $0x48] sm:$0xff]  ;;  %v1169_v24 = vld [vmem:[#allocation2 + $0xc0] sm:$0xf] }
  0xde   : > { %v1276_v25 = vrot.slane %v1275_v13, 4  ;;  %965 = vst [vmem:[#allocation2 + $0x38] sm:$0x1] %v964_v22  ;;  %v6664_v26 = vld [vmem:[#allocation2 + $0x14] sm:$0xf]  ;;  %v382_v28 = vld [vmem:[%s6418_s24 + $0x68] sm:$0xff]  ;;  %v422_v29 = vmul.f32 %v6479_v3, %v378_v23  ;;  %v1267_v35 = vsel %vm6657_vm12, %v1262_v18, %v1266_v19 }
  0xdf   : > { %v6666_v27 = vld [vmem:[#allocation2 + $0x34] sm:$0xf]  ;;  %v1170_v30 = vld [vmem:[#allocation2 + $0xe0] sm:$0xf]  ;;  %v1280_v53 = vrot.slane %v1278_v21, 5  ;;  %v426_v31 = vmul.f32 %v6479_v3, %v382_v28  ;;  %v1058_v32 = vrot.slane %v6538_v39, 4 }
  0xe0   : > { %v4951_v33 = vcombine.low %v1169_v24, %v1170_v30  ;;  %v466_v34 = vadd.f32 %v6490_v15, %v422_v29  ;;  %v745_v42 = vld [vmem:[#allocation2 + $0x50] sm:$0x1]  ;;  %v1066_v43 = vrot.slane %v6570_v44, 4  ;;  %v1074_v45 = vrot.slane %v6573_v49, 4  ;;  %v5860_v5 = vld [vmem:[#allocation9 + $0x1c8] sm:$0xff]  }
  0xe1   : > { %v1281_v36 = vsel %vm6657_vm12, %v1276_v25, %v1280_v53  ;;  %v470_v37 = vadd.f32 %v6490_v15, %v426_v31  ;;  %v5858_v48 = vld [vmem:[#allocation9 + $0x180] sm:$0xff]   ;;  %v4964_v58 = vcombine.low %v6664_v26, %v6666_v27  ;;  %v1124_v10 = vld [vmem:[#allocation2 + $0x48] sm:$0x1]  ;;  %v5861_v18 = vld [vmem:[#allocation9 + $0x188] sm:$0xff]   ;;  %v746_v19 = vsel %vm6433_vm2, 0, %v745_v42 }
  0xe2   : > { %2495 = vmatmul.mubr.bf16.gmra.mrb[12].mxu1 %v4951_v33  ;;  %v498_v40 = vmax.f32 %v466_v34, 0.0  ;;  %v1386_v46 = vld [vmem:[#allocation2 + $0x10] sm:$0xf]  ;;  %v4956_v54 = vcombine.low %v1267_v35, %v1281_v36  ;;  %v1130_v21 = vld [vmem:[#allocation2 + $0x68] sm:$0x1]  ;;  %v1125_v33 = vsel %vm6433_vm2, %v1050_v16, %v1124_v10 }
  0xe3   : > { %v1458_v39 = vld [vmem:[#allocation2 + $0x10] sm:$0xf]  ;;  %v1459_v47 = vld [vmem:[#allocation2 + $0x18] sm:$0x1]  ;;  %v502_v9 = vmax.f32 %v470_v37, 0.0  ;;  %v1131_v37 = vsel %vm6433_vm2, %v1058_v32, %v1130_v21 }
  0xe4   : > { %v751_v51 = vld [vmem:[#allocation2 + $0x70] sm:$0x1]  ;;  %v1475_v56 = vshrl.u32 %v1458_v39, 16  ;;  %v1478_v57 = vshll.u32 %v1458_v39, 16  ;;  %v5210_v59 = vpack.c.bf16 %v498_v40, %v498_v40  ;;  %v1484_v62 = vshll.u32 %v1459_v47, 16  ;;  %v5863_v40 = vld [vmem:[#allocation9 + $0x1d0] sm:$0xff]  }
  0xe5   : > { %v1387_v52 = vld [vmem:[#allocation2 + $0x30] sm:$0xf]  ;;  %v1461_v61 = vld [vmem:[#allocation2 + $0x38] sm:$0x1]  ;;  %747 = vst [vmem:[#allocation2 + $0x50] sm:$0x1] %v746_v19  ;;  %v5211_v25 = vpack.c.bf16 %v502_v9, %v502_v9 }
  0xe6   : > { %v1460_v55 = vld [vmem:[#allocation2 + $0x30] sm:$0xf]  ;;  %v4960_v60 = vcombine.low %v1386_v46, %v1387_v52  ;;  %v1477_v6 = vrot.slane %v1475_v56, 4  ;;  %v1480_v7 = vrot.slane %v1478_v57, 5  ;;  %v1498_v8 = vshll.u32 %v1461_v61, 16 }
  0xe7   : > { %v1489_v63 = vshrl.u32 %v1460_v55, 16  ;;  %v1492_v2 = vshll.u32 %v1460_v55, 16  ;;  %v1486_v11 = vrot.slane %v1484_v62, 5  ;;  %v752_v24 = vsel %vm6433_vm2, 0, %v751_v51  ;;  %v1239_v28 = vld [vmem:[#allocation2 + $0x40] sm:$0xf] }
  0xe8   : > { %2535 = vmatprep.mubr.bf16.mxu0 %v4960_v60  ;;  %v1481_v22 = vor.u32 %v1480_v7, %v1477_v6  ;;  %v1500_v23 = vrot.slane %v1498_v8, 5  ;;  %v1241_v29 = vld [vmem:[#allocation2 + $0x60] sm:$0xf]  ;;  %753 = vst [vmem:[#allocation2 + $0x70] sm:$0x1] %v752_v24  ;;  %v888_v53 = vshrl.u32 %v5210_v59, 16 }
  0xe9   : > { %v1491_v12 = vrot.slane %v1489_v63, 4  ;;  %v1494_v13 = vrot.slane %v1492_v2, 5  ;;  %2536 = vmatmul.mubr.bf16.vlgmr.msra.gmra.mrb[8].mxu0 %v4956_v54  ;;  %v891_v31 = vshll.u32 %v5210_v59, 16  ;;  %v896_v35 = vshrl.u32 %v5211_v25, 16  ;;  %1126 = vst [vmem:[#allocation2 + $0x48] sm:$0x1] %v1125_v33 }
  0xea   : > { %5366 = vmatpush3.bf16.msra.mxu0 %v5858_v48  ;;  %v1482_v34 = vrot.slane %v1481_v22, 4  ;;  %v899_v36 = vshll.u32 %v5211_v25, 16  ;;  %v890_v46 = vrot.slane %v888_v53, 7  ;;  %1132 = vst [vmem:[#allocation2 + $0x68] sm:$0x1] %v1131_v37  ;;  %v1283_v39 = vshrl.u32 %v1239_v28, 16 }
  0xeb   : > { %v1495_v30 = vor.u32 %v1494_v13, %v1491_v12  ;;  %5367 = vmatprep.subr.bf16.mxu0 %v5860_v5  ;;  %v1286_v47 = vshll.u32 %v1239_v28, 16  ;;  %v898_v48 = vrot.slane %v896_v35, 7  ;;  %v1297_v51 = vshrl.u32 %v1241_v29, 16  ;;  %v969_v52 = vld [vmem:[#allocation2 + $0x58] sm:$0x1]  ;;  %v5864_v59 = vld [vmem:[#allocation9 + $0x190] sm:$0xff]  }
  0xec   : > { %v1487_v38 = vsel %vm6657_vm12, %v1482_v34, %v1486_v11  ;;  %v1300_v16 = vshll.u32 %v1241_v29, 16  ;;  %v5862_v55 = vld [vmem:[#allocation9 + $0x208] sm:$0xff]   ;;  %v893_v56 = vor.u32 %v891_v31, %v890_v46  ;;  %v1285_v32 = vrot.slane %v1283_v39, 4  ;;  %v5866_v60 = vld [vmem:[#allocation9 + $0x1d8] sm:$0xff]   ;;  %v966_v6 = vld [vmem:[#allocation2 + $0x50] sm:$0xf] }
  0xed   : > { %v1496_v42 = vrot.slane %v1495_v30, 4  ;;  %v1288_v57 = vrot.slane %v1286_v47, 5  ;;  %v901_v62 = vor.u32 %v899_v36, %v898_v48  ;;  %v1299_v63 = vrot.slane %v1297_v51, 4  ;;  %v975_v5 = vld [vmem:[#allocation2 + $0x78] sm:$0x1]  ;;  %v5867_v24 = vld [vmem:[#allocation9 + $0x198] sm:$0xff]  }
  0xee   : > { %5368 = vmatpush3.bf16.msra.mxu0 %v5861_v18  ;;  %v1302_v2 = vrot.slane %v1300_v16, 5  ;;  %v894_v8 = vrot.slane %v890_v46, 4  ;;  %v902_v9 = vrot.slane %v898_v48, 4  ;;  %v967_v10 = vsel %vm6511_vm5, %v893_v56, %v966_v6  ;;  %v386_v28 = vld [vmem:[%s6418_s24 + $0x88] sm:$0xff]  ;;  %v6709_v30 = vld [vmem:[#allocation2 + $0x54] sm:$0xf] }
  0xef   : > { %v1501_v54 = vsel %vm6657_vm12, %v1496_v42, %v1500_v23  ;;  %5369 = vmatprep.subr.bf16.mxu0 %v5863_v40  ;;  %v1289_v7 = vor.u32 %v1288_v57, %v1285_v32  ;;  %v972_v11 = vld [vmem:[#allocation2 + $0x70] sm:$0xf]  ;;  %968 = vst [vmem:[#allocation2 + $0x50] sm:$0xf] %v967_v10  ;;  %v5865_v23 = vld [vmem:[#allocation9 + $0x210] sm:$0xff]   ;;  %v390_v31 = vld [vmem:[%s6418_s24 + $0xa8] sm:$0xff]  ;;  %v430_v33 = vmul.f32 %v6479_v3, %v386_v28 }
  0xf0   : > { %v4968_v61 = vcombine.low %v1487_v38, %v1501_v54  ;;  %v1303_v12 = vor.u32 %v1302_v2, %v1299_v63  ;;  %v973_v13 = vsel %vm6511_vm5, %v901_v62, %v972_v11  ;;  %v1240_v18 = vld [vmem:[#allocation2 + $0x48] sm:$0x1]  ;;  %v970_v21 = vsel %vm6433_vm2, %v894_v8, %v969_v52  ;;  %v6711_v53 = vld [vmem:[#allocation2 + $0x74] sm:$0xf]  ;;  %v757_v34 = vld [vmem:[#allocation2 + $0x90] sm:$0x1] }
  0xf1   : > { %v1290_v19 = vrot.slane %v1289_v7, 4  ;;  %v976_v22 = vsel %vm6433_vm2, %v902_v9, %v975_v5  ;;  %974 = vst [vmem:[#allocation2 + $0x70] sm:$0xf] %v973_v13  ;;  %v1242_v26 = vld [vmem:[#allocation2 + $0x68] sm:$0x1]  ;;  %v1292_v27 = vshll.u32 %v1240_v18, 16  ;;  %v434_v36 = vmul.f32 %v6479_v3, %v390_v31 }
  0xf2   : > { %2600 = vmatprep.mubr.bf16.mxu1 %v4968_v61  ;;  %5370 = vmatpush3.bf16.msra.mxu0 %v5864_v59  ;;  %971 = vst [vmem:[#allocation2 + $0x58] sm:$0x1] %v970_v21  ;;  %977 = vst [vmem:[#allocation2 + $0x78] sm:$0x1] %v976_v22  ;;  %v1306_v25 = vshll.u32 %v1242_v26, 16  ;;  %v758_v37 = vsel %vm6433_vm2, 0, %v757_v34  ;;  %v474_v38 = vadd.f32 %v6490_v15, %v430_v33 }
  0xf3   : > { %2601 = vmatmul.mubr.bf16.vlgmr.msra.gmra.mrb[16].mxu1 %v4964_v58  ;;  %v1304_v58 = vrot.slane %v1303_v12, 4  ;;  %5371 = vmatprep.subr.bf16.mxu0 %v5866_v60  ;;  %v1294_v29 = vrot.slane %v1292_v27, 5  ;;  %v1136_v42 = vld [vmem:[#allocation2 + $0x88] sm:$0x1]  ;;  %v5869_v46 = vld [vmem:[#allocation9 + $0x1e0] sm:$0xff]   ;;  %v478_v54 = vadd.f32 %v6490_v15, %v434_v36  ;;  %v4965_v63 = vcombine.low %v6709_v30, %v6711_v53  ;;  %v5872_v21 = vld [vmem:[#allocation9 + $0x1e8] sm:$0xff]  }
  0xf4   : > { %5614 = vmatpush3.bf16.msra.mxu1 %v6639_v41  ;;  %v763_v41 = vld [vmem:[#allocation2 + $0xb0] sm:$0x1]  ;;  %v1308_v35 = vrot.slane %v1306_v25, 5  ;;  %v5868_v47 = vld [vmem:[#allocation9 + $0x218] sm:$0xff]   ;;  %759 = vst [vmem:[#allocation2 + $0x90] sm:$0x1] %v758_v37  ;;  %v1137_v48 = vsel %vm6433_vm2, %v1066_v43, %v1136_v42 }
  0xf5   : > { %5615 = vmatprep.subr.bf16.mxu1 %v5862_v55  ;;  %v764_v40 = vsel %vm6433_vm2, 0, %v763_v41  ;;  %v1295_v39 = vsel %vm6657_vm12, %v1290_v19, %v1294_v29  ;;  %v1142_v51 = vld [vmem:[#allocation2 + $0xa8] sm:$0x1]  ;;  %v1243_v16 = vld [vmem:[#allocation2 + $0x80] sm:$0xf]  ;;  %v5870_v56 = vld [vmem:[#allocation9 + $0x1a0] sm:$0xff]  }
  0xf6   : > { %5372 = vmatpush3.bf16.msra.mxu0 %v5867_v24  ;;  %765 = vst [vmem:[#allocation2 + $0xb0] sm:$0x1] %v764_v40  ;;  %v1309_v52 = vsel %vm6657_vm12, %v1304_v58, %v1308_v35  ;;  %1138 = vst [vmem:[#allocation2 + $0x88] sm:$0x1] %v1137_v48  ;;  %v1388_v44 = vld [vmem:[#allocation2 + $0x50] sm:$0xf] }
  0xf7   : > { %5373 = vmatprep.subr.bf16.mxu0 %v5869_v46  ;;  %v1462_v32 = vld [vmem:[#allocation2 + $0x50] sm:$0xf]  ;;  %v506_v57 = vmax.f32 %v474_v38, 0.0  ;;  %v1311_v43 = vshrl.u32 %v1243_v16, 16  ;;  %v4957_v60 = vcombine.low %v1295_v39, %v1309_v52  ;;  %v510_v10 = vmax.f32 %v478_v54, 0.0  ;;  %v5873_v25 = vld [vmem:[#allocation9 + $0x1a8] sm:$0xff]  }
  0xf8   : > { %5616 = vmatpush3.bf16.msra.mxu1 %v5862_v55  ;;  %v1143_v55 = vsel %vm6433_vm2, %v1074_v45, %v1142_v51  ;;  %v1389_v59 = vld [vmem:[#allocation2 + $0x70] sm:$0xf]  ;;  %v1503_v5 = vshrl.u32 %v1462_v32, 16  ;;  %v1506_v6 = vshll.u32 %v1462_v32, 16  ;;  %v1314_v19 = vshll.u32 %v1243_v16, 16  ;;  %v5874_v42 = vld [vmem:[#allocation9 + $0x228] sm:$0xff]  }
  0xf9   : > { %5617 = vmatprep.subr.bf16.mxu1 %v5865_v23  ;;  %1144 = vst [vmem:[#allocation2 + $0xa8] sm:$0x1] %v1143_v55  ;;  %v1463_v61 = vld [vmem:[#allocation2 + $0x58] sm:$0x1]  ;;  %v1464_v62 = vld [vmem:[#allocation2 + $0x70] sm:$0xf]  ;;  %v4961_v2 = vcombine.low %v1388_v44, %v1389_v59  ;;  %v5212_v18 = vpack.c.bf16 %v506_v57, %v506_v57  ;;  %v5213_v27 = vpack.c.bf16 %v510_v10, %v510_v10 }
  0xfa   : > { %5374 = vmatpush3.bf16.msra.mxu0 %v5870_v56  ;;  %v1465_v49 = vld [vmem:[#allocation2 + $0x78] sm:$0x1]  ;;  %v1512_v45 = vshll.u32 %v1463_v61, 16  ;;  %v1517_v7 = vshrl.u32 %v1464_v62, 16  ;;  %v1520_v8 = vshll.u32 %v1464_v62, 16  ;;  %v5871_v11 = vld [vmem:[#allocation9 + $0x220] sm:$0xff]  }
  0xfb   : > { %v1526_v9 = vshll.u32 %v1465_v49, 16  ;;  %2543 = vmatprep.mubr.bf16.mxu0 %v4961_v2  ;;  %v1505_v12 = vrot.slane %v1503_v5, 4  ;;  %v1508_v13 = vrot.slane %v1506_v6, 5  ;;  %v1245_v58 = vld [vmem:[#allocation2 + $0xa0] sm:$0xf]  ;;  %v904_v29 = vshrl.u32 %v5212_v18, 16  ;;  %5375 = vmatprep.subr.bf16.mxu0 %v5872_v21 }
  0xfc   : > { %5618 = vmatpush3.bf16.msra.mxu1 %v5865_v23  ;;  %2544 = vmatmul.mubr.bf16.gmra.mrb[12].mxu0 %v4957_v60  ;;  %v1514_v22 = vrot.slane %v1512_v45, 5  ;;  %v1519_v24 = vrot.slane %v1517_v7, 4  ;;  %v1522_v26 = vrot.slane %v1520_v8, 5  ;;  %v907_v31 = vshll.u32 %v5212_v18, 16  ;;  %v978_v36 = vld [vmem:[#allocation2 + $0x90] sm:$0xf] }
  0xfd   : > { %5619 = vmatprep.subr.bf16.mxu1 %v5868_v47  ;;  %v1509_v23 = vor.u32 %v1508_v13, %v1505_v12  ;;  %v1528_v28 = vrot.slane %v1526_v9, 5  ;;  %v1244_v33 = vld [vmem:[#allocation2 + $0x88] sm:$0x1]  ;;  %v912_v41 = vshrl.u32 %v5213_v27, 16  ;;  %v915_v35 = vshll.u32 %v5213_v27, 16  ;;  %v394_v59 = vld [vmem:[%s6418_s24 + $0xc8] sm:$0xff] }
  0xfe   : > { %v1523_v34 = vor.u32 %v1522_v26, %v1519_v24  ;;  %v1313_v40 = vrot.slane %v1311_v43, 4  ;;  %5376 = vmatpush3.bf16.msra.mxu0 %v5873_v25  ;;  %v906_v39 = vrot.slane %v904_v29, 7  ;;  %v1316_v38 = vrot.slane %v1314_v19, 5  ;;  %v984_v56 = vld [vmem:[#allocation2 + $0xb0] sm:$0xf]  ;;  %v398_v12 = vld [vmem:[%s6418_s24 + $0xe8] sm:$0xff] }
  0xff   : > { %v1510_v46 = vrot.slane %v1509_v23, 4  ;;  %v1320_v48 = vshll.u32 %v1244_v33, 16  ;;  %v914_v16 = vrot.slane %v912_v41, 7  ;;  %v1325_v52 = vshrl.u32 %v1245_v58, 16  ;;  %v981_v57 = vld [vmem:[#allocation2 + $0x98] sm:$0x1] }
 0x100   : > { %5620 = vmatpush3.bf16.msra.mxu1 %v5868_v47  ;;  %v1246_v37 = vld [vmem:[#allocation2 + $0xa8] sm:$0x1]  ;;  %v1524_v51 = vrot.slane %v1523_v34, 4  ;;  %v1328_v47 = vshll.u32 %v1245_v58, 16  ;;  %v909_v55 = vor.u32 %v907_v31, %v906_v39  ;;  %v1317_v44 = vor.u32 %v1316_v38, %v1313_v40  ;;  %v987_v43 = vld [vmem:[#allocation2 + $0xb8] sm:$0x1] }
 0x101   : > { %5621 = vmatprep.subr.bf16.mxu1 %v5871_v11  ;;  %v1515_v54 = vsel %vm6657_vm12, %v1510_v46, %v1514_v22  ;;  %v6738_v32 = vrot.slane %v1320_v48, 5  ;;  %v917_v61 = vor.u32 %v915_v35, %v914_v16  ;;  %v1327_v62 = vrot.slane %v1325_v52, 4  ;;  %v769_v24 = vld [vmem:[#allocation2 + $0xd0] sm:$0x1]  ;;  %v5875_v27 = vld [vmem:[#allocation9 + $0x1f0] sm:$0xff]  }
 0x102   : > { %v1529_v60 = vsel %vm6657_vm12, %v1524_v51, %v1528_v28  ;;  %v1330_v2 = vrot.slane %v1328_v47, 5  ;;  %v979_v5 = vsel %vm6511_vm5, %v909_v55, %v978_v36  ;;  %v1318_v6 = vrot.slane %v1317_v44, 4  ;;  %v775_v26 = vld [vmem:[#allocation2 + $0xf0] sm:$0x1]  ;;  %v1148_v25 = vld [vmem:[#allocation2 + $0xc8] sm:$0x1]  ;;  %5377 = vmatprep.subr.bf16.mxu0 %v5875_v27 }
 0x103   : > { %v4969_v49 = vcombine.low %v1515_v54, %v1529_v60  ;;  %v1334_v45 = vshll.u32 %v1246_v37, 16  ;;  %980 = vst [vmem:[#allocation2 + $0x90] sm:$0xf] %v979_v5  ;;  %v985_v7 = vsel %vm6511_vm5, %v917_v61, %v984_v56  ;;  %v910_v9 = vrot.slane %v906_v39, 4  ;;  %v5876_v23 = vld [vmem:[#allocation9 + $0x1b0] sm:$0xff]   ;;  %v5878_v51 = vld [vmem:[#allocation9 + $0x1f8] sm:$0xff]  }
 0x104   : > { %5622 = vmatpush3.bf16.msra.mxu1 %v5871_v11  ;;  %v1331_v8 = vor.u32 %v1330_v2, %v1327_v62  ;;  %v918_v10 = vrot.slane %v914_v16, 4  ;;  %986 = vst [vmem:[#allocation2 + $0xb0] sm:$0xf] %v985_v7  ;;  %v438_v13 = vmul.f32 %v6479_v3, %v394_v59  ;;  %v442_v22 = vmul.f32 %v6479_v3, %v398_v12  ;;  %v1154_v33 = vld [vmem:[#allocation2 + $0xe8] sm:$0x1]  ;;  %v5877_v41 = vld [vmem:[#allocation9 + $0x230] sm:$0xff]  }
 0x105   : > { %5623 = vmatprep.subr.bf16.mxu1 %v5874_v42  ;;  %2608 = vmatprep.mubr.bf16.mxu1 %v4969_v49  ;;  %v1336_v11 = vrot.slane %v1334_v45, 5  ;;  %v982_v19 = vsel %vm6433_vm2, %v910_v9, %v981_v57  ;;  %v770_v30 = vsel %vm6433_vm2, 0, %v769_v24  ;;  %v776_v53 = vsel %vm6433_vm2, 0, %v775_v26  ;;  %v6768_v34 = vld [vmem:[#allocation2 + $0xc0] sm:$0xf]  ;;  %v5879_v49 = vld [vmem:[#allocation9 + $0x1b8] sm:$0xff]  }
 0x106   : > { %2609 = vmatmul.mubr.bf16.gmra.mrb[20].mxu1 %v4965_v63  ;;  %v1332_v18 = vrot.slane %v1331_v8, 4  ;;  %v988_v21 = vsel %vm6433_vm2, %v918_v10, %v987_v43  ;;  %983 = vst [vmem:[#allocation2 + $0x98] sm:$0x1] %v982_v19  ;;  %v482_v58 = vadd.f32 %v6490_v15, %v438_v13  ;;  %v1082_v63 = vrot.slane %v6624_v14, 4  ;;  %771 = vst [vmem:[#allocation2 + $0xd0] sm:$0x1] %v770_v30 }
 0x107   : > { %989 = vst [vmem:[#allocation2 + $0xb8] sm:$0x1] %v988_v21  ;;  %v1323_v28 = vsel %vm6657_vm12, %v1318_v6, %v6738_v32  ;;  %v486_v29 = vadd.f32 %v6490_v15, %v442_v22  ;;  %777 = vst [vmem:[#allocation2 + $0xf0] sm:$0x1] %v776_v53  ;;  %v1090_v31 = vrot.slane %v6626_v20, 4  ;;  %v1339_v46 = vshrl.u32 %v6768_v34, 16  ;;  %5378 = vmatpush3.bf16.msra.mxu0 %v5876_v23 }
 0x108   : > { %5624 = vmatpush3.bf16.msra.mxu1 %v5874_v42  ;;  %v1337_v14 = vsel %vm6657_vm12, %v1332_v18, %v1336_v11  ;;  %v6772_v35 = vld [vmem:[#allocation2 + $0x94] sm:$0xf]  ;;  %v514_v37 = vmax.f32 %v482_v58, 0.0  ;;  %v1149_v40 = vsel %vm6433_vm2, %v1082_v63, %v1148_v25  ;;  %v1249_v42 = vld [vmem:[#allocation2 + $0xe0] sm:$0xf]  ;;  %v1342_v38 = vshll.u32 %v6768_v34, 16  ;;  %5379 = vmatprep.subr.bf16.mxu0 %v5878_v51 }
 0x109   : > { %v6774_v36 = vld [vmem:[#allocation2 + $0xb4] sm:$0xf]  ;;  %v518_v20 = vmax.f32 %v486_v29, 0.0  ;;  %1150 = vst [vmem:[#allocation2 + $0xc8] sm:$0x1] %v1149_v40  ;;  %v1155_v39 = vsel %vm6433_vm2, %v1090_v31, %v1154_v33  ;;  %v1353_v48 = vshrl.u32 %v1249_v42, 16  ;;  %5625 = vmatprep.subr.bf16.mxu1 %v5877_v41  ;;  %v4958_v44 = vcombine.low %v1323_v28, %v1337_v14 }
 0x10a   : > { %v1390_v16 = vld [vmem:[#allocation2 + $0x90] sm:$0xf]  ;;  %v5214_v47 = vpack.c.bf16 %v514_v37, %v514_v37  ;;  %1156 = vst [vmem:[#allocation2 + $0xe8] sm:$0x1] %v1155_v39  ;;  %v6782_v54 = vrot.slane %v1339_v46, 4  ;;  %v1356_v55 = vshll.u32 %v1249_v42, 16  ;;  %v4966_v8 = vcombine.low %v6772_v35, %v6774_v36 }
 0x10b   : > { %v1466_v52 = vld [vmem:[#allocation2 + $0x90] sm:$0xf]  ;;  %v5215_v59 = vpack.c.bf16 %v518_v20, %v518_v20  ;;  %5380 = vmatpush3.bf16.msra.mxu0 %v5879_v49  ;;  %v5880_v24 = vld [vmem:[#allocation9 + $0x238] sm:$0xff]   ;;  %v1344_v29 = vrot.slane %v1342_v38, 5  ;;  %v993_v42 = vld [vmem:[#allocation2 + $0xd8] sm:$0x1] }
 0x10c   : > { %5626 = vmatpush3.bf16.msra.mxu1 %v5877_v41  ;;  %v1391_v56 = vld [vmem:[#allocation2 + $0xb0] sm:$0xf]  ;;  %v1531_v57 = vshrl.u32 %v1466_v52, 16  ;;  %v1534_v43 = vshll.u32 %v1466_v52, 16  ;;  %v920_v2 = vshrl.u32 %v5214_v47, 16  ;;  %v923_v19 = vshll.u32 %v5214_v47, 16 }
 0x10d   : > { %v1468_v32 = vld [vmem:[#allocation2 + $0xb0] sm:$0xf]  ;;  %v4962_v60 = vcombine.low %v1390_v16, %v1391_v56  ;;  %v1467_v5 = vld [vmem:[#allocation2 + $0x98] sm:$0x1]  ;;  %v928_v21 = vshrl.u32 %v5215_v59, 16  ;;  %v931_v30 = vshll.u32 %v5215_v59, 16  ;;  %5627 = vmatprep.subr.bf16.mxu1 %v5880_v24  ;;  %v1345_v40 = vor.u32 %v1344_v29, %v6782_v54 }
 0x10e   : > { %v1545_v61 = vshrl.u32 %v1468_v32, 16  ;;  %v1548_v62 = vshll.u32 %v1468_v32, 16  ;;  %v1469_v6 = vld [vmem:[#allocation2 + $0xb8] sm:$0x1]  ;;  %v1533_v45 = vrot.slane %v1531_v57, 4  ;;  %v1536_v7 = vrot.slane %v1534_v43, 5 }
 0x10f   : > { %2551 = vmatprep.mubr.bf16.mxu0 %v4962_v60  ;;  %v1540_v9 = vshll.u32 %v1467_v5, 16  ;;  %v1554_v12 = vshll.u32 %v1469_v6, 16  ;;  %v922_v18 = vrot.slane %v920_v2, 7  ;;  %v990_v22 = vld [vmem:[#allocation2 + $0xd0] sm:$0xf]  ;;  %v930_v23 = vrot.slane %v928_v21, 7 }
 0x110   : > { %v1547_v10 = vrot.slane %v1545_v61, 4  ;;  %v1550_v11 = vrot.slane %v1548_v62, 5  ;;  %2552 = vmatmul.mubr.bf16.gmra.mrb[16].mxu0 %v4958_v44  ;;  %v1537_v13 = vor.u32 %v1536_v7, %v1533_v45  ;;  %v1248_v53 = vld [vmem:[#allocation2 + $0xc8] sm:$0x1]  ;;  %v996_v33 = vld [vmem:[#allocation2 + $0xf0] sm:$0xf]  ;;  %5628 = vmatpush3.bf16.msra.mxu1 %v5880_v24 }
 0x111   : > { %v1542_v26 = vrot.slane %v1540_v9, 5  ;;  %v1556_v58 = vrot.slane %v1554_v12, 5  ;;  %v925_v25 = vor.u32 %v923_v19, %v922_v18  ;;  %v1250_v28 = vld [vmem:[#allocation2 + $0xe8] sm:$0x1]  ;;  %v1348_v34 = vshll.u32 %v1248_v53, 16  ;;  %v399_v2 = vld [vmem:[%s6418_s24 + $0xf0] sm:$0xff] }
 0x112   : > { %v1551_v27 = vor.u32 %v1550_v11, %v1547_v10  ;;  %v1538_v63 = vrot.slane %v1537_v13, 4  ;;  %v1355_v41 = vrot.slane %v1353_v48, 4  ;;  %v1358_v14 = vrot.slane %v1356_v55, 5  ;;  %v999_v48 = vld [vmem:[#allocation2 + $0xf8] sm:$0x1]  ;;  %v400_v57 = vld [vmem:[%s6418_s24 + $0xf8] sm:$0xff]  ;;  %s7234_s24 = scalar_lea.hbm %s7294_s8, %s5232_s12 }
 0x113   : > { %v933_v36 = vor.u32 %v931_v30, %v930_v23  ;;  %v991_v37 = vsel %vm6511_vm5, %v925_v25, %v990_v22  ;;  %v1350_v20 = vrot.slane %v1348_v34, 5  ;;  %v1362_v38 = vshll.u32 %v1250_v28, 16  ;;  %v6795_v55 = vld [vmem:[#allocation2 + $0xd4] sm:$0xf]  ;;  %v1642_v62 = vld [vmem:[#allocation2 + $0x24] sm:$0xf] }
 0x114   : > { %v1552_v31 = vrot.slane %v1551_v27, 4  ;;  %v1543_v35 = vsel %vm6657_vm12, %v1538_v63, %v1542_v26  ;;  %992 = vst [vmem:[#allocation2 + $0xd0] sm:$0xf] %v991_v37  ;;  %v1359_v39 = vor.u32 %v1358_v14, %v1355_v41  ;;  %v1346_v52 = vrot.slane %v1345_v40, 4  ;;  %v6797_v54 = vld [vmem:[#allocation2 + $0xf4] sm:$0xf] }
 0x115   : > { %v997_v16 = vsel %vm6511_vm5, %v933_v36, %v996_v33  ;;  %v926_v47 = vrot.slane %v922_v18, 4  ;;  %v1364_v44 = vrot.slane %v1362_v38, 5  ;;  %v934_v32 = vrot.slane %v930_v23, 4  ;;  %v1643_v49 = vld [vmem:[#allocation2 + $0x44] sm:$0xf] }
 0x116   : > { %v1557_v46 = vsel %vm6657_vm12, %v1552_v31, %v1556_v58  ;;  %998 = vst [vmem:[#allocation2 + $0xf0] sm:$0xf] %v997_v16  ;;  %v1360_v56 = vrot.slane %v1359_v39, 4  ;;  %v1351_v59 = vsel %vm6657_vm12, %v1346_v52, %v1350_v20  ;;  %v6809_v5 = vld [vmem:[#allocation2 + $0x20] sm:$0xf]  ;;  %v4967_v45 = vcombine.low %v6795_v55, %v6797_v54 }
 0x117   : > { %v4970_v51 = vcombine.low %v1543_v35, %v1557_v46  ;;  %v994_v43 = vsel %vm6433_vm2, %v926_v47, %v993_v42  ;;  %v1000_v61 = vsel %vm6433_vm2, %v934_v32, %v999_v48  ;;  %v1678_v6 = vld [vmem:[#allocation2 + $0x20] sm:$0xf]  ;;  %v6816_v10 = vmul.f32 %v6479_v3, %v400_v57  ;;  %v1681_v26 = vld [vmem:[#allocation2 + $0x48] sm:$0x1] }
 0x118   : > { %v1365_v60 = vsel %vm6657_vm12, %v1360_v56, %v1364_v44  ;;  %995 = vst [vmem:[#allocation2 + $0xd8] sm:$0x1] %v994_v43  ;;  %1001 = vst [vmem:[#allocation2 + $0xf8] sm:$0x1] %v1000_v61  ;;  %v6813_v7 = vld [vmem:[#allocation2 + $0x40] sm:$0xf]  ;;  %v6819_v21 = vmul.f32 %v6474_v0, %v399_v2  ;;  %v4976_v63 = vcombine.low %v1642_v62, %v1643_v49 }
 0x119   : > { %2616 = vmatprep.mubr.bf16.mxu1 %v4970_v51  ;;  %v1680_v9 = vld [vmem:[#allocation2 + $0x40] sm:$0xf]  ;;  %v4959_v12 = vcombine.low %v1351_v59, %v1365_v60  ;;  %v1695_v18 = vshrl.u32 %v1678_v6, 16  ;;  %v1698_v19 = vshll.u32 %v1678_v6, 16  ;;  %v4972_v3 = vcombine.low %v6809_v5, %v6813_v7  ;;  %v1683_v39 = vld [vmem:[#allocation2 + $0x68] sm:$0x1] }
 0x11a   : > { %2617 = vmatmul.mubr.bf16.gmra.mrb[24].mxu1 %v4966_v8  ;;  %v1679_v8 = vld [vmem:[#allocation2 + $0x28] sm:$0x1]  ;;  %v1709_v58 = vshrl.u32 %v1680_v9, 16  ;;  %v1682_v34 = vld [vmem:[#allocation2 + $0x60] sm:$0xf]  ;;  %v1712_v20 = vshll.u32 %v1680_v9, 16 }
 0x11b   : > { %v1392_v11 = vld [vmem:[#allocation2 + $0xd0] sm:$0xf]  ;;  %v1704_v27 = vshll.u32 %v1679_v8, 16  ;;  %v1697_v25 = vrot.slane %v1695_v18, 4  ;;  %v1700_v23 = vrot.slane %v1698_v19, 5  ;;  %v1718_v16 = vshll.u32 %v1681_v26, 16 }
 0x11c   : > { %v1470_v13 = vld [vmem:[#allocation2 + $0xd0] sm:$0xf]  ;;  %v1711_v36 = vrot.slane %v1709_v58, 4  ;;  %v1684_v52 = vld [vmem:[#allocation2 + $0x80] sm:$0xf]  ;;  %v1714_v44 = vrot.slane %v1712_v20, 5 }
 0x11d   : > { %v1559_v22 = vshrl.u32 %v1470_v13, 16  ;;  %v1562_v24 = vshll.u32 %v1470_v13, 16  ;;  %v1393_v30 = vld [vmem:[#allocation2 + $0xf0] sm:$0xf]  ;;  %v1701_v14 = vor.u32 %v1700_v23, %v1697_v25  ;;  %v1706_v35 = vrot.slane %v1704_v27, 5 }
 0x11e   : > { %v1472_v53 = vld [vmem:[#allocation2 + $0xf0] sm:$0xf]  ;;  %v4963_v28 = vcombine.low %v1392_v11, %v1393_v30  ;;  %v1685_v32 = vld [vmem:[#allocation2 + $0x88] sm:$0x1]  ;;  %v1723_v57 = vshrl.u32 %v1682_v34, 16  ;;  %v1720_v61 = vrot.slane %v1718_v16, 5  ;;  %v1715_v5 = vor.u32 %v1714_v44, %v1711_v36 }
 0x11f   : > { %v1561_v29 = vrot.slane %v1559_v22, 4  ;;  %v1564_v31 = vrot.slane %v1562_v24, 5  ;;  %v1573_v33 = vshrl.u32 %v1472_v53, 16  ;;  %v1471_v0 = vld [vmem:[#allocation2 + $0xd8] sm:$0x1]  ;;  %v1576_v41 = vshll.u32 %v1472_v53, 16 }
 0x120   : > { %2559 = vmatprep.mubr.bf16.mxu0 %v4963_v28  ;;  %v1473_v37 = vld [vmem:[#allocation2 + $0xf8] sm:$0x1]  ;;  %v1568_v42 = vshll.u32 %v1471_v0, 16  ;;  %v1702_v51 = vrot.slane %v1701_v14, 4  ;;  %v1644_v62 = vld [vmem:[#allocation2 + $0x64] sm:$0xf]  ;;  %v488_v14 = vadd.f32 %v6490_v15, %v6816_v10 }
 0x121   : > { %v1565_v40 = vor.u32 %v1564_v31, %v1561_v29  ;;  %v1575_v46 = vrot.slane %v1573_v33, 4  ;;  %2560 = vmatmul.mubr.bf16.gmra.mrb[20].mxu0 %v4959_v12  ;;  %v1578_v38 = vrot.slane %v1576_v41, 5  ;;  %v1582_v48 = vshll.u32 %v1473_v37, 16  ;;  %v1645_v2 = vld [vmem:[#allocation2 + $0x84] sm:$0xf] }
 0x122   : > { %v1570_v56 = vrot.slane %v1568_v42, 5  ;;  %2665 = vmatprep.mubr.bf16.mxu0 %v4976_v63  ;;  %v1707_v60 = vsel %vm6657_vm12, %v1702_v51, %v1706_v35  ;;  %v1725_v6 = vrot.slane %v1723_v57, 4  ;;  %v1726_v7 = vshll.u32 %v1682_v34, 16  ;;  %v1608_v23 = vld [vmem:[#allocation2 + $0x60] sm:$0xf] }
 0x123   : > { %v1566_v47 = vrot.slane %v1565_v40, 4  ;;  %v1579_v43 = vor.u32 %v1578_v38, %v1575_v46  ;;  %v1584_v59 = vrot.slane %v1582_v48, 5  ;;  %v1732_v9 = vshll.u32 %v1683_v39, 16  ;;  %v1609_v28 = vld [vmem:[#allocation2 + $0x80] sm:$0xf] }
 0x124   : > { %v1737_v11 = vshrl.u32 %v1684_v52, 16  ;;  %v1740_v12 = vshll.u32 %v1684_v52, 16  ;;  %v1716_v13 = vrot.slane %v1715_v5, 4  ;;  %v1728_v18 = vrot.slane %v1726_v7, 5  ;;  %v1686_v29 = vld [vmem:[#allocation2 + $0xa0] sm:$0xf] }
 0x125   : > { %v1571_v49 = vsel %vm6657_vm12, %v1566_v47, %v1570_v56  ;;  %v1580_v8 = vrot.slane %v1579_v43, 4  ;;  %v1746_v19 = vshll.u32 %v1685_v32, 16  ;;  %v4977_v22 = vcombine.low %v1644_v62, %v1645_v2  ;;  %v1687_v34 = vld [vmem:[#allocation2 + $0xa8] sm:$0x1]  ;;  %v1688_v0 = vld [vmem:[#allocation2 + $0xc0] sm:$0xf] }
 0x126   : > { %v1734_v26 = vrot.slane %v1732_v9, 5  ;;  %v1739_v27 = vrot.slane %v1737_v11, 4  ;;  %v1742_v58 = vrot.slane %v1740_v12, 5  ;;  %v1721_v53 = vsel %vm6657_vm12, %v1716_v13, %v1720_v61  ;;  %v1689_v41 = vld [vmem:[#allocation2 + $0xc8] sm:$0x1] }
 0x127   : > { %v1585_v24 = vsel %vm6657_vm12, %v1580_v8, %v1584_v59  ;;  %v1729_v63 = vor.u32 %v1728_v18, %v1725_v6  ;;  %v1748_v25 = vrot.slane %v1746_v19, 5  ;;  %v4980_v31 = vcombine.low %v1707_v60, %v1721_v53  ;;  %v1646_v36 = vld [vmem:[#allocation2 + $0xa4] sm:$0xf]  ;;  %v778_v16 = vld [vmem:[#allocation2 + $0x100] sm:$0x1] }
 0x128   : > { %v4971_v30 = vcombine.low %v1571_v49, %v1585_v24  ;;  %v1743_v33 = vor.u32 %v1742_v58, %v1739_v27  ;;  %v1751_v37 = vshrl.u32 %v1686_v29, 16  ;;  %v1754_v40 = vshll.u32 %v1686_v29, 16  ;;  %v1647_v46 = vld [vmem:[#allocation2 + $0xc4] sm:$0xf]  ;;  %v1690_v44 = vld [vmem:[#allocation2 + $0xe0] sm:$0xf] }
 0x129   : > { %2666 = vmatmul.mubr.bf16.vlgmr.msra.gmra.mrb[24].mxu0 %v4972_v3  ;;  %v1730_v35 = vrot.slane %v1729_v63, 4  ;;  %v487_v42 = vadd.f32 %v6481_v4, %v6819_v21  ;;  %v1760_v20 = vshll.u32 %v1687_v34, 16  ;;  %v1765_v39 = vshrl.u32 %v1688_v0, 16  ;;  %v1691_v60 = vld [vmem:[#allocation2 + $0xe8] sm:$0x1] }
 0x12a   : > { %2624 = vmatprep.mubr.bf16.mxu1 %v4971_v30  ;;  %2673 = vmatprep.mubr.bf16.mxu0 %v4977_v22  ;;  %v1744_v3 = vrot.slane %v1743_v33, 4  ;;  %v1768_v38 = vshll.u32 %v1688_v0, 16  ;;  %v1753_v10 = vrot.slane %v1751_v37, 4  ;;  %v1756_v48 = vrot.slane %v1754_v40, 5  ;;  %v1610_v61 = vld [vmem:[#allocation2 + $0xa0] sm:$0xf] }
 0x12b   : > { %2625 = vmatmul.mubr.bf16.gmra.mrb[28].mxu1 %v4967_v45  ;;  %v1735_v15 = vsel %vm6657_vm12, %v1730_v35, %v1734_v26  ;;  %v1774_v51 = vshll.u32 %v1689_v41, 16  ;;  %v4973_v21 = vcombine.low %v1608_v23, %v1609_v28  ;;  %v1767_v52 = vrot.slane %v1765_v39, 4  ;;  %v1611_v62 = vld [vmem:[#allocation2 + $0xc0] sm:$0xf]  ;;  %v1160_v19 = vld [vmem:[#allocation2 + $0x108] sm:$0x1] }
 0x12c   : > { %5629 = vmatprep.mubr.bf16.mxu1 %v4980_v31  ;;  %v1749_v4 = vsel %vm6657_vm12, %v1744_v3, %v1748_v25  ;;  %v1770_v55 = vrot.slane %v1768_v38, 5  ;;  %v4978_v54 = vcombine.low %v1646_v36, %v1647_v46  ;;  %v1757_v45 = vor.u32 %v1756_v48, %v1753_v10  ;;  %v1648_v31 = vld [vmem:[#allocation2 + $0xe4] sm:$0xf]  ;;  %v1612_v34 = vld [vmem:[#allocation2 + $0xe0] sm:$0xf] }
 0x12d   : > { %v1762_v47 = vrot.slane %v1760_v20, 5  ;;  %v520_v56 = vmax.f32 %v488_v14, 0.0  ;;  %v4981_v32 = vcombine.low %v1735_v15, %v1749_v4  ;;  %v1776_v43 = vrot.slane %v1774_v51, 5 }
 0x12e   : > { %v1771_v57 = vor.u32 %v1770_v55, %v1767_v52  ;;  %v779_v59 = vsel %vm6433_vm2, 0, %v778_v16  ;;  %v1758_v2 = vrot.slane %v1757_v45, 4  ;;  %v519_v5 = vmax.f32 %v487_v42, 0.0 }
 0x12f   : > { %780 = vst [vmem:[#allocation2 + $0x100] sm:$0x1] %v779_v59  ;;  %v5223_v49 = vpack.c.bf16 %v520_v56, %v520_v56  ;;  %v1779_v7 = vshrl.u32 %v1690_v44, 16  ;;  %v1782_v8 = vshll.u32 %v1690_v44, 16  ;;  %v1788_v13 = vshll.u32 %v1691_v60, 16  ;;  %v5882_v59 = vld [vmem:[#allocation11 + $0x80] sm:$0xff]  }
 0x130   : > { %v1772_v6 = vrot.slane %v1771_v57, 4  ;;  %v1763_v9 = vsel %vm6657_vm12, %v1758_v2, %v1762_v47  ;;  %v551_v22 = vpack.c.bf16 %v519_v5, %v519_v5  ;;  %v4974_v27 = vcombine.low %v1610_v61, %v1611_v62  ;;  %v2813_v47 = vld [vmem:[#allocation4 + $0x8] sm:$0x1]  ;;  %v2844_v44 = vld [vmem:[#allocation4 + $0xc] sm:$0x1]  ;;  %v5883_v60 = vld [vmem:[#allocation11 + $0xc8] sm:$0xff]  }
 0x131   : > { %2674 = vmatmul.mubr.bf16.gmra.mrb[28].mxu0 %v4973_v21  ;;  %v1092_v11 = vshrl.u32 %v5223_v49, 16  ;;  %v1095_v12 = vshll.u32 %v5223_v49, 16  ;;  %v1781_v58 = vrot.slane %v1779_v7, 4  ;;  %v1784_v30 = vrot.slane %v1782_v8, 5  ;;  %v5884_v62 = vld [vmem:[#allocation11 + $0x88] sm:$0xff]   ;;  %v5886_v8 = vld [vmem:[#allocation11] sm:$0xff]  }
 0x132   : > { %2681 = vmatprep.mubr.bf16.mxu0 %v4978_v54  ;;  %v1777_v18 = vsel %vm6657_vm12, %v1772_v6, %v1776_v43  ;;  %1010 = vst [vmem:[#allocation2 + $0x104] sm:$0xf] %v551_v22  ;;  %v1790_v25 = vrot.slane %v1788_v13, 5  ;;  %v2845_v57 = vsel %vm6862_vm13, 0, %v2844_v44  ;;  %v5881_v43 = vld [vmem:[#allocation11 + $0xc0] sm:$0xff]  }
 0x133   : > { %5630 = vmatmul.mubr.bf16.vlgmr.msra.gmra.mrb[32].mxu1 %v4981_v32  ;;  %v4982_v24 = vcombine.low %v1763_v9, %v1777_v18  ;;  %v1094_v26 = vrot.slane %v1092_v11, 7  ;;  %v1785_v41 = vor.u32 %v1784_v30, %v1781_v58  ;;  %v2814_v32 = vsel %vm6433_vm2, 0, %v2813_v47  ;;  %2846 = vst [vmem:[#allocation4 + $0xc] sm:$0x1] %v2845_v57  ;;  %5457 = vmatprep.subr.bf16.mxu1 %v5881_v43  ;;  %v5885_v6 = vld [vmem:[#allocation11 + $0x40] sm:$0xff]   ;;  %v5887_v9 = vld [vmem:[#allocation11 + $0xd0] sm:$0xff]  }
 0x134   : > { %2815 = vst [vmem:[#allocation4 + $0x8] sm:$0x1] %v2814_v32  ;;  %5458 = vmatpush3.bf16.msra.mxu1 %v5882_v59  ;;  %v2847_v13 = vld [vmem:[#allocation4 + $0x14] sm:$0x1]  ;;  %5417 = vmatprep.subr.bf16.mxu0 %v5885_v6  ;;  %v2850_v58 = vld [vmem:[#allocation4 + $0x1c] sm:$0x1] }
 0x135   : > { %5633 = vmatprep.mubr.bf16.mxu1 %v4982_v24  ;;  %v1097_v53 = vor.u32 %v1095_v12, %v1094_v26  ;;  %v1098_v63 = vrot.slane %v1094_v26, 4  ;;  %v1786_v46 = vrot.slane %v1785_v41, 4  ;;  %5459 = vmatprep.subr.bf16.mxu1 %v5883_v60  ;;  %v2816_v12 = vld [vmem:[#allocation4 + $0x10] sm:$0x1]  ;;  %v2848_v22 = vsel %vm6862_vm13, 0, %v2847_v13  ;;  %v5888_v24 = vld [vmem:[#allocation11 + $0x90] sm:$0xff]  }
 0x136   : > { %v1157_v23 = vld [vmem:[#allocation2 + $0x100] sm:$0xf]  ;;  %5418 = vmatpush3.bf16.msra.mxu0 %v5886_v8  ;;  %2849 = vst [vmem:[#allocation4 + $0x14] sm:$0x1] %v2848_v22  ;;  %v5889_v30 = vld [vmem:[#allocation11 + $0x48] sm:$0xff]   ;;  %v5901_v47 = vld [vmem:[#allocation11 + $0x60] sm:$0xff]  }
 0x137   : > { %v1158_v28 = vsel %vm6511_vm5, %v1097_v53, %v1157_v23  ;;  %v1161_v29 = vsel %vm6433_vm2, %v1098_v63, %v1160_v19  ;;  %v1791_v10 = vsel %vm6657_vm12, %v1786_v46, %v1790_v25  ;;  %v2817_v19 = vsel %vm6433_vm2, 0, %v2816_v12  ;;  %v2822_v23 = vld [vmem:[#allocation4 + $0x20] sm:$0x1]  ;;  %5419 = vmatprep.subr.bf16.mxu0 %v5889_v30  ;;  %v5902_v57 = vld [vmem:[#allocation11 + $0x20] sm:$0xff]   ;;  %v5905_v60 = vld [vmem:[#allocation11 + $0x68] sm:$0xff]  }
 0x138   : > { %1159 = vst [vmem:[#allocation2 + $0x100] sm:$0xf] %v1158_v28  ;;  %1162 = vst [vmem:[#allocation2 + $0x108] sm:$0x1] %v1161_v29  ;;  %5460 = vmatpush3.bf16.msra.mxu1 %v5884_v62  ;;  %v2851_v25 = vsel %vm6862_vm13, 0, %v2850_v58  ;;  %v5890_v28 = vld [vmem:[#allocation11 + $0x8] sm:$0xff]  }
 0x139   : > { %2682 = vmatmul.mubr.bf16.gmra.mrb[32].mxu0 %v4974_v27  ;;  %v1649_v33 = vld [vmem:[#allocation2 + $0x104] sm:$0xf]  ;;  %5461 = vmatprep.subr.bf16.mxu1 %v5887_v9  ;;  %2818 = vst [vmem:[#allocation4 + $0x10] sm:$0x1] %v2817_v19  ;;  %v2819_v27 = vld [vmem:[#allocation4 + $0x18] sm:$0x1] }
 0x13a   : > { %v4979_v0 = vcombine.low %v1648_v31, %v1649_v33  ;;  %v2820_v63 = vsel %vm6433_vm2, 0, %v2819_v27  ;;  %2852 = vst [vmem:[#allocation4 + $0x1c] sm:$0x1] %v2851_v25  ;;  %v2823_v31 = vsel %vm6433_vm2, 0, %v2822_v23  ;;  %v2853_v33 = vld [vmem:[#allocation4 + $0x24] sm:$0x1]  ;;  %5420 = vmatpush3.bf16.msra.mxu0 %v5890_v28 }
 0x13b   : > { %2821 = vst [vmem:[#allocation4 + $0x18] sm:$0x1] %v2820_v63  ;;  %2824 = vst [vmem:[#allocation4 + $0x20] sm:$0x1] %v2823_v31  ;;  %v2854_v41 = vsel %vm6862_vm13, 0, %v2853_v33  ;;  %v5903_v43 = vld [vmem:[#allocation11 + $0xf0] sm:$0xff]  }
 0x13c   : > { %2689 = vmatprep.mubr.bf16.mxu0 %v4979_v0  ;;  %5462 = vmatpush3.bf16.msra.mxu1 %v5888_v24  ;;  %v5892_v0 = vld [vmem:[#allocation11 + $0x98] sm:$0xff]   ;;  %2855 = vst [vmem:[#allocation4 + $0x24] sm:$0x1] %v2854_v41  ;;  %v2810_v46 = vld [vmem:[#allocation4] sm:$0x1]  ;;  %v5912_v13 = vld [vmem:[#allocation11 + $0x1c0] sm:$0xff]  }
 0x13d   : > { %v5904_v59 = vld [vmem:[#allocation11 + $0xb0] sm:$0xff]   ;;  %v2859_v62 = vld [vmem:[#allocation4 + $0x34] sm:$0x1]  ;;  %v5908_v8 = vld [vmem:[#allocation11 + $0xb8] sm:$0xff]  }
 0x13e   : > { %v2860_v6 = vsel %vm6862_vm13, 0, %v2859_v62  ;;  %v5909_v9 = vld [vmem:[#allocation11 + $0x70] sm:$0xff]   ;;  %v2862_v19 = vld [vmem:[#allocation4 + $0x3c] sm:$0x1]  ;;  %v5914_v27 = vld [vmem:[#allocation11 + $0x78] sm:$0xff]  }
 0x13f   : > { %v1692_v14 = vld [vmem:[#allocation2 + $0x100] sm:$0xf]  ;;  %v1693_v35 = vld [vmem:[#allocation2 + $0x108] sm:$0x1]  ;;  %2861 = vst [vmem:[#allocation4 + $0x34] sm:$0x1] %v2860_v6 }
 0x140   : > { %v1613_v36 = vld [vmem:[#allocation2 + $0x100] sm:$0xf]  ;;  %v1793_v37 = vshrl.u32 %v1692_v14, 16  ;;  %v1796_v40 = vshll.u32 %v1692_v14, 16  ;;  %v1802_v42 = vshll.u32 %v1693_v35, 16  ;;  %v5915_v63 = vld [vmem:[#allocation11 + $0x38] sm:$0xff]  }
 0x141   : > { %v4975_v3 = vcombine.low %v1612_v34, %v1613_v36  ;;  %v5891_v34 = vld [vmem:[#allocation11 + $0xd8] sm:$0xff]   ;;  %v5893_v14 = vld [vmem:[#allocation11 + $0x50] sm:$0xff]   ;;  %v5895_v36 = vld [vmem:[#allocation11 + $0xe0] sm:$0xff]  }
 0x142   : > { %v1795_v20 = vrot.slane %v1793_v37, 4  ;;  %v1798_v39 = vrot.slane %v1796_v40, 5  ;;  %v1804_v38 = vrot.slane %v1802_v42, 5  ;;  %5463 = vmatprep.subr.bf16.mxu1 %v5891_v34  ;;  %v5894_v35 = vld [vmem:[#allocation11 + $0x10] sm:$0xff]   ;;  %5421 = vmatprep.subr.bf16.mxu0 %v5893_v14  ;;  %v5896_v37 = vld [vmem:[#allocation11 + $0xa0] sm:$0xff]   ;;  %v5897_v42 = vld [vmem:[#allocation11 + $0x58] sm:$0xff]  }
 0x143   : > { %2690 = vmatmul.mubr.bf16.gmra.mrb[36].mxu0 %v4975_v3  ;;  %5464 = vmatpush3.bf16.msra.mxu1 %v5892_v0  ;;  %v2841_v3 = vld [vmem:[#allocation4 + $0x4] sm:$0x1]  ;;  %v2834_v30 = vld [vmem:[#allocation4 + $0x40] sm:$0x1]  ;;  %v5920_v33 = vld [vmem:[#allocation11 + $0x140] sm:$0xff]  }
 0x144   : > { %v1799_v15 = vor.u32 %v1798_v39, %v1795_v20  ;;  %5422 = vmatpush3.bf16.msra.mxu0 %v5894_v35  ;;  %5465 = vmatprep.subr.bf16.mxu1 %v5895_v36  ;;  %v5898_v39 = vld [vmem:[#allocation11 + $0x18] sm:$0xff]   ;;  %v5911_v12 = vld [vmem:[#allocation11 + $0x30] sm:$0xff]   ;;  %v2835_v28 = vsel %vm6433_vm2, 0, %v2834_v30 }
 0x145   : > { %5423 = vmatprep.subr.bf16.mxu0 %v5897_v42  ;;  %2836 = vst [vmem:[#allocation4 + $0x40] sm:$0x1] %v2835_v28 }
 0x146   : > { %v1800_v48 = vrot.slane %v1799_v15, 4 }
 0x147   : > { %5466 = vmatpush3.bf16.msra.mxu1 %v5896_v37 }
 0x148   : > { %v1805_v51 = vsel %vm6657_vm12, %v1800_v48, %v1804_v38  ;;  %v5900_v48 = vld [vmem:[#allocation11 + $0xa8] sm:$0xff]   ;;  %5424 = vmatpush3.bf16.msra.mxu0 %v5898_v39 }
 0x149   : > { %v4983_v16 = vcombine.low %v1791_v10, %v1805_v51  ;;  %v5899_v10 = vld [vmem:[#allocation11 + $0xe8] sm:$0xff]   ;;  %v2842_v51 = vsel %vm6862_vm13, 0, %v2841_v3  ;;  %5425 = vmatprep.subr.bf16.mxu0 %v5901_v47 }
 0x14a   : > { %2843 = vst [vmem:[#allocation4 + $0x4] sm:$0x1] %v2842_v51  ;;  %5467 = vmatprep.subr.bf16.mxu1 %v5899_v10 }
 0x14b   : > { %5634 = vmatmul.mubr.bf16.gmra.mrb[36].mxu1 %v4983_v16 }
 0x14c   : > { %5468 = vmatpush3.bf16.msra.mxu1 %v5900_v48  ;;  %5426 = vmatpush3.bf16.msra.mxu0 %v5902_v57 }
 0x14d   : > { %5469 = vmatprep.subr.bf16.mxu1 %v5903_v43  ;;  %5427 = vmatprep.subr.bf16.mxu0 %v5905_v60 }
 0x150   : > { %5470 = vmatpush3.bf16.msra.mxu1 %v5904_v59 }
 0x18d   : > { %v5261_v4 = vpop.f32.mrb[0].mxu1 }
 0x18e   : > { %v5262_v21 = vpop.f32.mrb[1].mxu1 }
 0x18f   : > { %v6856_v52 = vadd.f32 %v5262_v21, %v5261_v4  ;;  %v5264_v55 = vpop.f32.mrb[2].mxu1  ;;  %v2811_v4 = vsel %vm6433_vm2, 0, %v2810_v46 }
 0x190   : > { %v5265_v54 = vpop.f32.mrb[3].mxu1  ;;  %2812 = vst [vmem:[#allocation4] sm:$0x1] %v2811_v4 }
 0x191   : > { %v6858_v45 = vadd.f32 %v5265_v54, %v5264_v55  ;;  %v2825_v55 = vld [vmem:[#allocation4 + $0x28] sm:$0x1]  ;;  %v2856_v54 = vld [vmem:[#allocation4 + $0x2c] sm:$0x1] }
 0x192   : > { %v2826_v44 = vsel %vm6433_vm2, 0, %v2825_v55  ;;  %v2857_v32 = vsel %vm6862_vm13, 0, %v2856_v54 }
 0x193   : > { %2827 = vst [vmem:[#allocation4 + $0x28] sm:$0x1] %v2826_v44  ;;  %2858 = vst [vmem:[#allocation4 + $0x2c] sm:$0x1] %v2857_v32 }
 0x19b   : > { %v5267_v61 = vpop.f32.mrb[4].mxu1 }
 0x19c   : > { %v5268_v2 = vpop.f32.mrb[5].mxu1 }
 0x19d   : > { %v6871_v49 = vadd.f32 %v5268_v2, %v5267_v61  ;;  %v5270_v5 = vpop.f32.mrb[6].mxu1  ;;  %v5611_v18 = vpop.f32.mrb[4].mxu0  ;;  %v2828_v61 = vld [vmem:[#allocation4 + $0x30] sm:$0x1]  ;;  %v5906_v2 = vld [vmem:[#allocation11 + $0x28] sm:$0xff]  }
 0x19e   : > { %v5271_v7 = vpop.f32.mrb[7].mxu1  ;;  %5689 = vst [vmem:[%s6879_s18 + $0x30] sm:$0xff] %v5611_v18  ;;  %v691_v26 = vpop.f32.mrb[5].mxu0  ;;  %5428 = vmatpush3.bf16.msra.mxu0 %v5906_v2  ;;  %v2831_v18 = vld [vmem:[#allocation4 + $0x38] sm:$0x1] }
 0x19f   : > { %v6873_v11 = vadd.f32 %v5271_v7, %v5270_v5  ;;  %5695 = vst [vmem:[%s6879_s18 + $0x20] sm:$0xff] %v691_v26  ;;  %v5612_v53 = vpop.f32.mrb[6].mxu0  ;;  %v2829_v5 = vsel %vm6433_vm2, 0, %v2828_v61  ;;  %v5907_v7 = vld [vmem:[#allocation11 + $0xf8] sm:$0xff]   ;;  %5429 = vmatprep.subr.bf16.mxu0 %v5909_v9  ;;  %v2832_v24 = vsel %vm6433_vm2, 0, %v2831_v18  ;;  %v2863_v26 = vsel %vm6862_vm13, 0, %v2862_v19 }
 0x1a0   : > { %5701 = vst [vmem:[%s6879_s18 + $0x38] sm:$0xff] %v5612_v53  ;;  %v694_v29 = vpop.f32.mrb[7].mxu0  ;;  %2830 = vst [vmem:[#allocation4 + $0x30] sm:$0x1] %v2829_v5  ;;  %5471 = vmatprep.subr.bf16.mxu1 %v5907_v7  ;;  %v2865_v53 = vld [vmem:[#allocation4 + $0x44] sm:$0x1] }
 0x1a1   : > { %5707 = vst [vmem:[%s6879_s18 + $0x28] sm:$0xff] %v694_v29  ;;  %5472 = vmatpush3.bf16.msra.mxu1 %v5908_v8  ;;  %2833 = vst [vmem:[#allocation4 + $0x38] sm:$0x1] %v2832_v24  ;;  %v2866_v31 = vsel %vm6862_vm13, 0, %v2865_v53  ;;  %v2837_v9 = vld [vmem:[#allocation4 + $0x48] sm:$0x1] }
 0x1a2   : > { %5430 = vmatpush3.bf16.msra.mxu0 %v5911_v12  ;;  %5537 = vmatprep.subr.bf16.mxu1 %v5912_v13  ;;  %2864 = vst [vmem:[#allocation4 + $0x3c] sm:$0x1] %v2863_v26  ;;  %2867 = vst [vmem:[#allocation4 + $0x44] sm:$0x1] %v2866_v31  ;;  %v2868_v12 = vld [vmem:[#allocation4 + $0x4c] sm:$0x1] }
 0x1a3   : > { %5431 = vmatprep.subr.bf16.mxu0 %v5914_v27 }
 0x1a6   : > { %5432 = vmatpush3.bf16.msra.mxu0 %v5915_v63 }
 0x1a7   : > { %5497 = vmatprep.subr.bf16.mxu0 %v5920_v33 }
 0x1a8   : > { %v5273_v40 = vpop.f32.mrb[8].mxu1 }
 0x1a9   : > { %v5274_v20 = vpop.f32.mrb[9].mxu1 }
 0x1aa   : > { %v6893_v38 = vadd.f32 %v5274_v20, %v5273_v40  ;;  %v5276_v15 = vpop.f32.mrb[10].mxu1 }
 0x1ab   : > { %v5277_v16 = vpop.f32.mrb[11].mxu1 }
 0x1ac   : > { %v6899_v21 = vadd.f32 %v5277_v16, %v5276_v15 }
 0x1b5   : > { %v5279_v22 = vpop.f32.mrb[12].mxu1 }
 0x1b6   : > { %v5280_v58 = vpop.f32.mrb[13].mxu1 }
 0x1b7   : > { %v6913_v25 = vadd.f32 %v5280_v58, %v5279_v22  ;;  %v5282_v23 = vpop.f32.mrb[14].mxu1 }
 0x1b8   : > { %v5283_v29 = vpop.f32.mrb[15].mxu1 }
 0x1b9   : > { %v6919_v34 = vadd.f32 %v5283_v29, %v5282_v23 }
 0x1bc   : > { %v5301_v0 = vpop.f32.mrb[8].mxu0 }
 0x1bd   : > { %v5302_v41 = vpop.f32.mrb[9].mxu0 }
 0x1be   : > { %v5303_v14 = vadd.f32 %v5302_v41, %v5301_v0  ;;  %v5304_v35 = vpop.f32.mrb[10].mxu0 }
 0x1bf   : > { %v5305_v36 = vpop.f32.mrb[11].mxu0 }
 0x1c0   : > { %v2538_v37 = vadd.f32 %v5303_v14, %v6856_v52  ;;  %v5306_v40 = vadd.f32 %v5305_v36, %v5304_v35 }
 0x1c2   : > { %v2541_v42 = vadd.f32 %v5306_v40, %v6858_v45 }
 0x1c6   : > { %v5341_v3 = vpop.f32.mrb[16].mxu1 }
 0x1c7   : > { %v5342_v46 = vpop.f32.mrb[17].mxu1 }
 0x1c8   : > { %v5343_v20 = vadd.f32 %v5342_v46, %v5341_v3  ;;  %v5344_v39 = vpop.f32.mrb[18].mxu1 }
 0x1c9   : > { %v5345_v15 = vpop.f32.mrb[19].mxu1 }
 0x1ca   : > { %v2603_v10 = vadd.f32 %v5343_v20, %v2538_v37  ;;  %v5346_v48 = vadd.f32 %v5345_v15, %v5344_v39 }
 0x1cc   : > { %v2606_v51 = vadd.f32 %v5346_v48, %v2541_v42 }
 0x1cf   : > { %v5307_v16 = vpop.f32.mrb[12].mxu0 }
 0x1d0   : > { %v5308_v4 = vpop.f32.mrb[13].mxu0 }
 0x1d1   : > { %v5309_v55 = vadd.f32 %v5308_v4, %v5307_v16  ;;  %v5310_v54 = vpop.f32.mrb[14].mxu0 }
 0x1d2   : > { %v5311_v47 = vpop.f32.mrb[15].mxu0 }
 0x1d3   : > { %v2546_v44 = vadd.f32 %v5309_v55, %v6871_v49  ;;  %v5312_v32 = vadd.f32 %v5311_v47, %v5310_v54  ;;  %v2838_v49 = vsel %vm6433_vm2, 0, %v2837_v9 }
 0x1d4   : > { %2839 = vst [vmem:[#allocation4 + $0x48] sm:$0x1] %v2838_v49 }
 0x1d5   : > { %v2549_v52 = vadd.f32 %v5312_v32, %v6873_v11  ;;  %v2869_v11 = vsel %vm6862_vm13, 0, %v2868_v12 }
 0x1d6   : > { %2870 = vst [vmem:[#allocation4 + $0x4c] sm:$0x1] %v2869_v11 }
 0x1d9   : > { %v5347_v57 = vpop.f32.mrb[20].mxu1 }
 0x1da   : > { %v5348_v45 = vpop.f32.mrb[21].mxu1 }
 0x1db   : > { %v5349_v43 = vadd.f32 %v5348_v45, %v5347_v57  ;;  %v5350_v59 = vpop.f32.mrb[22].mxu1 }
 0x1dc   : > { %v5351_v60 = vpop.f32.mrb[23].mxu1 }
 0x1dd   : > { %v2611_v61 = vadd.f32 %v5349_v43, %v2546_v44  ;;  %v5352_v62 = vadd.f32 %v5351_v60, %v5350_v59  ;;  %v3056_v60 = vld [vmem:[#allocation4] sm:$0xf] }
 0x1de   : > { %v3073_v9 = vshrl.u32 %v3056_v60, 16  ;;  %v3076_v12 = vshll.u32 %v3056_v60, 16 }
 0x1df   : > { %v6925_v2 = vadd.f32 %v5352_v62, %v2549_v52  ;;  %v6946_v52 = vld [vmem:[%s7289_s3] ss:$0 sm:$0xff] }
 0x1e3   : > { %v5313_v5 = vpop.f32.mrb[16].mxu0 }
 0x1e4   : > { %v5314_v6 = vpop.f32.mrb[17].mxu0 }
 0x1e5   : > { %v5315_v7 = vadd.f32 %v5314_v6, %v5313_v5  ;;  %v5316_v8 = vpop.f32.mrb[18].mxu0 }
 0x1e6   : > { %v5317_v13 = vpop.f32.mrb[19].mxu0 }
 0x1e7   : > { %v2554_v18 = vadd.f32 %v5315_v7, %v6893_v38  ;;  %v5318_v19 = vadd.f32 %v5317_v13, %v5316_v8 }
 0x1e9   : > { %v2557_v22 = vadd.f32 %v5318_v19, %v6899_v21 }
 0x1ed   : > { %v5353_v24 = vpop.f32.mrb[24].mxu1 }
 0x1ee   : > { %v5354_v26 = vpop.f32.mrb[25].mxu1 }
 0x1ef   : > { %v5355_v27 = vadd.f32 %v5354_v26, %v5353_v24  ;;  %v5356_v58 = vpop.f32.mrb[26].mxu1 }
 0x1f0   : > { %v5357_v30 = vpop.f32.mrb[27].mxu1 }
 0x1f1   : > { %v6933_v53 = vadd.f32 %v5355_v27, %v2554_v18  ;;  %v5358_v63 = vadd.f32 %v5357_v30, %v5356_v58 }
 0x1f3   : > { %v6935_v23 = vadd.f32 %v5358_v63, %v2557_v22 }
 0x1f4   : > { %v5319_v28 = vpop.f32.mrb[20].mxu0 }
 0x1f5   : > { %v5320_v56 = vpop.f32.mrb[21].mxu0 }
 0x1f6   : > { %v5321_v29 = vadd.f32 %v5320_v56, %v5319_v28  ;;  %v5322_v31 = vpop.f32.mrb[22].mxu0  ;;  %v6961_v28 = vrot.slane %v3073_v9, 4  ;;  %v6963_v56 = vrot.slane %v3076_v12, 5 }
 0x1f7   : > { %v5323_v38 = vpop.f32.mrb[23].mxu0 }
 0x1f8   : > { %v2562_v33 = vadd.f32 %v5321_v29, %v6913_v25  ;;  %v5324_v0 = vadd.f32 %v5323_v38, %v5322_v31 }
 0x1fa   : > { %v2565_v21 = vadd.f32 %v5324_v0, %v6919_v34 }
 0x1fc   : > { %v5381_v41 = vpop.f32.mrb[24].mxu0 }
 0x1fd   : > { %v5382_v14 = vpop.f32.mrb[25].mxu0 }
 0x1fe   : > { %v5359_v35 = vpop.f32.mrb[28].mxu1  ;;  %v5383_v36 = vadd.f32 %v5382_v14, %v5381_v41  ;;  %v5384_v37 = vpop.f32.mrb[26].mxu0 }
 0x1ff   : > { %v5360_v40 = vpop.f32.mrb[29].mxu1  ;;  %v5385_v42 = vpop.f32.mrb[27].mxu0 }
 0x200   : > { %v5361_v3 = vadd.f32 %v5360_v40, %v5359_v35  ;;  %v5362_v46 = vpop.f32.mrb[30].mxu1  ;;  %v5386_v20 = vadd.f32 %v5385_v42, %v5384_v37  ;;  %v2668_v39 = vadd.f32 %v5383_v36, %v2603_v10  ;;  %v6969_v37 = vld [vmem:[#allocation4 + $0x4] sm:$0x1]  ;;  %v2972_v40 = vld [vmem:[#allocation4 + $0x8] sm:$0xf] }
 0x201   : > { %v5363_v15 = vpop.f32.mrb[31].mxu1 }
 0x202   : > { %v6939_v48 = vadd.f32 %v5361_v3, %v2562_v33  ;;  %v5364_v16 = vadd.f32 %v5363_v15, %v5362_v46  ;;  %v2671_v4 = vadd.f32 %v5386_v20, %v2606_v51  ;;  %v6951_v51 = vld [vmem:[%s7290_s4] ss:$0 sm:$0xff]  ;;  %v3079_v46 = vor.u32 %v6963_v56, %v6961_v28 }
 0x204   : > { %v6941_v25 = vadd.f32 %v5364_v16, %v2565_v21  ;;  %v5387_v55 = vpop.f32.mrb[28].mxu0  ;;  %v2975_v16 = vld [vmem:[#allocation4 + $0xc] sm:$0x1] }
 0x205   : > { %v5388_v34 = vpop.f32.mrb[29].mxu0 }
 0x206   : > { %v5631_v54 = vpop.f32.mrb[32].mxu1  ;;  %v5389_v47 = vadd.f32 %v5388_v34, %v5387_v55  ;;  %v5390_v44 = vpop.f32.mrb[30].mxu0  ;;  %v2978_v34 = vld [vmem:[#allocation4 + $0x10] sm:$0xf] }
 0x207   : > { %v2732_v32 = vpop.f32.mrb[33].mxu1  ;;  %v5391_v57 = vpop.f32.mrb[31].mxu0 }
 0x208   : > { %v2733_v10 = vadd.f32 %v2732_v32, %v2668_v39  ;;  %v5632_v45 = vpop.f32.mrb[34].mxu1  ;;  %v2676_v43 = vadd.f32 %v5389_v47, %v2611_v61  ;;  %v5392_v59 = vadd.f32 %v5391_v57, %v5390_v44  ;;  %v3082_v44 = vshll.u32 %v6969_v37, 16 }
 0x209   : > { %v2735_v62 = vpop.f32.mrb[35].mxu1 }
 0x20a   : > { %v2770_v5 = vmul.f32 %v6946_v52, %v2733_v10  ;;  %v2736_v6 = vadd.f32 %v2735_v62, %v2671_v4  ;;  %v2741_v7 = vadd.f32 %v5631_v54, %v2676_v43  ;;  %v2679_v8 = vadd.f32 %v5392_v59, %v6925_v2  ;;  %v3610_v2 = vld [vmem:[#allocation4 + $0x48] sm:$0xf]  ;;  %v2981_v54 = vld [vmem:[#allocation4 + $0x14] sm:$0x1]  ;;  %v3611_v59 = vld [vmem:[#allocation4 + $0x4c] sm:$0x1] }
 0x20b   : > { %v3711_v41 = vshrl.u32 %v3610_v2, 16  ;;  %v3714_v20 = vshll.u32 %v3610_v2, 16  ;;  %v2990_v2 = vld [vmem:[#allocation4 + $0x20] sm:$0xf] }
 0x20c   : > { %v2785_v13 = vadd.f32 %v6951_v51, %v2770_v5  ;;  %v2771_v61 = vmul.f32 %v6946_v52, %v2736_v6  ;;  %v2772_v49 = vmul.f32 %v6946_v52, %v2741_v7  ;;  %v2744_v11 = vadd.f32 %v5632_v45, %v2679_v8  ;;  %v5393_v18 = vpop.f32.mrb[32].mxu0 }
 0x20d   : > { %v5394_v19 = vpop.f32.mrb[33].mxu0  ;;  %v3713_v32 = vrot.slane %v3711_v41, 4  ;;  %v3716_v7 = vrot.slane %v3714_v20, 5  ;;  %v3204_v41 = vld [vmem:[#allocation4] sm:$0xe] }
 0x20e   : > { %v2793_v22 = vmax.f32 %v2785_v13, 0.0  ;;  %v2786_v24 = vadd.f32 %v6951_v51, %v2771_v61  ;;  %v2787_v26 = vadd.f32 %v6951_v51, %v2772_v49  ;;  %v2773_v27 = vmul.f32 %v6946_v52, %v2744_v11  ;;  %v5396_v58 = vpop.f32.mrb[34].mxu0  ;;  %v2984_v61 = vld [vmem:[#allocation4 + $0x18] sm:$0xf]  ;;  %v2987_v49 = vld [vmem:[#allocation4 + $0x1c] sm:$0x1] }
 0x20f   : > { %v5395_v30 = vadd.f32 %v5394_v19, %v5393_v18  ;;  %v5397_v63 = vpop.f32.mrb[35].mxu0  ;;  %v3717_v37 = vor.u32 %v3716_v7, %v3713_v32  ;;  %v5074_v20 = vrot.slane %v3204_v41, 9 }
 0x210   : > { %v5224_v29 = vpack.c.bf16 %v2793_v22, %v2793_v22  ;;  %v2794_v31 = vmax.f32 %v2786_v24, 0.0  ;;  %v2795_v38 = vmax.f32 %v2787_v26, 0.0  ;;  %v2788_v33 = vadd.f32 %v6951_v51, %v2773_v27 }
 0x211   : > { %v5398_v0 = vadd.f32 %v5397_v63, %v5396_v58  ;;  %v6967_v21 = vadd.f32 %v5395_v30, %v6933_v53  ;;  %v2993_v30 = vld [vmem:[#allocation4 + $0x24] sm:$0x1] }
 0x212   : > { %v2892_v14 = vshrl.u32 %v5224_v29, 16  ;;  %v5225_v35 = vpack.c.bf16 %v2794_v31, %v2794_v31  ;;  %v5226_v36 = vpack.c.bf16 %v2795_v38, %v2795_v38  ;;  %v2796_v42 = vmax.f32 %v2788_v33, 0.0 }
 0x213   : > { %v6972_v3 = vadd.f32 %v5398_v0, %v6935_v23  ;;  %v2895_v15 = vshll.u32 %v5224_v29, 16  ;;  %v3720_v29 = vshll.u32 %v3611_v59, 16 }
 0x214   : > { %v2894_v39 = vrot.slane %v2892_v14, 7  ;;  %v2900_v53 = vshrl.u32 %v5225_v35, 16  ;;  %v2908_v4 = vshrl.u32 %v5226_v36, 16  ;;  %v2903_v55 = vshll.u32 %v5225_v35, 16  ;;  %v3205_v14 = vld [vmem:[#allocation4 + $0x4] sm:$0x1] }
 0x215   : > { %v5227_v47 = vpack.c.bf16 %v2796_v42, %v2796_v42  ;;  %v2911_v60 = vshll.u32 %v5226_v36, 16 }
 0x216   : > { %v2897_v57 = vor.u32 %v2895_v15, %v2894_v39  ;;  %v2898_v23 = vrot.slane %v2894_v39, 4  ;;  %v2902_v10 = vrot.slane %v2900_v53, 7  ;;  %v2910_v45 = vrot.slane %v2908_v4, 7  ;;  %v5399_v43 = vpop.f32.mrb[36].mxu0 }
 0x217   : > { %v2916_v62 = vshrl.u32 %v5227_v47, 16  ;;  %v2919_v5 = vshll.u32 %v5227_v47, 16  ;;  %v5400_v6 = vpop.f32.mrb[37].mxu0  ;;  %v3241_v39 = vrot.slane %v3205_v14, 5  ;;  %v7007_v53 = vrot.slane %v3720_v29, 5 }
 0x218   : > { %v2973_v8 = vsel %vm6511_vm5, %v2897_v57, %v2972_v40  ;;  %v2976_v9 = vsel %vm6433_vm2, %v2898_v23, %v2975_v16  ;;  %v2905_v12 = vor.u32 %v2903_v55, %v2902_v10  ;;  %v2906_v13 = vrot.slane %v2902_v10, 4  ;;  %v5402_v11 = vpop.f32.mrb[38].mxu0 }
 0x219   : > { %2974 = vst [vmem:[#allocation4 + $0x8] sm:$0xf] %v2973_v8  ;;  %2977 = vst [vmem:[#allocation4 + $0xc] sm:$0x1] %v2976_v9  ;;  %v2913_v18 = vor.u32 %v2911_v60, %v2910_v45  ;;  %v2914_v19 = vrot.slane %v2910_v45, 4  ;;  %v2918_v22 = vrot.slane %v2916_v62, 7  ;;  %v5401_v24 = vadd.f32 %v5400_v6, %v5399_v43 }
 0x21a   : > { %v5403_v26 = vpop.f32.mrb[39].mxu0  ;;  %v2979_v27 = vsel %vm6511_vm5, %v2905_v12, %v2978_v34  ;;  %v2982_v58 = vsel %vm6433_vm2, %v2906_v13, %v2981_v54  ;;  %v7009_v54 = vrot.slane %v3717_v37, 4  ;;  %v5913_v9 = vld [vmem:[#allocation11 + $0x180] sm:$0xff]  }
 0x21b   : > { %v5404_v63 = vadd.f32 %v5403_v26, %v5402_v11  ;;  %2980 = vst [vmem:[#allocation4 + $0x10] sm:$0xf] %v2979_v27  ;;  %2983 = vst [vmem:[#allocation4 + $0x14] sm:$0x1] %v2982_v58  ;;  %v2985_v31 = vsel %vm6511_vm5, %v2913_v18, %v2984_v61  ;;  %v2988_v38 = vsel %vm6433_vm2, %v2914_v19, %v2987_v49  ;;  %v2922_v0 = vrot.slane %v2918_v22, 4  ;;  %v5916_v11 = vld [vmem:[#allocation11 + $0x1c8] sm:$0xff]  }
 0x21c   : > { %v2921_v33 = vor.u32 %v2919_v5, %v2918_v22  ;;  %2986 = vst [vmem:[#allocation4 + $0x18] sm:$0xf] %v2985_v31  ;;  %2989 = vst [vmem:[#allocation4 + $0x1c] sm:$0x1] %v2988_v38  ;;  %v2692_v35 = vadd.f32 %v5401_v24, %v6939_v48  ;;  %v7003_v48 = vrot.slane %v3079_v46, 4 }
 0x21d   : > { %v2695_v36 = vadd.f32 %v5404_v63, %v6941_v25  ;;  %v2994_v42 = vsel %vm6433_vm2, %v2922_v0, %v2993_v30  ;;  %v7005_v25 = vrot.slane %v3082_v44, 5  ;;  %v3242_v44 = vsel %vm6996_vm0, %v5074_v20, %v3241_v39 }
 0x21e   : > { %v2991_v40 = vsel %vm6511_vm5, %v2921_v33, %v2990_v2  ;;  %2995 = vst [vmem:[#allocation4 + $0x24] sm:$0x1] %v2994_v42  ;;  %v5635_v15 = vpop.f32.mrb[36].mxu1  ;;  %v5917_v33 = vld [vmem:[#allocation11 + $0x188] sm:$0xff]  }
 0x21f   : > { %2992 = vst [vmem:[#allocation4 + $0x20] sm:$0xf] %v2991_v40  ;;  %v2748_v4 = vpop.f32.mrb[37].mxu1  ;;  %v2757_v55 = vadd.f32 %v5635_v15, %v2692_v35  ;;  %v3085_v30 = vsel %vm6657_vm12, %v7003_v48, %v7005_v25  ;;  %v5922_v40 = vld [vmem:[#allocation11 + $0x1d0] sm:$0xff]  }
 0x220   : > { %v3206_v34 = vld [vmem:[#allocation4 + $0x8] sm:$0xe]  ;;  %v2749_v47 = vadd.f32 %v2748_v4, %v6967_v21  ;;  %v5636_v32 = vpop.f32.mrb[38].mxu1  ;;  %v3207_v57 = vld [vmem:[#allocation4 + $0xc] sm:$0x1]  ;;  %v5923_v48 = vld [vmem:[#allocation11 + $0x190] sm:$0xff]  }
 0x221   : > { %v5075_v23 = vrot.slane %v3206_v34, 9  ;;  %v3058_v10 = vld [vmem:[#allocation4 + $0x8] sm:$0xf]  ;;  %v2751_v45 = vpop.f32.mrb[39].mxu1  ;;  %v2776_v28 = vmul.f32 %v6946_v52, %v2757_v55  ;;  %v2760_v56 = vadd.f32 %v5636_v32, %v2695_v36  ;;  %v3245_v43 = vrot.slane %v3207_v57, 5  ;;  %v5921_v57 = vld [vmem:[#allocation11 + $0x100] sm:$0xff]  }
 0x222   : > { %v5910_v46 = vld [vmem:[#allocation4 + $0x8] ss:$8 sps:$4 sm:$0xff]   ;;  %v2774_v59 = vmul.f32 %v6946_v52, %v2749_v47  ;;  %v2752_v60 = vadd.f32 %v2751_v45, %v6972_v3  ;;  %v3059_v62 = vld [vmem:[#allocation4 + $0xc] sm:$0x1]  ;;  %v3087_v5 = vshrl.u32 %v3058_v10, 16  ;;  %v3090_v21 = vshll.u32 %v3058_v10, 16 }
 0x223   : > { %v2791_v6 = vadd.f32 %v6951_v51, %v2776_v28  ;;  %v2777_v7 = vmul.f32 %v6946_v52, %v2760_v56  ;;  %4537 = vmatprep.mubr.bf16.mxu1 %v5910_v46  ;;  %v3246_v8 = vsel %vm6996_vm0, %v5075_v23, %v3245_v43  ;;  %v3096_v12 = vshll.u32 %v3059_v62, 16  ;;  %v3208_v27 = vld [vmem:[#allocation4 + $0x10] sm:$0xe]  ;;  %v3210_v63 = vld [vmem:[#allocation4 + $0x18] sm:$0xe] }
 0x224   : > { %v2789_v13 = vadd.f32 %v6951_v51, %v2774_v59  ;;  %v2775_v61 = vmul.f32 %v6946_v52, %v2752_v60  ;;  %v5082_v49 = vcombine.low %v3242_v44, %v3246_v8  ;;  %v3089_v3 = vrot.slane %v3087_v5, 4  ;;  %v3209_v52 = vld [vmem:[#allocation4 + $0x14] sm:$0x1]  ;;  %v3211_v41 = vld [vmem:[#allocation4 + $0x1c] sm:$0x1] }
 0x225   : > { %v2799_v19 = vmax.f32 %v2791_v6, 0.0  ;;  %v2792_v22 = vadd.f32 %v6951_v51, %v2777_v7  ;;  %v3092_v24 = vrot.slane %v3090_v21, 5  ;;  %v3098_v26 = vrot.slane %v3096_v12, 5  ;;  %v3008_v34 = vld [vmem:[#allocation4 + $0x38] sm:$0xf]  ;;  %v5926_v21 = vld [vmem:[#allocation11 + $0x1d8] sm:$0xff]  }
 0x226   : > { %v5919_v18 = vld [vmem:[#allocation4 + $0x18] ss:$8 sps:$4 sm:$0xff]   ;;  %v2797_v58 = vmax.f32 %v2789_v13, 0.0  ;;  %v2790_v2 = vadd.f32 %v6951_v51, %v2775_v61  ;;  %4538 = vmatmul.mubr.bf16.vlgmr.msra.gmra.mrb[40].mxu1 %v5082_v49  ;;  %v5076_v29 = vrot.slane %v3208_v27, 9  ;;  %v3249_v14 = vrot.slane %v3209_v52, 5  ;;  %v5927_v52 = vld [vmem:[#allocation11 + $0x198] sm:$0xff]  }
 0x227   : > { %v5230_v31 = vpack.c.bf16 %v2799_v19, %v2799_v19  ;;  %v2800_v38 = vmax.f32 %v2792_v22, 0.0  ;;  %5538 = vmatpush3.bf16.msra.mxu1 %v5913_v9  ;;  %v3093_v0 = vor.u32 %v3092_v24, %v3089_v3  ;;  %4545 = vmatprep.mubr.bf16.mxu1 %v5919_v18  ;;  %v5077_v51 = vrot.slane %v3210_v63, 9  ;;  %v3011_v47 = vld [vmem:[#allocation4 + $0x3c] sm:$0x1]  ;;  %v2996_v23 = vld [vmem:[#allocation4 + $0x28] sm:$0xf] }
 0x228   : > { %v5228_v35 = vpack.c.bf16 %v2797_v58, %v2797_v58  ;;  %v2798_v36 = vmax.f32 %v2790_v2, 0.0  ;;  %5539 = vmatprep.subr.bf16.mxu1 %v5916_v11  ;;  %v3253_v37 = vrot.slane %v3211_v41, 5  ;;  %v3250_v32 = vsel %vm6996_vm0, %v5076_v29, %v3249_v14  ;;  %v2999_v10 = vld [vmem:[#allocation4 + $0x2c] sm:$0x1]  ;;  %v5924_v44 = vld [vmem:[#allocation11 + $0x148] sm:$0xff]   ;;  %v5930_v41 = vld [vmem:[#allocation11 + $0x150] sm:$0xff]  }
 0x229   : > { %v2940_v42 = vshrl.u32 %v5230_v31, 16  ;;  %v2943_v20 = vshll.u32 %v5230_v31, 16  ;;  %v5231_v39 = vpack.c.bf16 %v2800_v38, %v2800_v38  ;;  %v3094_v15 = vrot.slane %v3093_v0, 4  ;;  %v3014_v62 = vld [vmem:[#allocation4 + $0x40] sm:$0xf]  ;;  %v5925_v22 = vld [vmem:[#allocation11 + $0x108] sm:$0xff]  }
 0x22a   : > { %v2924_v25 = vshrl.u32 %v5228_v35, 16  ;;  %v2927_v4 = vshll.u32 %v5228_v35, 16  ;;  %v5229_v55 = vpack.c.bf16 %v2798_v36, %v2798_v36  ;;  %v3002_v6 = vld [vmem:[#allocation4 + $0x30] sm:$0xf]  ;;  %v3005_v7 = vld [vmem:[#allocation4 + $0x34] sm:$0x1]  ;;  %v3254_v49 = vsel %vm6996_vm0, %v5077_v51, %v3253_v37 }
 0x22b   : > { %v2942_v45 = vrot.slane %v2940_v42, 7  ;;  %v2948_v28 = vshrl.u32 %v5231_v39, 16  ;;  %v2951_v56 = vshll.u32 %v5231_v39, 16  ;;  %5540 = vmatpush3.bf16.msra.mxu1 %v5917_v33  ;;  %v3099_v46 = vsel %vm6657_vm12, %v3094_v15, %v3098_v26  ;;  %v3017_v13 = vld [vmem:[#allocation4 + $0x44] sm:$0x1]  ;;  %v5932_v14 = vld [vmem:[#allocation11 + $0x1e0] sm:$0xff]  }
 0x22c   : > { %v2926_v43 = vrot.slane %v2924_v25, 7  ;;  %v2932_v59 = vshrl.u32 %v5229_v55, 16  ;;  %v2935_v60 = vshll.u32 %v5229_v55, 16  ;;  %v5070_v5 = vcombine.low %v3085_v30, %v3099_v46  ;;  %5541 = vmatprep.subr.bf16.mxu1 %v5922_v40  ;;  %v5918_v61 = vld [vmem:[#allocation4] ss:$8 sps:$4 sm:$0xff]   ;;  %v5933_v42 = vld [vmem:[#allocation11 + $0x1a0] sm:$0xff]  }
 0x22d   : > { %v2945_v8 = vor.u32 %v2943_v20, %v2942_v45  ;;  %v2946_v9 = vrot.slane %v2942_v45, 4  ;;  %v2950_v12 = vrot.slane %v2948_v28, 7  ;;  %v5083_v19 = vcombine.low %v3250_v32, %v3254_v49  ;;  %v3060_v24 = vld [vmem:[#allocation4 + $0x10] sm:$0xf]  ;;  %v3061_v26 = vld [vmem:[#allocation4 + $0x14] sm:$0x1] }
 0x22e   : > { %v2929_v11 = vor.u32 %v2927_v4, %v2926_v43  ;;  %v2930_v3 = vrot.slane %v2926_v43, 4  ;;  %v2934_v18 = vrot.slane %v2932_v59, 7  ;;  %4472 = vmatprep.mubr.bf16.mxu0 %v5070_v5  ;;  %v3062_v63 = vld [vmem:[#allocation4 + $0x18] sm:$0xf]  ;;  %v3063_v0 = vld [vmem:[#allocation4 + $0x1c] sm:$0x1] }
 0x22f   : > { %v3009_v27 = vsel %vm6511_vm5, %v2945_v8, %v3008_v34  ;;  %v3012_v58 = vsel %vm6433_vm2, %v2946_v9, %v3011_v47  ;;  %v2953_v2 = vor.u32 %v2951_v56, %v2950_v12  ;;  %v2954_v30 = vrot.slane %v2950_v12, 4  ;;  %4473 = vmatmul.mubr.bf16.vlgmr.msra.gmra.mrb[40].mxu0 %v5918_v61  ;;  %5542 = vmatpush3.bf16.msra.mxu1 %v5923_v48  ;;  %v3212_v40 = vld [vmem:[#allocation4 + $0x20] sm:$0xe]  ;;  %v7047_v20 = vld [vmem:[#allocation4 + $0x48] sm:$0xe]  ;;  %v5936_v34 = vld [vmem:[#allocation11 + $0x1e8] sm:$0xff]  }
 0x230   : > { %v2997_v29 = vsel %vm6511_vm5, %v2929_v11, %v2996_v23  ;;  %v3000_v31 = vsel %vm6433_vm2, %v2930_v3, %v2999_v10  ;;  %v2937_v38 = vor.u32 %v2935_v60, %v2934_v18  ;;  %v2938_v33 = vrot.slane %v2934_v18, 4  ;;  %3010 = vst [vmem:[#allocation4 + $0x38] sm:$0xf] %v3009_v27  ;;  %3013 = vst [vmem:[#allocation4 + $0x3c] sm:$0x1] %v3012_v58  ;;  %v5931_v55 = vld [vmem:[#allocation11 + $0x110] sm:$0xff]  }
 0x231   : > { %4546 = vmatmul.mubr.bf16.gmra.mrb[44].mxu1 %v5083_v19  ;;  %5498 = vmatpush3.bf16.msra.mxu0 %v5921_v57  ;;  %2998 = vst [vmem:[#allocation4 + $0x28] sm:$0xf] %v2997_v29  ;;  %3001 = vst [vmem:[#allocation4 + $0x2c] sm:$0x1] %v3000_v31  ;;  %v3015_v35 = vsel %vm6511_vm5, %v2953_v2, %v3014_v62  ;;  %v3018_v36 = vsel %vm6433_vm2, %v2954_v30, %v3017_v13  ;;  %v3101_v51 = vshrl.u32 %v3060_v24, 16  ;;  %v5934_v43 = vld [vmem:[#allocation11 + $0x158] sm:$0xff]  }
 0x232   : > { %5499 = vmatprep.subr.bf16.mxu0 %v5924_v44  ;;  %5543 = vmatprep.subr.bf16.mxu1 %v5926_v21  ;;  %v3104_v37 = vshll.u32 %v3060_v24, 16  ;;  %v3003_v39 = vsel %vm6511_vm5, %v2937_v38, %v3002_v6  ;;  %v3006_v15 = vsel %vm6433_vm2, %v2938_v33, %v3005_v7  ;;  %3016 = vst [vmem:[#allocation4 + $0x40] sm:$0xf] %v3015_v35  ;;  %3019 = vst [vmem:[#allocation4 + $0x44] sm:$0x1] %v3018_v36  ;;  %v5935_v21 = vld [vmem:[#allocation11 + $0x118] sm:$0xff]  }
 0x233   : > { %v3110_v48 = vshll.u32 %v3061_v26, 16  ;;  %v3115_v25 = vshrl.u32 %v3062_v63, 16  ;;  %v3213_v4 = vld [vmem:[#allocation4 + $0x24] sm:$0x1]  ;;  %v3064_v47 = vld [vmem:[#allocation4 + $0x20] sm:$0xf]  ;;  %5544 = vmatpush3.bf16.msra.mxu1 %v5927_v52 }
 0x234   : > { %3004 = vst [vmem:[#allocation4 + $0x30] sm:$0xf] %v3003_v39  ;;  %3007 = vst [vmem:[#allocation4 + $0x34] sm:$0x1] %v3006_v15  ;;  %v3103_v32 = vrot.slane %v3101_v51, 4  ;;  %v3106_v57 = vrot.slane %v3104_v37, 5  ;;  %5545 = vmatprep.subr.bf16.mxu1 %v5932_v14 }
 0x235   : > { %v3118_v23 = vshll.u32 %v3062_v63, 16  ;;  %v3124_v10 = vshll.u32 %v3063_v0, 16  ;;  %v7053_v50 = vld [vmem:[#allocation4 + $0x24] sm:$0x1]  ;;  %5500 = vmatpush3.bf16.msra.mxu0 %v5925_v22  ;;  %v3117_v1 = vrot.slane %v3115_v25, 4  ;;  %v5121_v28 = vrot.slane %v7047_v20, 9 }
 0x236   : > { %v7055_v45 = vld [vmem:[#allocation4 + $0x10] sm:$0xf]  ;;  %v3107_v56 = vor.u32 %v3106_v57, %v3103_v32  ;;  %v3112_v46 = vrot.slane %v3110_v48, 5  ;;  %5501 = vmatprep.subr.bf16.mxu0 %v5930_v41  ;;  %v3129_v59 = vshrl.u32 %v3064_v47, 16  ;;  %v5078_v62 = vrot.slane %v3212_v40, 9  ;;  %v5937_v6 = vld [vmem:[#allocation11 + $0x1a8] sm:$0xff]  }
 0x237   : > { %v3120_v44 = vrot.slane %v3118_v23, 5  ;;  %v3126_v60 = vrot.slane %v3124_v10, 5  ;;  %v3257_v5 = vrot.slane %v3213_v4, 5  ;;  %v3132_v7 = vshll.u32 %v3064_v47, 16  ;;  %5546 = vmatpush3.bf16.msra.mxu1 %v5933_v42  ;;  %v5940_v13 = vld [vmem:[#allocation11 + $0x160] sm:$0xff]   ;;  %v5942_v61 = vld [vmem:[#allocation11 + $0x1f0] sm:$0xff]  }
 0x238   : > { %v3108_v8 = vrot.slane %v3107_v56, 4  ;;  %v3138_v12 = vshll.u32 %v7053_v50, 16  ;;  %v3613_v49 = vshrl.u32 %v7055_v45, 16  ;;  %v3214_v11 = vld [vmem:[#allocation4 + $0x28] sm:$0xe]  ;;  %5547 = vmatprep.subr.bf16.mxu1 %v5936_v34  ;;  %v3131_v27 = vrot.slane %v3129_v59, 4 }
 0x239   : > { %v3121_v9 = vor.u32 %v3120_v44, %v3117_v1  ;;  %v3215_v3 = vld [vmem:[#allocation4 + $0x2c] sm:$0x1]  ;;  %5502 = vmatpush3.bf16.msra.mxu0 %v5931_v55  ;;  %v7060_v18 = vld [vmem:[#allocation4 + $0x38] sm:$0xe]  ;;  %v5079_v22 = vrot.slane %v3214_v11, 9  ;;  %v3258_v2 = vsel %vm6996_vm0, %v5078_v62, %v3257_v5  ;;  %v5941_v52 = vld [vmem:[#allocation11 + $0x120] sm:$0xff]   ;;  %v3723_v34 = vsel %vm6657_vm12, %v7009_v54, %v7007_v53 }
 0x23a   : > { %v3261_v24 = vrot.slane %v3215_v3, 5  ;;  %5503 = vmatprep.subr.bf16.mxu0 %v5934_v43  ;;  %v3066_v26 = vld [vmem:[#allocation4 + $0x28] sm:$0xf]  ;;  %v3067_v30 = vld [vmem:[#allocation4 + $0x2c] sm:$0x1]  ;;  %v5943_v63 = vld [vmem:[#allocation11 + $0x1b0] sm:$0xff]   ;;  %v3113_v29 = vsel %vm6657_vm12, %v3108_v8, %v3112_v46 }
 0x23b   : > { %v3122_v19 = vrot.slane %v3121_v9, 4  ;;  %v5929_v58 = vld [vmem:[#allocation4 + $0x28] ss:$8 sps:$4 sm:$0xff]   ;;  %5548 = vmatpush3.bf16.msra.mxu1 %v5937_v6  ;;  %v3134_v0 = vrot.slane %v3132_v7, 5  ;;  %v7070_v41 = vld [vmem:[#allocation4 + $0x14] sm:$0x1] }
 0x23c   : > { %v5928_v38 = vld [vmem:[#allocation4 + $0x10] ss:$8 sps:$4 sm:$0xff]   ;;  %v3262_v33 = vsel %vm6996_vm0, %v5079_v22, %v3261_v24  ;;  %v5946_v35 = vld [vmem:[#allocation11 + $0x1f8] sm:$0xff]   ;;  %4553 = vmatprep.mubr.bf16.mxu1 %v5929_v58  ;;  %v3143_v37 = vshrl.u32 %v3066_v26, 16  ;;  %v3146_v40 = vshll.u32 %v3066_v26, 16  ;;  %v3152_v48 = vshll.u32 %v3067_v30, 16  ;;  %5549 = vmatprep.subr.bf16.mxu1 %v5942_v61 }
 0x23d   : > { %v3127_v31 = vsel %vm6657_vm12, %v3122_v19, %v3126_v60  ;;  %v5944_v14 = vld [vmem:[#allocation11 + $0x168] sm:$0xff]   ;;  %v5084_v51 = vcombine.low %v3258_v2, %v3262_v33  ;;  %5504 = vmatpush3.bf16.msra.mxu0 %v5935_v21  ;;  %v3135_v15 = vor.u32 %v3134_v0, %v3131_v27  ;;  %v3216_v25 = vld [vmem:[#allocation4 + $0x30] sm:$0xe]  ;;  %v3217_v4 = vld [vmem:[#allocation4 + $0x34] sm:$0x1]  ;;  %v5081_v55 = vrot.slane %v7060_v18, 9 }
 0x23e   : > { %v5071_v36 = vcombine.low %v3113_v29, %v3127_v31  ;;  %v5939_v42 = vld [vmem:[#allocation4 + $0x38] ss:$8 sps:$4 sm:$0xff]   ;;  %5505 = vmatprep.subr.bf16.mxu0 %v5940_v13  ;;  %v3145_v47 = vrot.slane %v3143_v37, 4  ;;  %v3148_v32 = vrot.slane %v3146_v40, 5  ;;  %v3219_v57 = vld [vmem:[#allocation4 + $0x3c] sm:$0x1] }
 0x23f   : > { %v3598_v39 = vld [vmem:[#allocation4 + $0x18] sm:$0xf]  ;;  %4554 = vmatmul.mubr.bf16.gmra.mrb[48].mxu1 %v5084_v51  ;;  %v5080_v23 = vrot.slane %v3216_v25, 9  ;;  %v3265_v10 = vrot.slane %v3217_v4, 5  ;;  %v5947_v1 = vld [vmem:[#allocation11 + $0x1b8] sm:$0xff]   ;;  %v3136_v56 = vrot.slane %v3135_v15, 4 }
 0x240   : > { %4480 = vmatprep.mubr.bf16.mxu0 %v5071_v36  ;;  %v5945_v50 = vld [vmem:[#allocation11 + $0x128] sm:$0xff]   ;;  %v3140_v46 = vrot.slane %v3138_v12, 5  ;;  %v3154_v44 = vrot.slane %v3152_v48, 5  ;;  %4561 = vmatprep.mubr.bf16.mxu1 %v5939_v42  ;;  %v3269_v43 = vrot.slane %v3219_v57, 5  ;;  %v5949_v60 = vld [vmem:[#allocation11 + $0x170] sm:$0xff]   ;;  %v3149_v62 = vor.u32 %v3148_v32, %v3145_v47  ;;  %v7079_v8 = vld [vmem:[#allocation11 + $0x200] sm:$0xff]  }
 0x241   : > { %4481 = vmatmul.mubr.bf16.gmra.mrb[44].mxu0 %v5928_v38  ;;  %v3599_v59 = vld [vmem:[#allocation4 + $0x1c] sm:$0x1]  ;;  %5550 = vmatpush3.bf16.msra.mxu1 %v5943_v63  ;;  %v3615_v5 = vrot.slane %v3613_v49, 4  ;;  %v3616_v21 = vshll.u32 %v7055_v45, 16  ;;  %v3622_v6 = vshll.u32 %v7070_v41, 16  ;;  %v3266_v9 = vsel %vm6996_vm0, %v5080_v23, %v3265_v10  ;;  %v5950_v58 = vld [vmem:[#allocation11 + $0x130] sm:$0xff]  }
 0x242   : > { %5506 = vmatpush3.bf16.msra.mxu0 %v5941_v52  ;;  %v3068_v7 = vld [vmem:[#allocation4 + $0x30] sm:$0xf]  ;;  %v3270_v12 = vsel %vm6996_vm0, %v5081_v55, %v3269_v43  ;;  %v3627_v13 = vshrl.u32 %v3598_v39, 16  ;;  %v3630_v61 = vshll.u32 %v3598_v39, 16  ;;  %5551 = vmatprep.subr.bf16.mxu1 %v5946_v35  ;;  %v3069_v11 = vld [vmem:[#allocation4 + $0x34] sm:$0x1]  ;;  %v3141_v49 = vsel %vm6657_vm12, %v3136_v56, %v3140_v46 }
 0x243   : > { %5507 = vmatprep.subr.bf16.mxu0 %v5944_v14  ;;  %v3150_v45 = vrot.slane %v3149_v62, 4  ;;  %v5085_v3 = vcombine.low %v3266_v9, %v3270_v12  ;;  %v3618_v18 = vrot.slane %v3616_v21, 5  ;;  %v3636_v24 = vshll.u32 %v3599_v59, 16  ;;  %v3070_v26 = vld [vmem:[#allocation4 + $0x38] sm:$0xf]  ;;  %v5953_v33 = vld [vmem:[#allocation11 + $0x178] sm:$0xff]  }
 0x244   : > { %v3629_v19 = vrot.slane %v3627_v13, 4  ;;  %v3632_v22 = vrot.slane %v3630_v61, 5  ;;  %v3157_v27 = vshrl.u32 %v3068_v7, 16  ;;  %v3475_v2 = vld [vmem:[#allocation4 + $0x8] sm:$0xe]  ;;  %v3160_v29 = vshll.u32 %v3068_v7, 16 }
 0x245   : > { %v3155_v30 = vsel %vm6657_vm12, %v3150_v45, %v3154_v44  ;;  %v3619_v52 = vor.u32 %v3618_v18, %v3615_v5  ;;  %5552 = vmatpush3.bf16.msra.mxu1 %v5947_v1  ;;  %v3071_v63 = vld [vmem:[#allocation4 + $0x3c] sm:$0x1]  ;;  %v3166_v31 = vshll.u32 %v3069_v11, 16  ;;  %v3476_v38 = vld [vmem:[#allocation4 + $0xc] sm:$0x1]  ;;  %v3624_v41 = vrot.slane %v3622_v6, 5 }
 0x246   : > { %5508 = vmatpush3.bf16.msra.mxu0 %v5945_v50  ;;  %v5072_v0 = vcombine.low %v3141_v49, %v3155_v30  ;;  %v3633_v14 = vor.u32 %v3632_v22, %v3629_v19  ;;  %v3159_v35 = vrot.slane %v3157_v27, 4  ;;  %v3477_v36 = vld [vmem:[#allocation4 + $0x10] sm:$0xe]  ;;  %v3478_v51 = vld [vmem:[#allocation4 + $0x14] sm:$0x1]  ;;  %5661 = vmatprep.subr.bf16.mxu1 %v7079_v8  ;;  %v3638_v42 = vrot.slane %v3636_v24, 5 }
 0x247   : > { %5509 = vmatprep.subr.bf16.mxu0 %v5949_v60  ;;  %v5938_v37 = vld [vmem:[#allocation4 + $0x20] ss:$8 sps:$4 sm:$0xff]   ;;  %4562 = vmatmul.mubr.bf16.gmra.mrb[52].mxu1 %v5085_v3  ;;  %v3620_v40 = vrot.slane %v3619_v52, 4  ;;  %v3162_v39 = vrot.slane %v3160_v29, 5  ;;  %v3171_v15 = vshrl.u32 %v3070_v26, 16  ;;  %v3168_v25 = vrot.slane %v3166_v31, 5 }
 0x248   : > { %4488 = vmatprep.mubr.bf16.mxu0 %v5072_v0  ;;  %v3634_v48 = vrot.slane %v3633_v14, 4  ;;  %v3174_v4 = vshll.u32 %v3070_v26, 16  ;;  %v3180_v55 = vshll.u32 %v3071_v63, 16  ;;  %v3600_v47 = vld [vmem:[#allocation4 + $0x20] sm:$0xf]  ;;  %v5094_v23 = vrot.slane %v3475_v2, 9 }
 0x249   : > { %4489 = vmatmul.mubr.bf16.gmra.mrb[48].mxu0 %v5938_v37  ;;  %v3163_v32 = vor.u32 %v3162_v39, %v3159_v35  ;;  %v3173_v57 = vrot.slane %v3171_v15, 4  ;;  %v3509_v10 = vrot.slane %v3476_v38, 5  ;;  %v3601_v50 = vld [vmem:[#allocation4 + $0x24] sm:$0x1]  ;;  %v3625_v1 = vsel %vm6657_vm12, %v3620_v40, %v3624_v41  ;;  %v3602_v43 = vld [vmem:[#allocation4 + $0x28] sm:$0xf] }
 0x24a   : > { %v3639_v56 = vsel %vm6657_vm12, %v3634_v48, %v3638_v42  ;;  %v3176_v46 = vrot.slane %v3174_v4, 5  ;;  %5510 = vmatpush3.bf16.msra.mxu0 %v5950_v58  ;;  %v5095_v44 = vrot.slane %v3477_v36, 9  ;;  %v5954_v59 = vld [vmem:[#allocation11 + $0x138] sm:$0xff]   ;;  %v3182_v5 = vrot.slane %v3180_v55, 5  ;;  %v5951_v6 = vld [vmem:[#allocation4 + $0x10] ss:$8 sps:$4 sm:$0xff]  }
 0x24b   : > { %v5110_v60 = vcombine.low %v3625_v1, %v3639_v56  ;;  %v3164_v62 = vrot.slane %v3163_v32, 4  ;;  %v3513_v21 = vrot.slane %v3478_v51, 5  ;;  %v3603_v7 = vld [vmem:[#allocation4 + $0x2c] sm:$0x1]  ;;  %5511 = vmatprep.subr.bf16.mxu0 %v5953_v33  ;;  %v3641_v12 = vshrl.u32 %v3600_v47, 16  ;;  %v7094_v11 = vld [vmem:[#allocation11 + $0x208] sm:$0xff]  }
 0x24c   : > { %v3177_v9 = vor.u32 %v3176_v46, %v3173_v57  ;;  %v3644_v13 = vshll.u32 %v3600_v47, 16  ;;  %v3650_v61 = vshll.u32 %v3601_v50, 16  ;;  %v3327_v49 = vld [vmem:[#allocation4 + $0x8] sm:$0xf]  ;;  %v3510_v45 = vsel %vm6996_vm0, %v5094_v23, %v3509_v10  ;;  %v3328_v58 = vld [vmem:[#allocation4 + $0xc] sm:$0x1] }
 0x24d   : > { %4667 = vmatprep.mubr.bf16.mxu1 %v5110_v60  ;;  %v3514_v3 = vsel %vm6996_vm0, %v5095_v44, %v3513_v21  ;;  %v3655_v18 = vshrl.u32 %v3602_v43, 16  ;;  %v3658_v19 = vshll.u32 %v3602_v43, 16  ;;  %v3169_v22 = vsel %vm6657_vm12, %v3164_v62, %v3168_v25  ;;  %v3329_v29 = vld [vmem:[#allocation4 + $0x10] sm:$0xf]  ;;  %v7103_v31 = vld [vmem:[#allocation11 + $0x210] sm:$0xff]  }
 0x24e   : > { %v3178_v24 = vrot.slane %v3177_v9, 4  ;;  %v3643_v26 = vrot.slane %v3641_v12, 4  ;;  %v3646_v27 = vrot.slane %v3644_v13, 5  ;;  %5512 = vmatpush3.bf16.msra.mxu0 %v5954_v59  ;;  %v5102_v2 = vcombine.low %v3510_v45, %v3514_v3  ;;  %v5948_v33 = vld [vmem:[#allocation4 + $0x30] ss:$8 sps:$4 sm:$0xff]   ;;  %v7110_v59 = vld [vmem:[#allocation11 + $0x218] sm:$0xff]  }
 0x24f   : > { %4668 = vmatmul.mubr.bf16.vlgmr.msra.gmra.mrb[56].mxu1 %v5951_v6  ;;  %v3657_v30 = vrot.slane %v3655_v18, 4  ;;  %v3660_v52 = vrot.slane %v3658_v19, 5  ;;  %v3664_v63 = vshll.u32 %v3603_v7, 16  ;;  %5637 = vmatprep.subr.bf16.mxu0 %v7079_v8  ;;  %v3330_v41 = vld [vmem:[#allocation4 + $0x14] sm:$0x1]  ;;  %v3344_v14 = vshrl.u32 %v3327_v49, 16 }
 0x250   : > { %v3183_v38 = vsel %vm6657_vm12, %v3178_v24, %v3182_v5  ;;  %v3647_v0 = vor.u32 %v3646_v27, %v3643_v26  ;;  %5669 = vmatpush3.bf16.msra.mxu1 %v7079_v8  ;;  %v3347_v35 = vshll.u32 %v3327_v49, 16  ;;  %v3479_v36 = vld [vmem:[#allocation4 + $0x18] sm:$0xe]  ;;  %v3652_v37 = vrot.slane %v3650_v61, 5  ;;  %v3480_v39 = vld [vmem:[#allocation4 + $0x1c] sm:$0x1] }
 0x251   : > { %v5073_v51 = vcombine.low %v3169_v22, %v3183_v38  ;;  %v3661_v40 = vor.u32 %v3660_v52, %v3657_v30  ;;  %5662 = vmatprep.subr.bf16.mxu1 %v7094_v11  ;;  %v3353_v42 = vshll.u32 %v3328_v58, 16  ;;  %v3481_v15 = vld [vmem:[#allocation4 + $0x20] sm:$0xe]  ;;  %v3346_v25 = vrot.slane %v3344_v14, 4  ;;  %v3482_v47 = vld [vmem:[#allocation4 + $0x24] sm:$0x1] }
 0x252   : > { %v3648_v48 = vrot.slane %v3647_v0, 4  ;;  %v3349_v4 = vrot.slane %v3347_v35, 5  ;;  %v3358_v55 = vshrl.u32 %v3329_v29, 16  ;;  %v3666_v57 = vrot.slane %v3664_v63, 5  ;;  %v3604_v50 = vld [vmem:[#allocation4 + $0x30] sm:$0xf] }
 0x253   : > { %4496 = vmatprep.mubr.bf16.mxu0 %v5073_v51  ;;  %v3662_v32 = vrot.slane %v3661_v40, 4  ;;  %v3361_v23 = vshll.u32 %v3329_v29, 16  ;;  %v3367_v10 = vshll.u32 %v3330_v41, 16  ;;  %v3355_v56 = vrot.slane %v3353_v42, 5  ;;  %v3605_v43 = vld [vmem:[#allocation4 + $0x34] sm:$0x1] }
 0x254   : > { %4497 = vmatmul.mubr.bf16.gmra.mrb[52].mxu0 %v5948_v33  ;;  %5670 = vmatpush3.bf16.msra.mxu1 %v7094_v11  ;;  %v3350_v1 = vor.u32 %v3349_v4, %v3346_v25  ;;  %v3360_v46 = vrot.slane %v3358_v55, 4  ;;  %v5096_v44 = vrot.slane %v3479_v36, 9  ;;  %v3653_v60 = vsel %vm6657_vm12, %v3648_v48, %v3652_v37  ;;  %v5956_v6 = vld [vmem:[#allocation4 + $0x20] ss:$8 sps:$4 sm:$0xff]   ;;  %v3606_v7 = vld [vmem:[#allocation4 + $0x38] sm:$0xf] }
 0x255   : > { %4602 = vmatprep.mubr.bf16.mxu0 %v5102_v2  ;;  %v3667_v62 = vsel %vm6657_vm12, %v3662_v32, %v3666_v57  ;;  %v3363_v5 = vrot.slane %v3361_v23, 5  ;;  %v3517_v21 = vrot.slane %v3480_v39, 5  ;;  %5663 = vmatprep.subr.bf16.mxu1 %v7103_v31  ;;  %v3607_v9 = vld [vmem:[#allocation4 + $0x3c] sm:$0x1]  ;;  %v5097_v61 = vrot.slane %v3481_v15, 9  ;;  %v7125_v33 = vld [vmem:[#allocation11 + $0x220] sm:$0xff]  }
 0x256   : > { %v5111_v12 = vcombine.low %v3653_v60, %v3667_v62  ;;  %v3351_v13 = vrot.slane %v3350_v1, 4  ;;  %v3521_v49 = vrot.slane %v3482_v47, 5  ;;  %v3331_v45 = vld [vmem:[#allocation4 + $0x18] sm:$0xf]  ;;  %v3369_v18 = vrot.slane %v3367_v10, 5 }
 0x257   : > { %v3364_v3 = vor.u32 %v3363_v5, %v3360_v46  ;;  %v3669_v19 = vshrl.u32 %v3604_v50, 16  ;;  %v3672_v22 = vshll.u32 %v3604_v50, 16  ;;  %v3518_v24 = vsel %vm6996_vm0, %v5096_v44, %v3517_v21  ;;  %v3332_v2 = vld [vmem:[#allocation4 + $0x1c] sm:$0x1]  ;;  %v3333_v38 = vld [vmem:[#allocation4 + $0x20] sm:$0xf] }
 0x258   : > { %4675 = vmatprep.mubr.bf16.mxu1 %v5111_v12  ;;  %v3522_v26 = vsel %vm6996_vm0, %v5097_v61, %v3521_v49  ;;  %v3678_v27 = vshll.u32 %v3605_v43, 16  ;;  %v3683_v58 = vshrl.u32 %v3606_v7, 16  ;;  %5671 = vmatpush3.bf16.msra.mxu1 %v7103_v31  ;;  %v3356_v30 = vsel %vm6657_vm12, %v3351_v13, %v3355_v56  ;;  %v3334_v36 = vld [vmem:[#allocation4 + $0x24] sm:$0x1]  ;;  %v3483_v39 = vld [vmem:[#allocation4 + $0x28] sm:$0xe] }
 0x259   : > { %v3365_v52 = vrot.slane %v3364_v3, 4  ;;  %4676 = vmatmul.mubr.bf16.gmra.mrb[60].mxu1 %v5956_v6  ;;  %v3671_v63 = vrot.slane %v3669_v19, 4  ;;  %v3674_v29 = vrot.slane %v3672_v22, 5  ;;  %5664 = vmatprep.subr.bf16.mxu1 %v7110_v59  ;;  %v5103_v0 = vcombine.low %v3518_v24, %v3522_v26  ;;  %v3484_v15 = vld [vmem:[#allocation4 + $0x2c] sm:$0x1]  ;;  %v7130_v32 = vld [vmem:[#allocation11 + $0x228] sm:$0xff]  }
 0x25a   : > { %v3685_v41 = vrot.slane %v3683_v58, 4  ;;  %v3686_v14 = vshll.u32 %v3606_v7, 16  ;;  %v3692_v35 = vshll.u32 %v3607_v9, 16  ;;  %v3372_v40 = vshrl.u32 %v3331_v45, 16  ;;  %v3485_v47 = vld [vmem:[#allocation4 + $0x30] sm:$0xe] }
 0x25b   : > { %v3370_v51 = vsel %vm6657_vm12, %v3365_v52, %v3369_v18  ;;  %v3675_v37 = vor.u32 %v3674_v29, %v3671_v63  ;;  %v3375_v42 = vshll.u32 %v3331_v45, 16  ;;  %v3680_v25 = vrot.slane %v3678_v27, 5  ;;  %v3486_v1 = vld [vmem:[#allocation4 + $0x34] sm:$0x1]  ;;  %v3608_v60 = vld [vmem:[#allocation4 + $0x40] sm:$0xf] }
 0x25c   : > { %v5090_v48 = vcombine.low %v3356_v30, %v3370_v51  ;;  %v3688_v4 = vrot.slane %v3686_v14, 5  ;;  %5672 = vmatpush3.bf16.msra.mxu1 %v7110_v59  ;;  %v3381_v55 = vshll.u32 %v3332_v2, 16  ;;  %v3374_v23 = vrot.slane %v3372_v40, 4  ;;  %v3609_v61 = vld [vmem:[#allocation4 + $0x44] sm:$0x1] }
 0x25d   : > { %v3676_v57 = vrot.slane %v3675_v37, 4  ;;  %v3377_v10 = vrot.slane %v3375_v42, 5  ;;  %v3386_v50 = vshrl.u32 %v3333_v38, 16  ;;  %5665 = vmatprep.subr.bf16.mxu1 %v7125_v33  ;;  %v3694_v46 = vrot.slane %v3692_v35, 5  ;;  %v7138_v49 = vld [vmem:[#allocation11 + $0x230] sm:$0xff]  }
 0x25e   : > { %4603 = vmatmul.mubr.bf16.vlgmr.msra.gmra.mrb[56].mxu0 %v5090_v48  ;;  %v3689_v56 = vor.u32 %v3688_v4, %v3685_v41  ;;  %v3389_v44 = vshll.u32 %v3333_v38, 16  ;;  %v3395_v43 = vshll.u32 %v3334_v36, 16  ;;  %v3383_v5 = vrot.slane %v3381_v55, 5  ;;  %v5959_v26 = vld [vmem:[#allocation4 + $0x30] ss:$8 sps:$4 sm:$0xff]  }
 0x25f   : > { %4610 = vmatprep.mubr.bf16.mxu0 %v5103_v0  ;;  %5638 = vmatpush3.bf16.msra.mxu0 %v7079_v8  ;;  %v3378_v62 = vor.u32 %v3377_v10, %v3374_v23  ;;  %v3388_v21 = vrot.slane %v3386_v50, 4  ;;  %v5098_v6 = vrot.slane %v3483_v39, 9  ;;  %v3681_v7 = vsel %vm6657_vm12, %v3676_v57, %v3680_v25  ;;  %v3335_v58 = vld [vmem:[#allocation4 + $0x28] sm:$0xf]  ;;  %v3337_v2 = vld [vmem:[#allocation4 + $0x30] sm:$0xf] }
 0x260   : > { %v3690_v9 = vrot.slane %v3689_v56, 4  ;;  %5639 = vmatprep.subr.bf16.mxu0 %v7094_v11  ;;  %v3391_v12 = vrot.slane %v3389_v44, 5  ;;  %v3525_v13 = vrot.slane %v3484_v15, 5  ;;  %5673 = vmatpush3.bf16.msra.mxu1 %v7125_v33  ;;  %v5099_v3 = vrot.slane %v3485_v47, 9  ;;  %v3336_v38 = vld [vmem:[#allocation4 + $0x2c] sm:$0x1] }
 0x261   : > { %v3379_v45 = vrot.slane %v3378_v62, 4  ;;  %v3529_v8 = vrot.slane %v3486_v1, 5  ;;  %v3697_v18 = vshrl.u32 %v3608_v60, 16  ;;  %5666 = vmatprep.subr.bf16.mxu1 %v7130_v32  ;;  %v3397_v24 = vrot.slane %v3395_v43, 5  ;;  %v3338_v0 = vld [vmem:[#allocation4 + $0x34] sm:$0x1] }
 0x262   : > { %v3695_v19 = vsel %vm6657_vm12, %v3690_v9, %v3694_v46  ;;  %v3392_v22 = vor.u32 %v3391_v12, %v3388_v21  ;;  %v3700_v27 = vshll.u32 %v3608_v60, 16  ;;  %v3526_v52 = vsel %vm6996_vm0, %v5098_v6, %v3525_v13  ;;  %v3488_v39 = vld [vmem:[#allocation4 + $0x3c] sm:$0x1]  ;;  %v7153_v15 = vld [vmem:[#allocation11 + $0x238] sm:$0xff]   ;;  %v3489_v57 = vld [vmem:[#allocation4 + $0x40] sm:$0xe] }
 0x263   : > { %v5112_v30 = vcombine.low %v3681_v7, %v3695_v19  ;;  %5640 = vmatpush3.bf16.msra.mxu0 %v7094_v11  ;;  %v3530_v63 = vsel %vm6996_vm0, %v5099_v3, %v3529_v8  ;;  %v3699_v29 = vrot.slane %v3697_v18, 4  ;;  %v3384_v41 = vsel %vm6657_vm12, %v3379_v45, %v3383_v5  ;;  %v3487_v11 = vld [vmem:[#allocation4 + $0x38] sm:$0xe]  ;;  %v7155_v48 = vld [vmem:[#allocation4 + $0x4c] sm:$0x1] }
 0x264   : > { %v3393_v14 = vrot.slane %v3392_v22, 4  ;;  %5641 = vmatprep.subr.bf16.mxu0 %v7103_v31  ;;  %v3702_v35 = vrot.slane %v3700_v27, 5  ;;  %v3706_v36 = vshll.u32 %v3609_v61, 16  ;;  %5674 = vmatpush3.bf16.msra.mxu1 %v7130_v32  ;;  %v5104_v51 = vcombine.low %v3526_v52, %v3530_v63  ;;  %v3490_v23 = vld [vmem:[#allocation4 + $0x44] sm:$0x1] }
 0x265   : > { %4683 = vmatprep.mubr.bf16.mxu1 %v5112_v30  ;;  %v3400_v37 = vshrl.u32 %v3335_v58, 16  ;;  %v3403_v40 = vshll.u32 %v3335_v58, 16  ;;  %v3414_v42 = vshrl.u32 %v3337_v2, 16  ;;  %5667 = vmatprep.subr.bf16.mxu1 %v7138_v49  ;;  %v3409_v55 = vshll.u32 %v3336_v38, 16  ;;  %v3752_v46 = vld [vmem:[#allocation4 + $0x30] sm:$0xe] }
 0x266   : > { %v3398_v25 = vsel %vm6657_vm12, %v3393_v14, %v3397_v24  ;;  %4684 = vmatmul.mubr.bf16.gmra.mrb[64].mxu1 %v5959_v26  ;;  %v3703_v4 = vor.u32 %v3702_v35, %v3699_v29  ;;  %v3417_v47 = vshll.u32 %v3337_v2, 16  ;;  %v3708_v50 = vrot.slane %v3706_v36, 5  ;;  %v3753_v5 = vld [vmem:[#allocation4 + $0x34] sm:$0x1]  ;;  %v3754_v12 = vld [vmem:[#allocation4 + $0x38] sm:$0xe] }
 0x267   : > { %v5091_v10 = vcombine.low %v3384_v41, %v3398_v25  ;;  %5642 = vmatpush3.bf16.msra.mxu0 %v7103_v31  ;;  %v3402_v1 = vrot.slane %v3400_v37, 4  ;;  %v3405_v56 = vrot.slane %v3403_v40, 5  ;;  %v3416_v43 = vrot.slane %v3414_v42, 4  ;;  %v3755_v45 = vld [vmem:[#allocation4 + $0x3c] sm:$0x1] }
 0x268   : > { %v3704_v44 = vrot.slane %v3703_v4, 4  ;;  %5643 = vmatprep.subr.bf16.mxu0 %v7110_v59  ;;  %v3419_v60 = vrot.slane %v3417_v47, 5  ;;  %v3423_v62 = vshll.u32 %v3338_v0, 16  ;;  %5675 = vmatpush3.bf16.msra.mxu1 %v7138_v49  ;;  %v5100_v6 = vrot.slane %v3487_v11, 9  ;;  %v3339_v3 = vld [vmem:[#allocation4 + $0x38] sm:$0xf] }
 0x269   : > { %4611 = vmatmul.mubr.bf16.gmra.mrb[60].mxu0 %v5091_v10  ;;  %v3406_v21 = vor.u32 %v3405_v56, %v3402_v1  ;;  %v3533_v7 = vrot.slane %v3488_v39, 5  ;;  %v5101_v9 = vrot.slane %v3489_v57, 9  ;;  %5668 = vmatprep.subr.bf16.mxu1 %v7153_v15  ;;  %v3537_v61 = vrot.slane %v3490_v23, 5  ;;  %v5962_v24 = vld [vmem:[#allocation4 + $0x40] ss:$8 sps:$4 sm:$0xff]  }
 0x26a   : > { %4618 = vmatprep.mubr.bf16.mxu0 %v5104_v51  ;;  %v3709_v31 = vsel %vm6657_vm12, %v3704_v44, %v3708_v50  ;;  %v3420_v13 = vor.u32 %v3419_v60, %v3416_v43  ;;  %v3806_v8 = vrot.slane %v7155_v48, 5  ;;  %v3411_v22 = vrot.slane %v3409_v55, 5  ;;  %v3341_v52 = vld [vmem:[#allocation4 + $0x40] sm:$0xf]  ;;  %v3340_v0 = vld [vmem:[#allocation4 + $0x3c] sm:$0x1] }
 0x26b   : > { %v5113_v18 = vcombine.low %v3709_v31, %v3723_v34  ;;  %5644 = vmatpush3.bf16.msra.mxu0 %v7110_v59  ;;  %v3407_v19 = vrot.slane %v3406_v21, 4  ;;  %v5118_v26 = vrot.slane %v3752_v46, 9  ;;  %v3425_v58 = vrot.slane %v3423_v62, 5  ;;  %v3342_v41 = vld [vmem:[#allocation4 + $0x44] sm:$0x1] }
 0x26c   : > { %v3421_v27 = vrot.slane %v3420_v13, 4  ;;  %5645 = vmatprep.subr.bf16.mxu0 %v7125_v33  ;;  %v3794_v2 = vrot.slane %v3753_v5, 5  ;;  %v5119_v30 = vrot.slane %v3754_v12, 9  ;;  %5676 = vmatpush3.bf16.msra.mxu1 %v7153_v15  ;;  %v3534_v53 = vsel %vm6996_vm0, %v5100_v6, %v3533_v7  ;;  %v3746_v37 = vld [vmem:[#allocation4 + $0x18] sm:$0xe] }
 0x26d   : > { %4691 = vmatprep.mubr.bf16.mxu1 %v5113_v18  ;;  %v3538_v54 = vsel %vm6996_vm0, %v5101_v9, %v3537_v61  ;;  %v3798_v34 = vrot.slane %v3755_v45, 5  ;;  %v3428_v59 = vshrl.u32 %v3339_v3, 16  ;;  %v3412_v63 = vsel %vm6657_vm12, %v3407_v19, %v3411_v22  ;;  %v3747_v40 = vld [vmem:[#allocation4 + $0x1c] sm:$0x1]  ;;  %v3756_v4 = vld [vmem:[#allocation4 + $0x40] sm:$0xe] }
 0x26e   : > { %v3426_v29 = vsel %vm6657_vm12, %v3421_v27, %v3425_v58  ;;  %4692 = vmatmul.mubr.bf16.gmra.mrb[68].mxu1 %v5962_v24  ;;  %v3795_v38 = vsel %vm6996_vm0, %v5118_v26, %v3794_v2  ;;  %v3431_v14 = vshll.u32 %v3339_v3, 16  ;;  %v3442_v51 = vshrl.u32 %v3341_v52, 16  ;;  %v3757_v55 = vld [vmem:[#allocation4 + $0x44] sm:$0x1]  ;;  %v3744_v57 = vld [vmem:[#allocation4 + $0x10] sm:$0xe] }
 0x26f   : > { %v5092_v35 = vcombine.low %v3412_v63, %v3426_v29  ;;  %5646 = vmatpush3.bf16.msra.mxu0 %v7125_v33  ;;  %v3799_v36 = vsel %vm6996_vm0, %v5119_v30, %v3798_v34  ;;  %v3430_v11 = vrot.slane %v3428_v59, 4  ;;  %v5105_v42 = vcombine.low %v3534_v53, %v3538_v54  ;;  %v3745_v56 = vld [vmem:[#allocation4 + $0x14] sm:$0x1]  ;;  %v3750_v31 = vld [vmem:[#allocation4 + $0x28] sm:$0xe] }
 0x270   : > { %v5124_v39 = vcombine.low %v3795_v38, %v3799_v36  ;;  %5647 = vmatprep.subr.bf16.mxu0 %v7130_v32  ;;  %v3433_v48 = vrot.slane %v3431_v14, 5  ;;  %v3445_v25 = vshll.u32 %v3341_v52, 16  ;;  %v3444_v47 = vrot.slane %v3442_v51, 4  ;;  %v3751_v13 = vld [vmem:[#allocation4 + $0x2c] sm:$0x1] }
 0x271   : > { %4619 = vmatmul.mubr.bf16.gmra.mrb[64].mxu0 %v5092_v35  ;;  %v3807_v33 = vsel %vm6996_vm0, %v5121_v28, %v3806_v8  ;;  %v3437_v10 = vshll.u32 %v3340_v0, 16  ;;  %v3451_v1 = vshll.u32 %v3342_v41, 16  ;;  %v5115_v46 = vrot.slane %v3746_v37, 9  ;;  %v3748_v18 = vld [vmem:[#allocation4 + $0x20] sm:$0xe] }
 0x272   : > { %4626 = vmatprep.mubr.bf16.mxu0 %v5105_v42  ;;  %5657 = vmatprep.mubr.bf16.mxu1 %v5124_v39  ;;  %v3434_v23 = vor.u32 %v3433_v48, %v3430_v11  ;;  %v3447_v50 = vrot.slane %v3445_v25, 5  ;;  %v3782_v44 = vrot.slane %v3747_v40, 5  ;;  %v5120_v43 = vrot.slane %v3756_v4, 9 }
 0x273   : > { %5648 = vmatpush3.bf16.msra.mxu0 %v7130_v32  ;;  %v3802_v60 = vrot.slane %v3757_v55, 5  ;;  %v5114_v20 = vrot.slane %v3744_v57, 9  ;;  %v3778_v21 = vrot.slane %v3745_v56, 5  ;;  %v3439_v6 = vrot.slane %v3437_v10, 5 }
 0x274   : > { %v3435_v62 = vrot.slane %v3434_v23, 4  ;;  %v3448_v5 = vor.u32 %v3447_v50, %v3444_v47  ;;  %5649 = vmatprep.subr.bf16.mxu0 %v7138_v49  ;;  %v3453_v9 = vrot.slane %v3451_v1, 5  ;;  %v3783_v32 = vsel %vm6996_vm0, %v5115_v46, %v3782_v44 }
 0x275   : > { %v3803_v28 = vsel %vm6996_vm0, %v5120_v43, %v3802_v60  ;;  %v3779_v8 = vsel %vm6996_vm0, %v5114_v20, %v3778_v21  ;;  %v5117_v22 = vrot.slane %v3750_v31, 9  ;;  %v3790_v24 = vrot.slane %v3751_v13, 5 }
 0x276   : > { %v3449_v7 = vrot.slane %v3448_v5, 4  ;;  %v5125_v12 = vcombine.low %v3803_v28, %v3807_v33  ;;  %v3440_v61 = vsel %vm6657_vm12, %v3435_v62, %v3439_v6  ;;  %v5122_v19 = vcombine.low %v3779_v8, %v3783_v32 }
 0x277   : > { %5650 = vmatpush3.bf16.msra.mxu0 %v7138_v49  ;;  %v3749_v49 = vld [vmem:[#allocation4 + $0x24] sm:$0x1]  ;;  %v5116_v26 = vrot.slane %v3748_v18, 9  ;;  %v3791_v17 = vsel %vm6996_vm0, %v5117_v22, %v3790_v24 }
 0x278   : > { %v3454_v45 = vsel %vm6657_vm12, %v3449_v7, %v3453_v9  ;;  %5658 = vmatmul.mubr.bf16.vlgmr.msra.gmra.mrb[72].mxu1 %v5125_v12  ;;  %5651 = vmatprep.subr.bf16.mxu0 %v7153_v15  ;;  %v3786_v27 = vrot.slane %v3749_v49, 5 }
 0x279   : > { %v5093_v3 = vcombine.low %v3440_v61, %v3454_v45 }
 0x27a   : > { %v3787_v58 = vsel %vm6996_vm0, %v5116_v26, %v3786_v27 }
 0x27b   : > { %4627 = vmatmul.mubr.bf16.gmra.mrb[68].mxu0 %v5093_v3  ;;  %v5123_v2 = vcombine.low %v3787_v58, %v3791_v17 }
 0x27c   : > { %5653 = vmatprep.mubr.bf16.mxu0 %v5122_v19  ;;  %5652 = vmatpush3.bf16.msra.mxu0 %v7153_v15 }
 0x283   : > { %5654 = vmatmul.mubr.bf16.vlgmr.msra.gmra.mrb[0].mxu0 %v5123_v2 }
 0x2f9   : > { %v5473_v30 = vpop.f32.mrb[40].mxu1 }
 0x2fa   : > { %v5474_v52 = vpop.f32.mrb[41].mxu1 }
 0x2fb   : > { %v5475_v53 = vadd.f32 %v5474_v52, %v5473_v30  ;;  %v5476_v54 = vpop.f32.mrb[42].mxu1 }
 0x2fc   : > { %v5477_v34 = vpop.f32.mrb[43].mxu1 }
 0x2fd   : > { %v5478_v59 = vadd.f32 %v5477_v34, %v5476_v54 }
 0x302   : > { %v5433_v63 = vpop.f32.mrb[40].mxu0 }
 0x303   : > { %v5434_v29 = vpop.f32.mrb[41].mxu0 }
 0x304   : > { %v5479_v38 = vpop.f32.mrb[44].mxu1  ;;  %v5435_v15 = vadd.f32 %v5434_v29, %v5433_v63  ;;  %v5436_v0 = vpop.f32.mrb[42].mxu0 }
 0x305   : > { %v5480_v41 = vpop.f32.mrb[45].mxu1  ;;  %v5437_v35 = vpop.f32.mrb[43].mxu0 }
 0x306   : > { %v5481_v14 = vadd.f32 %v5480_v41, %v5479_v38  ;;  %v5482_v36 = vpop.f32.mrb[46].mxu1  ;;  %v4540_v11 = vadd.f32 %v5475_v53, %v5435_v15  ;;  %v5438_v16 = vadd.f32 %v5437_v35, %v5436_v0 }
 0x307   : > { %v5483_v51 = vpop.f32.mrb[47].mxu1 }
 0x308   : > { %v5484_v37 = vadd.f32 %v5483_v51, %v5482_v36  ;;  %v4543_v40 = vadd.f32 %v5478_v59, %v5438_v16 }
 0x312   : > { %v5485_v42 = vpop.f32.mrb[48].mxu1 }
 0x313   : > { %v5486_v48 = vpop.f32.mrb[49].mxu1 }
 0x314   : > { %v5439_v39 = vpop.f32.mrb[44].mxu0  ;;  %v5487_v4 = vadd.f32 %v5486_v48, %v5485_v42  ;;  %v5488_v55 = vpop.f32.mrb[50].mxu1 }
 0x315   : > { %v5440_v25 = vpop.f32.mrb[45].mxu0  ;;  %v5489_v33 = vpop.f32.mrb[51].mxu1 }
 0x316   : > { %v5441_v47 = vadd.f32 %v5440_v25, %v5439_v39  ;;  %v5442_v57 = vpop.f32.mrb[46].mxu0  ;;  %v5490_v10 = vadd.f32 %v5489_v33, %v5488_v55 }
 0x317   : > { %v5443_v23 = vpop.f32.mrb[47].mxu0 }
 0x318   : > { %v4548_v50 = vadd.f32 %v5481_v14, %v5441_v47  ;;  %v5444_v1 = vadd.f32 %v5443_v23, %v5442_v57 }
 0x31a   : > { %v4551_v56 = vadd.f32 %v5484_v37, %v5444_v1  ;;  %v5491_v46 = vpop.f32.mrb[52].mxu1 }
 0x31b   : > { %v5492_v44 = vpop.f32.mrb[53].mxu1 }
 0x31c   : > { %v5445_v43 = vpop.f32.mrb[48].mxu0  ;;  %v5493_v60 = vadd.f32 %v5492_v44, %v5491_v46  ;;  %v5494_v62 = vpop.f32.mrb[54].mxu1 }
 0x31d   : > { %v5446_v5 = vpop.f32.mrb[49].mxu0  ;;  %v5495_v20 = vpop.f32.mrb[55].mxu1 }
 0x31e   : > { %v5447_v21 = vadd.f32 %v5446_v5, %v5445_v43  ;;  %v5448_v28 = vpop.f32.mrb[50].mxu0  ;;  %v5496_v6 = vadd.f32 %v5495_v20, %v5494_v62 }
 0x31f   : > { %v5449_v7 = vpop.f32.mrb[51].mxu0 }
 0x320   : > { %v4556_v9 = vadd.f32 %v5487_v4, %v5447_v21  ;;  %v5450_v12 = vadd.f32 %v5449_v7, %v5448_v28 }
 0x322   : > { %v4559_v32 = vadd.f32 %v5490_v10, %v5450_v12  ;;  %v5553_v31 = vpop.f32.mrb[56].mxu1 }
 0x323   : > { %v5554_v13 = vpop.f32.mrb[57].mxu1 }
 0x324   : > { %v5555_v61 = vadd.f32 %v5554_v13, %v5553_v31  ;;  %v5556_v45 = vpop.f32.mrb[58].mxu1  ;;  %v5696_v31 = vld [vmem:[%s6879_s18 + $0x20] sm:$0xff] }
 0x325   : > { %v5557_v3 = vpop.f32.mrb[59].mxu1 }
 0x326   : > { %v5558_v8 = vadd.f32 %v5557_v3, %v5556_v45  ;;  %v5708_v3 = vld [vmem:[%s6879_s18 + $0x28] sm:$0xff] }
 0x327   : > { %v5451_v18 = vpop.f32.mrb[52].mxu0 }
 0x328   : > { %v5452_v49 = vpop.f32.mrb[53].mxu0 }
 0x329   : > { %v5453_v19 = vadd.f32 %v5452_v49, %v5451_v18  ;;  %v5454_v22 = vpop.f32.mrb[54].mxu0 }
 0x32a   : > { %v5455_v24 = vpop.f32.mrb[55].mxu0 }
 0x32b   : > { %v7211_v26 = vadd.f32 %v5493_v60, %v5453_v19  ;;  %v5456_v27 = vadd.f32 %v5455_v24, %v5454_v22 }
 0x32c   : > { %v5559_v17 = vpop.f32.mrb[60].mxu1 }
 0x32d   : > { %v7213_v58 = vadd.f32 %v5496_v6, %v5456_v27  ;;  %v5560_v2 = vpop.f32.mrb[61].mxu1 }
 0x32e   : > { %v5561_v30 = vadd.f32 %v5560_v2, %v5559_v17  ;;  %v5562_v52 = vpop.f32.mrb[62].mxu1 }
 0x32f   : > { %v5563_v53 = vpop.f32.mrb[63].mxu1 }
 0x330   : > { %v5564_v54 = vadd.f32 %v5563_v53, %v5562_v52 }
 0x331   : > { %v5513_v34 = vpop.f32.mrb[56].mxu0 }
 0x332   : > { %v5514_v59 = vpop.f32.mrb[57].mxu0 }
 0x333   : > { %v5515_v63 = vadd.f32 %v5514_v59, %v5513_v34  ;;  %v5516_v29 = vpop.f32.mrb[58].mxu0 }
 0x334   : > { %v5517_v38 = vpop.f32.mrb[59].mxu0 }
 0x335   : > { %v4605_v15 = vadd.f32 %v5515_v63, %v4540_v11  ;;  %v5518_v0 = vadd.f32 %v5517_v38, %v5516_v29  ;;  %v5702_v29 = vld [vmem:[%s6879_s18 + $0x38] sm:$0xff] }
 0x337   : > { %v7215_v41 = vadd.f32 %v5555_v61, %v4605_v15  ;;  %v4608_v14 = vadd.f32 %v5518_v0, %v4543_v40 }
 0x339   : > { %v7217_v35 = vadd.f32 %v5558_v8, %v4608_v14  ;;  %v5565_v36 = vpop.f32.mrb[64].mxu1 }
 0x33a   : > { %v5566_v16 = vpop.f32.mrb[65].mxu1 }
 0x33b   : > { %v5567_v51 = vadd.f32 %v5566_v16, %v5565_v36  ;;  %v5568_v37 = vpop.f32.mrb[66].mxu1 }
 0x33c   : > { %v5519_v42 = vpop.f32.mrb[60].mxu0  ;;  %v5569_v39 = vpop.f32.mrb[67].mxu1 }
 0x33d   : > { %v5520_v48 = vpop.f32.mrb[61].mxu0  ;;  %v5570_v25 = vadd.f32 %v5569_v39, %v5568_v37 }
 0x33e   : > { %v5521_v4 = vadd.f32 %v5520_v48, %v5519_v42  ;;  %v5522_v55 = vpop.f32.mrb[62].mxu0 }
 0x33f   : > { %v5523_v47 = vpop.f32.mrb[63].mxu0 }
 0x340   : > { %v4613_v57 = vadd.f32 %v5521_v4, %v4548_v50  ;;  %v5524_v33 = vadd.f32 %v5523_v47, %v5522_v55 }
 0x341   : > { %v5571_v11 = vpop.f32.mrb[68].mxu1 }
 0x342   : > { %v4678_v23 = vadd.f32 %v5561_v30, %v4613_v57  ;;  %v4616_v10 = vadd.f32 %v5524_v33, %v4551_v56  ;;  %v5572_v40 = vpop.f32.mrb[69].mxu1 }
 0x343   : > { %v5573_v1 = vadd.f32 %v5572_v40, %v5571_v11  ;;  %v5574_v46 = vpop.f32.mrb[70].mxu1 }
 0x344   : > { %v4681_v44 = vadd.f32 %v5564_v54, %v4616_v10  ;;  %v5525_v43 = vpop.f32.mrb[64].mxu0  ;;  %v5575_v60 = vpop.f32.mrb[71].mxu1  ;;  %v5690_v54 = vld [vmem:[%s6879_s18 + $0x30] sm:$0xff] }
 0x345   : > { %v5526_v62 = vpop.f32.mrb[65].mxu0  ;;  %v5576_v5 = vadd.f32 %v5575_v60, %v5574_v46 }
 0x346   : > { %v5527_v20 = vadd.f32 %v5526_v62, %v5525_v43  ;;  %v5528_v21 = vpop.f32.mrb[66].mxu0 }
 0x347   : > { %v5529_v28 = vpop.f32.mrb[67].mxu0 }
 0x348   : > { %v4621_v6 = vadd.f32 %v5527_v20, %v4556_v9  ;;  %v5530_v7 = vadd.f32 %v5529_v28, %v5528_v21 }
 0x34a   : > { %v4686_v50 = vadd.f32 %v5567_v51, %v4621_v6  ;;  %v4624_v12 = vadd.f32 %v5530_v7, %v4559_v32 }
 0x34b   : > { %v5659_v56 = vpop.f32.mrb[72].mxu1 }
 0x34c   : > { %v5697_v13 = vadd.f32 %v5696_v31, %v4686_v50  ;;  %v4689_v61 = vadd.f32 %v5570_v25, %v4624_v12  ;;  %v4750_v45 = vpop.f32.mrb[73].mxu1 }
 0x34d   : > { %v5660_v8 = vpop.f32.mrb[74].mxu1 }
 0x34e   : > { %v5709_v18 = vadd.f32 %v5708_v3, %v4689_v61  ;;  %v5531_v49 = vpop.f32.mrb[68].mxu0  ;;  %v5700_v19 = vadd.f32 %v5697_v13, %v4750_v45  ;;  %v4753_v22 = vpop.f32.mrb[75].mxu1 }
 0x34f   : > { %v5532_v24 = vpop.f32.mrb[69].mxu0 }
 0x350   : > { %v5533_v9 = vadd.f32 %v5532_v24, %v5531_v49  ;;  %v5534_v27 = vpop.f32.mrb[70].mxu0  ;;  %4785 = vst [vmem:[%s6879_s18 + $0x20] sm:$0xff] %v5700_v19  ;;  %v5712_v32 = vadd.f32 %v5709_v18, %v4753_v22 }
 0x351   : > { %v5535_v17 = vpop.f32.mrb[71].mxu0 }
 0x352   : > { %v4629_v2 = vadd.f32 %v5533_v9, %v7211_v26  ;;  %v5536_v30 = vadd.f32 %v5535_v17, %v5534_v27  ;;  %4786 = vst [vmem:[%s6879_s18 + $0x28] sm:$0xff] %v5712_v32 }
 0x354   : > { %v4694_v52 = vadd.f32 %v5573_v1, %v4629_v2  ;;  %v4632_v53 = vadd.f32 %v5536_v30, %v7213_v58 }
 0x356   : > { %v5691_v34 = vadd.f32 %v5690_v54, %v4694_v52  ;;  %v4697_v59 = vadd.f32 %v5576_v5, %v4632_v53  ;;  %v5655_v63 = vpop.f32.mrb[0].mxu0 }
 0x357   : > { %v5679_v38 = vadd.f32 %v5655_v63, %v4678_v23  ;;  %v4734_v15 = vpop.f32.mrb[1].mxu0 }
 0x358   : > { %v5694_v26 = vadd.f32 %v5691_v34, %v5659_v56  ;;  %v5703_v0 = vadd.f32 %v5702_v29, %v4697_v59  ;;  %v5682_v14 = vadd.f32 %v4734_v15, %v7215_v41  ;;  %v5656_v58 = vpop.f32.mrb[2].mxu0 }
 0x359   : > { %4783 = vst [vmem:[%s6879_s18 + $0x10] sm:$0xff] %v5679_v38  ;;  %v5685_v36 = vadd.f32 %v5656_v58, %v4681_v44  ;;  %v4737_v16 = vpop.f32.mrb[3].mxu0 }
 0x35a   : > { %4787 = vst [vmem:[%s6879_s18 + $0x30] sm:$0xff] %v5694_v26  ;;  %v5706_v51 = vadd.f32 %v5703_v0, %v5660_v8  ;;  %4781 = vst [vmem:[%s6879_s18] sm:$0xff] %v5682_v14  ;;  %v5688_v41 = vadd.f32 %v4737_v16, %v7217_v35 }
 0x35b   : > { %4784 = vst [vmem:[%s6879_s18 + $0x18] sm:$0xff] %v5685_v36 }
 0x35c   : > { %4788 = vst [vmem:[%s6879_s18 + $0x38] sm:$0xff] %v5706_v51  ;;  %4782 = vst [vmem:[%s6879_s18 + $0x8] sm:$0xff] %v5688_v41 }
 0x35d   : > { %6092 = shalt.err (!%p6089_p4)
}
 0x35e   : > { %s6093_s18 = scalar_lea.hbm %s7234_s24, 1024  ;;  %s6097_s16 = scalar_lea.hbm %s7294_s8, 2048 }
 0x35f   : > { %p6094_p9 = scmp.ne.s32.totalorder %s7234_s24, %s6093_s18  ;;  %p6098_p8 = scmp.lt.u32.totalorder %s7234_s24, %s7294_s8 }
 0x360   : > { %p6099_p13 = scmp.lt.u32.totalorder %s6097_s16, %s6093_s18  ;;  %p6101_p10 = scmp.lt.u32.totalorder %s6093_s18, %s7234_s24 }
 0x361   : > { %p6095_p0 = pnand %p6094_p9, %p6366_p5 }
 0x362   : > { %p6100_p6 = por %p6099_p13, %p6098_p8 }
 0x363   : > { %p6096_p11 = pneg %p6095_p0 }
 0x364   : > { %p6102_p3 = por %p6101_p10, %p6100_p6 }
 0x366   : > { %p6103_p7 = pnand %p6102_p3, %p6096_p11 }
 0x368   : > { %6106 = shalt.err (!%p6103_p7)
}
 0x369   : > { %s6165_s19 = smov 128   ;;  %s6166_s9 = smov 8  }
 0x36a   : > { %5731 = dma.vmem_to_hbm [thread:$0]  (%p6366_p5), %s7236_s20, 1024, %s7234_s24, %s4790_s11, %s6165_s19, %s6165_s19, %s6166_s9  }
 0x36b PF: > { %s7328_s13 = sld [smem:[#allocation19_spill]]  ;;  %s7329_s10 = sld [smem:[#allocation20_spill]] }
 0x36c   : > { %p7331_p1 = scmp.ge.s32.totalorder %s6153_s30, 2 }
 0x371   : > { %s4818_s17 = sand.u32 1, %s7328_s13   ;;  %p7330_p12 = scmp.ne.s32.totalorder %s7329_s10, 0 }
 0x372   : > { %s4819_s15 = scalar_lea.sflag [#allocation8], %s4818_s17 }
 0x373   : > { %p5748_p2 = pnand %p7331_p1, %p7330_p12 }
 0x375   : > { %6136 = dma.done.wait (!%p5748_p2), %s4819_s15, 1024  }
 0x376   : > { %6138 = vsyncadd (!%p5748_p2), %s4819_s15, 4294966272  ;;  %p23_p4 = scmp.ge.s32.totalorder %s6352_s26, 4   ;;  %s7332_s27 = smov %s6145_s28 }
 0x377   : > { %s7333_s28 = smov %s6149_s29  ;;  %s7334_s29 = smov %s6362_s22 }
 0x378   : > { %s7335_s30 = smov %s6352_s26  ;;  %25 = sbr.rel (!%p23_p4) target bundleno = 7 (0x7), region = 115 }
 0x37f   :  { %4824 = vsyncpa [#allocation7], 1 }
 0x380   :  { %4826 = vsyncpa [#allocation7 + $0x1], 1 }
 0x381   :  { %4827 = vsyncpa [#allocation10], 1 }
 0x382   :  { %4828 = vsyncpa [#allocation13], 1 }
 0x383   :  { %4829 = vsyncpa [#allocation8], 1 }
 0x384   :  { %4831 = vsyncpa [#allocation8 + $0x1], 1 }

</bundles_post_ra>
